<compile_context>
chip_gen: v5e
topology: v5e:2x2
jax: 0.10.0
libtpu: 0.0.40
codegen_flags: <defaults>
</compile_context>

<pallas_src>
import functools

import jax
import jax.numpy as jnp
from jax import lax
from jax.experimental import pallas as pl
from jax.experimental.pallas import tpu as pltpu

EPS = 1e-5
LANE = 128                       # channel dims padded to the TPU lane width


def _vmem_limit_bytes():
    """Generation-aware scoped-VMEM limit (don't hardcode one number)."""
    cap = 64 * 1024 * 1024                       # conservative fallback (v7x)
    try:
        info = pltpu.get_tpu_info()
        cap = int(getattr(info, "vmem_capacity_bytes", cap))
    except Exception:                            # any query failure -> fallback
        pass
    return max(32 * 1024 * 1024, (cap * 3) // 4)


VMEM_LIMIT = _vmem_limit_bytes()


# ----------------------------- Pallas kernels ------------------------------ #

def _write_stats(sum_ref, sq_ref, y):
    sum_ref[...] = jnp.sum(y, axis=0, keepdims=True)
    sq_ref[...] = jnp.sum(y * y, axis=0, keepdims=True)


def _tap_window(phases, stride, kh, kw, Ho, Wo):
    """Window of the (kh, kw) conv tap as a (B*Ho*Wo, Cin) matrix (bf16)."""
    ph = phases[(kh % stride) * stride + (kw % stride)]
    r0, c0 = kh // stride, kw // stride
    bt, _, _, cin = ph.shape
    win = lax.slice(ph, (0, r0, c0, 0), (bt, r0 + Ho, c0 + Wo, cin))
    return win.reshape(bt * Ho * Wo, cin)


def conv1_fold_kernel(has_proj, xf_ref, w1_ref, *rest):
    """conv1 as one K-folded matmul (+ optional 1x1 projection) + BN sums."""
    if has_proj:
        ws_ref, y1_ref, s1sum_ref, s1sq_ref, s_ref, sssum_ref, sssq_ref = rest
    else:
        y1_ref, s1sum_ref, s1sq_ref = rest
    bt, Ho, Wo, kf = xf_ref.shape
    cout = w1_ref.shape[-1]
    xm = xf_ref[...].reshape(bt * Ho * Wo, kf)

    acc = jnp.dot(xm, w1_ref[...], preferred_element_type=jnp.float32)
    y1_ref[...] = acc.reshape(bt, Ho, Wo, cout).astype(y1_ref.dtype)
    _write_stats(s1sum_ref, s1sq_ref, acc)

    if has_proj:
        # ws is embedded at the centre-tap rows of the folded K dim, so the
        # projection reuses the same folded window matrix.
        s = jnp.dot(xm, ws_ref[...], preferred_element_type=jnp.float32)
        s_ref[...] = s.reshape(bt, Ho, Wo, cout).astype(s_ref.dtype)
        _write_stats(sssum_ref, sssq_ref, s)


def conv1_phase_kernel(stride, Ho, Wo, has_proj, x_ref, w1_ref, *rest):
    """conv1 as 9 shifted matmuls over stride-folded phases (+ projection)."""
    if has_proj:
        ws_ref, y1_ref, s1sum_ref, s1sq_ref, s_ref, sssum_ref, sssq_ref = rest
    else:
        y1_ref, s1sum_ref, s1sq_ref = rest
    bt = x_ref.shape[0]
    cout = w1_ref.shape[-1]
    phases = [x_ref[:, p] for p in range(stride * stride)]

    acc = jnp.zeros((bt * Ho * Wo, cout), jnp.float32)
    for kh in range(3):
        for kw in range(3):
            win = _tap_window(phases, stride, kh, kw, Ho, Wo)
            acc += jnp.dot(win, w1_ref[kh * 3 + kw],
                           preferred_element_type=jnp.float32)
    y1_ref[...] = acc.reshape(bt, Ho, Wo, cout).astype(y1_ref.dtype)
    _write_stats(s1sum_ref, s1sq_ref, acc)

    if has_proj:
        # 1x1 stride-s conv == the centre tap (kh = kw = 1) of the 3x3 layout.
        xc = _tap_window(phases, stride, 1, 1, Ho, Wo)
        s = jnp.dot(xc, ws_ref[...], preferred_element_type=jnp.float32)
        s_ref[...] = s.reshape(bt, Ho, Wo, cout).astype(s_ref.dtype)
        _write_stats(sssum_ref, sssq_ref, s)


def conv2_kernel(y1_ref, sc1_ref, sh1_ref, w2_ref,
                 y2_ref, s2sum_ref, s2sq_ref, halo_ref):
    """out1 = relu(bn1_affine(y1)); y2 = conv2(out1); BN2 partial sums.

    The 1-pixel zero halo conv2 needs is built in VMEM (halo_ref) instead of
    an HBM jnp.pad round trip.  The border zeros are rewritten every step so
    the kernel stays correct even if the "parallel" batch axis is partitioned
    across TensorCores (scratch is core-local and uninitialized).
    """
    bt, Ho, Wo, cmid = y1_ref.shape
    cout = w2_ref.shape[-1]

    zrow = jnp.zeros((bt, 1, Wo + 2, cmid), jnp.bfloat16)
    zcol = jnp.zeros((bt, Ho + 2, 1, cmid), jnp.bfloat16)
    halo_ref[:, 0:1, :, :] = zrow
    halo_ref[:, Ho + 1:Ho + 2, :, :] = zrow
    halo_ref[:, :, 0:1, :] = zcol
    halo_ref[:, :, Wo + 1:Wo + 2, :] = zcol

    out1 = jnp.maximum(
        y1_ref[...].astype(jnp.float32) * sc1_ref[...] + sh1_ref[...], 0.0)
    halo_ref[:, 1:Ho + 1, 1:Wo + 1, :] = out1.astype(jnp.bfloat16)

    padded = halo_ref[...]
    m = bt * Ho * Wo
    acc = jnp.zeros((m, cout), jnp.float32)
    for kh in range(3):
        for kw in range(3):
            win = lax.slice(padded, (0, kh, kw, 0), (bt, kh + Ho, kw + Wo, cmid))
            acc += jnp.dot(win.reshape(m, cmid), w2_ref[kh * 3 + kw],
                           preferred_element_type=jnp.float32)
    y2_ref[...] = acc.reshape(bt, Ho, Wo, cout).astype(y2_ref.dtype)
    _write_stats(s2sum_ref, s2sq_ref, acc)


def finalize_proj_kernel(y2_ref, s_ref, sc2_ref, sh2_ref, scs_ref, shs_ref,
                         o_ref):
    y = y2_ref[...].astype(jnp.float32) * sc2_ref[...] + sh2_ref[...]
    s = s_ref[...].astype(jnp.float32) * scs_ref[...] + shs_ref[...]
    o_ref[...] = jnp.maximum(y + s, 0.0).astype(o_ref.dtype)


def finalize_id_kernel(y2_ref, x_ref, sc2_ref, sh2_ref, o_ref):
    y = y2_ref[...].astype(jnp.float32) * sc2_ref[...] + sh2_ref[...]
    o_ref[...] = jnp.maximum(y + x_ref[...].astype(jnp.float32),
                             0.0).astype(o_ref.dtype)


# ------------------------------- JAX glue ---------------------------------- #

def _round_up(v, m):
    return (v + m - 1) // m * m


def _pad_last(a, to):
    if a.shape[-1] == to:
        return a
    cfg = [(0, 0)] * (a.ndim - 1) + [(0, to - a.shape[-1])]
    return jnp.pad(a, cfg)


def _prep_w3x3(w, cin_p, cout_p):
    kh, kw, ci, co = w.shape
    w = jnp.pad(w, ((0, 0), (0, 0), (0, cin_p - ci), (0, cout_p - co)))
    return w.reshape(kh * kw, cin_p, cout_p).astype(jnp.bfloat16)


def _prep_w1x1(w, cin_p, cout_p):
    ci, co = w.shape
    return jnp.pad(w, ((0, cin_p - ci), (0, cout_p - co))).astype(jnp.bfloat16)


def _phase_decompose(x, stride):
    """(N,H,W,C) -> (N, stride*stride, Hp, Wp, C): pad-1, fold the stride."""
    xp = jnp.pad(x, ((0, 0), (1, 1), (1, 1), (0, 0)))
    phases = [xp[:, ph::stride, pw::stride, :]
              for ph in range(stride) for pw in range(stride)]
    return jnp.stack(phases, axis=1)


def _fold_taps(x, stride, Ho, Wo, k_fold):
    """(N,H,W,Ci) -> (N,Ho,Wo,Kf): 9 shifted taps stacked along channels."""
    N, _, _, Ci = x.shape
    xp = jnp.pad(x, ((0, 0), (1, 1), (1, 1), (0, 0)))
    taps = []
    for kh in range(3):
        for kw in range(3):
            taps.append(lax.slice(
                xp, (0, kh, kw, 0),
                (N, kh + (Ho - 1) * stride + 1, kw + (Wo - 1) * stride + 1, Ci),
                (1, stride, stride, 1)))
    xf = jnp.concatenate(taps, axis=-1)
    return _pad_last(xf, k_fold).astype(jnp.bfloat16)


def _bn_affine(ssum, ssq, gamma_p, beta_p, count):
    """Fold training-mode BatchNorm (batch stats) into scale/shift vectors."""
    s = jnp.sum(ssum, axis=(0, 1))
    sq = jnp.sum(ssq, axis=(0, 1))
    mean = s / count
    # clamp: E[x^2] - E[x]^2 can come out slightly negative in f32.
    var = jnp.maximum(sq / count - mean * mean, 0.0)
    scale = gamma_p * lax.rsqrt(var + EPS)
    shift = beta_p - mean * scale
    return scale.reshape(1, -1), shift.reshape(1, -1)


def _cost(flops, bytes_accessed):
    return pl.CostEstimate(flops=int(flops), transcendentals=0,
                           bytes_accessed=int(bytes_accessed))


def _resident_spec():
    """Whole-array VMEM operand: grid-invariant, no per-step DMA/dbuf."""
    return pl.BlockSpec(memory_space=pltpu.MemorySpace.VMEM)


def _pick_batch_tile(N, Ho, Wo, in_bytes_per_img, cout_p, weight_bytes):
    """Largest batch tile fitting VMEM; prefer M>=1024 with >=4 grid steps."""
    budget = max(VMEM_LIMIT // 2 - weight_bytes, 4 * 1024 * 1024)
    per_img = (2 * in_bytes_per_img                    # conv1 input (dbuf)
               + 24 * Ho * Wo * cout_p                 # y1/y2/s/out + f32 temps
               + 2 * (Ho + 2) * (Wo + 2) * cout_p)     # conv2 halo scratch
    bt = 1
    for d in range(1, N + 1):
        if N % d:
            continue
        if d * per_img > budget:
            break
        bt = d
        if d * Ho * Wo >= 1024 and N // d >= 4:
            break
    return bt


def init_params(key, in_planes, planes, stride):
    k1, k2, k3 = jax.random.split(key, 3)
    p = {
        # conv weights stored as (kh, kw, Cin, Cout)
        "w1": jax.random.normal(k1, (3, 3, in_planes, planes), jnp.float32) * 0.1,
        "g1": jnp.ones((1, planes), jnp.float32),
        "b1": jnp.zeros((1, planes), jnp.float32),
        "w2": jax.random.normal(k2, (3, 3, planes, planes), jnp.float32) * 0.1,
        "g2": jnp.ones((1, planes), jnp.float32),
        "b2": jnp.zeros((1, planes), jnp.float32),
    }
    if stride != 1 or in_planes != planes:
        p["ws"] = jax.random.normal(k3, (in_planes, planes), jnp.float32) * 0.1
        p["gs"] = jnp.ones((1, planes), jnp.float32)
        p["bs"] = jnp.zeros((1, planes), jnp.float32)
    return p


@functools.partial(jax.jit, static_argnames=("stride",))
def basic_block_forward(x_nchw, params, stride):
    x = jnp.transpose(x_nchw, (0, 2, 3, 1)).astype(jnp.float32)   # NCHW->NHWC
    N, H, W, Ci = x.shape
    Co = params["w1"].shape[-1]
    assert H % stride == 0 and W % stride == 0
    Ho, Wo = H // stride, W // stride
    Cop = _round_up(Co, LANE)
    has_proj = "ws" in params
    use_fold = 9 * Ci <= 2 * LANE        # small Cin: single K<=256 conv1 matmul
    count = float(N * Ho * Wo)

    # BN affine params, lane padded (padded channels: gamma = beta = 0).
    g1 = _pad_last(params["g1"].reshape(-1), Cop)
    b1 = _pad_last(params["b1"].reshape(-1), Cop)
    g2 = _pad_last(params["g2"].reshape(-1), Cop)
    b2 = _pad_last(params["b2"].reshape(-1), Cop)

    w2 = _prep_w3x3(params["w2"], Cop, Cop)
    weight_bytes = w2.size * 2

    # ---- conv1 input / weight prep (fold vs. phase path) -------------------
    if use_fold:
        Kf = _round_up(9 * Ci, LANE)
        conv1_in = _fold_taps(x, stride, Ho, Wo, Kf)           # (N,Ho,Wo,Kf)
        w1f = params["w1"].reshape(9 * Ci, Co)
        w1f = jnp.pad(w1f, ((0, Kf - 9 * Ci), (0, Cop - Co))).astype(jnp.bfloat16)
        conv1_w = [w1f]
        if has_proj:
            wsf = jnp.zeros((Kf, Cop), jnp.float32)
            wsf = wsf.at[4 * Ci:5 * Ci, :Co].set(params["ws"]).astype(jnp.bfloat16)
            conv1_w.append(wsf)
        in_bytes_per_img = Ho * Wo * Kf * 2
        k_contract = Kf
    else:
        Cip = _round_up(Ci, LANE)
        conv1_in = _phase_decompose(_pad_last(x, Cip), stride).astype(jnp.bfloat16)
        P, Hph, Wph = conv1_in.shape[1], conv1_in.shape[2], conv1_in.shape[3]
        conv1_w = [_prep_w3x3(params["w1"], Cip, Cop)]
        if has_proj:
            conv1_w.append(_prep_w1x1(params["ws"], Cip, Cop))
        in_bytes_per_img = P * Hph * Wph * Cip * 2
        k_contract = 9 * Cip
    weight_bytes += sum(wi.size for wi in conv1_w) * 2

    # ---- batch-tiled grid ---------------------------------------------------
    BT = _pick_batch_tile(N, Ho, Wo, in_bytes_per_img, Cop, weight_bytes)
    G = N // BT
    grid = (G,)
    cparams = pltpu.CompilerParams(dimension_semantics=("parallel",),
                                   vmem_limit_bytes=VMEM_LIMIT)

    plane_spec = pl.BlockSpec((BT, Ho, Wo, Cop), lambda n: (n, 0, 0, 0))
    stats_spec = pl.BlockSpec((None, 1, Cop), lambda n: (n, 0, 0))
    plane_shape = jax.ShapeDtypeStruct((N, Ho, Wo, Cop), jnp.bfloat16)
    stats_shape = jax.ShapeDtypeStruct((G, 1, Cop), jnp.float32)
    m_total = N * Ho * Wo

    if use_fold:
        kern1 = functools.partial(conv1_fold_kernel, has_proj)
        x1_spec = pl.BlockSpec((BT, Ho, Wo, Kf), lambda n: (n, 0, 0, 0))
    else:
        kern1 = functools.partial(conv1_phase_kernel, stride, Ho, Wo, has_proj)
        x1_spec = pl.BlockSpec((BT, P, Hph, Wph, Cip),
                               lambda n: (n, 0, 0, 0, 0))

    # ---- kernel 1: conv1 (+ projection shortcut) + BN partial sums ---------
    in_specs1 = [x1_spec] + [_resident_spec() for _ in conv1_w]
    out_specs1 = [plane_spec, stats_spec, stats_spec]
    out_shape1 = [plane_shape, stats_shape, stats_shape]
    if has_proj:
        out_specs1 += [plane_spec, stats_spec, stats_spec]
        out_shape1 += [plane_shape, stats_shape, stats_shape]

    res1 = pl.pallas_call(
        kern1, grid=grid,
        in_specs=in_specs1, out_specs=tuple(out_specs1),
        out_shape=tuple(out_shape1),
        compiler_params=cparams,
        cost_estimate=_cost(
            2 * m_total * k_contract * Cop * (2 if has_proj else 1),
            N * in_bytes_per_img + weight_bytes
            + m_total * Cop * 2 * (2 if has_proj else 1) + 4 * G * Cop * 16),
    )(conv1_in, *conv1_w)
    if has_proj:
        y1, s1sum, s1sq, s_pre, sssum, sssq = res1
    else:
        y1, s1sum, s1sq = res1

    # ---- tiny cross-tile stat reduction + BN1 folding (JAX glue) -----------
    sc1, sh1 = _bn_affine(s1sum, s1sq, g1, b1, count)

    # ---- kernel 2: BN1-affine + ReLU + conv2 (in-kernel halo) + BN2 sums ---
    y2, s2sum, s2sq = pl.pallas_call(
        conv2_kernel, grid=grid,
        in_specs=[plane_spec, _resident_spec(), _resident_spec(),
                  _resident_spec()],
        out_specs=(plane_spec, stats_spec, stats_spec),
        out_shape=(plane_shape, stats_shape, stats_shape),
        scratch_shapes=[pltpu.VMEM((BT, Ho + 2, Wo + 2, Cop), jnp.bfloat16)],
        compiler_params=cparams,
        cost_estimate=_cost(2 * m_total * 9 * Cop * Cop,
                            m_total * Cop * 4 + w2.size * 2 + 2 * G * Cop * 8),
    )(y1, sc1, sh1, w2)

    sc2, sh2 = _bn_affine(s2sum, s2sq, g2, b2, count)

    # ---- kernel 3: BN affine(s) + residual add + ReLU (mem-bound, bf16) ----
    if has_proj:
        gs = _pad_last(params["gs"].reshape(-1), Cop)
        bs = _pad_last(params["bs"].reshape(-1), Cop)
        scs, shs = _bn_affine(sssum, sssq, gs, bs, count)
        out = pl.pallas_call(
            finalize_proj_kernel, grid=grid,
            in_specs=[plane_spec, plane_spec] + [_resident_spec()] * 4,
            out_specs=plane_spec, out_shape=plane_shape,
            compiler_params=cparams,
            cost_estimate=_cost(5 * m_total * Cop, 6 * m_total * Cop),
        )(y2, s_pre, sc2, sh2, scs, shs)
    else:
        x_res = _pad_last(x, Cop).astype(jnp.bfloat16)
        out = pl.pallas_call(
            finalize_id_kernel, grid=grid,
            in_specs=[plane_spec, plane_spec] + [_resident_spec()] * 2,
            out_specs=plane_spec, out_shape=plane_shape,
            compiler_params=cparams,
            cost_estimate=_cost(3 * m_total * Cop, 6 * m_total * Cop),
        )(y2, x_res, sc2, sh2)

    # TODO(synk): when chaining blocks, keep activations in padded-NHWC bf16
    # between blocks and fuse this relayout / kernel 3 into the next conv1.
    return jnp.transpose(out[..., :Co], (0, 3, 1, 2)).astype(jnp.float32)


# ------------------------- pure-JAX reference check ------------------------- #

def _bn_ref(y, gamma, beta):
    mean = y.mean(axis=(0, 2, 3), keepdims=True)
    var = ((y - mean) ** 2).mean(axis=(0, 2, 3), keepdims=True)
    return (y - mean) / jnp.sqrt(var + EPS) * gamma.reshape(1, -1, 1, 1) \
        + beta.reshape(1, -1, 1, 1)


def ref_forward(x, params, stride):
    w1 = jnp.transpose(params["w1"], (3, 2, 0, 1))                 # -> OIHW
    y = lax.conv_general_dilated(x, w1, (stride, stride), ((1, 1), (1, 1)))
    y = jax.nn.relu(_bn_ref(y, params["g1"][0], params["b1"][0]))
    w2 = jnp.transpose(params["w2"], (3, 2, 0, 1))
    y = lax.conv_general_dilated(y, w2, (1, 1), ((1, 1), (1, 1)))
    y = _bn_ref(y, params["g2"][0], params["b2"][0])
    if "ws" in params:
        ws = jnp.transpose(params["ws"])[:, :, None, None]         # (Co,Ci,1,1)
        s = lax.conv_general_dilated(x, ws, (stride, stride), ((0, 0), (0, 0)))
        s = _bn_ref(s, params["gs"][0], params["bs"][0])
    else:
        s = x
    return jax.nn.relu(y + s)


def _check(out, ref, tag):
    assert out.shape == ref.shape, tag
    # Kernel uses bf16 MXU operands and bf16 intermediates; reference is pure
    # f32 -> allow mixed-precision slack.
    rel = float(jnp.linalg.norm(out - ref) / jnp.linalg.norm(ref))
    mx = float(jnp.max(jnp.abs(out - ref)))
    assert rel < 4e-2, (tag, rel)
    assert mx < 2e-1, (tag, mx)


# ----------------------------------- main ----------------------------------- #

if __name__ == "__main__":
    key = jax.random.PRNGKey(0)
    kx, kp1, kp2, kp3 = jax.random.split(key, 4)

    N, Cin, H, W, planes = 2, 4, 16, 16, 8
    x = jax.random.normal(kx, (N, Cin, H, W), jnp.float32)

    # Case 1: small Cin (K-folded conv1), stride=2, projection shortcut.
    p1 = init_params(kp1, Cin, planes, stride=2)
    o1 = jax.block_until_ready(basic_block_forward(x, p1, stride=2))
    assert o1.shape == (N, planes, H // 2, W // 2)
    _check(o1, ref_forward(x, p1, 2), "fold/proj/stride2")

    # Case 2: small Cin, stride=1, identity shortcut.
    p2 = init_params(kp2, Cin, Cin, stride=1)
    o2 = jax.block_until_ready(basic_block_forward(x, p2, stride=1))
    assert o2.shape == (N, Cin, H, W)
    _check(o2, ref_forward(x, p2, 1), "fold/identity/stride1")

    # Case 3: larger Cin (phase-decomposed conv1), stride=2, projection.
    Cin3, planes3 = 32, 32
    x3 = jax.random.normal(kx, (N, Cin3, H, W), jnp.float32)
    p3 = init_params(kp3, Cin3, planes3, stride=2)
    o3 = jax.block_until_ready(basic_block_forward(x3, p3, stride=2))
    assert o3.shape == (N, planes3, H // 2, W // 2)
    _check(o3, ref_forward(x3, p3, 2), "phase/proj/stride2")

    print("KERNEL_OK")
</pallas_src>

<mosaic_0001>
module attributes {stable_mosaic.version = 11 : i64} {
  func.func @conv2_kernel(%arg0: i32, %arg1: memref<2x8x8x128xbf16, #tpu.memory_space<vmem>>, %arg2: memref<1x128xf32, #tpu.memory_space<vmem>>, %arg3: memref<1x128xf32, #tpu.memory_space<vmem>>, %arg4: memref<9x128x128xbf16, #tpu.memory_space<vmem>>, %arg5: memref<2x8x8x128xbf16, #tpu.memory_space<vmem>>, %arg6: memref<1x1x128xf32, #tpu.memory_space<vmem>>, %arg7: memref<1x1x128xf32, #tpu.memory_space<vmem>>, %arg8: memref<2x10x10x128xbf16, #tpu.memory_space<vmem>>) attributes {dimension_semantics = [#tpu.dimension_semantics<parallel>], iteration_bounds = array<i64: 1>, scalar_prefetch = 0 : i64, scratch_operands = 1 : i64, tpu.core_type = #tpu.core_type<tc>, window_params = [{transform_indices = @transform_0, window_bounds = array<i64: 2, 8, 8, 128>}, {pipeline_mode = #tpu.pipeline_mode<synchronous>, transform_indices = @transform_1, window_bounds = array<i64: 1, 128>}, {pipeline_mode = #tpu.pipeline_mode<synchronous>, transform_indices = @transform_2, window_bounds = array<i64: 1, 128>}, {pipeline_mode = #tpu.pipeline_mode<synchronous>, transform_indices = @transform_3, window_bounds = array<i64: 9, 128, 128>}, {transform_indices = @transform_4, window_bounds = array<i64: 2, 8, 8, 128>}, {transform_indices = @transform_5, window_bounds = array<i64: 1, 1, 128>}, {transform_indices = @transform_6, window_bounds = array<i64: 1, 1, 128>}]} {
    %cst = arith.constant 0.000000e+00 : bf16
    %0 = vector.broadcast %cst : bf16 to vector<2x1x10x128xbf16>
    %cst_0 = arith.constant 0.000000e+00 : bf16
    %1 = vector.broadcast %cst_0 : bf16 to vector<2x10x1x128xbf16>
    %c0 = arith.constant 0 : index
    %c0_1 = arith.constant 0 : index
    %c0_2 = arith.constant 0 : index
    %c0_3 = arith.constant 0 : index
    %2 = vector.load %arg8[%c0, %c0_1, %c0_2, %c0_3] : memref<2x10x10x128xbf16, #tpu.memory_space<vmem>>, vector<2x1x10x128xbf16>
    tpu.vector_store %arg8[%c0, %c0_1, %c0_2, %c0_3], %0 {strides = array<i32>} : memref<2x10x10x128xbf16, #tpu.memory_space<vmem>>, vector<2x1x10x128xbf16>,
    %c0_4 = arith.constant 0 : index
    %c9 = arith.constant 9 : index
    %c0_5 = arith.constant 0 : index
    %c0_6 = arith.constant 0 : index
    %3 = vector.load %arg8[%c0_4, %c9, %c0_5, %c0_6] : memref<2x10x10x128xbf16, #tpu.memory_space<vmem>>, vector<2x1x10x128xbf16>
    tpu.vector_store %arg8[%c0_4, %c9, %c0_5, %c0_6], %0 {strides = array<i32>} : memref<2x10x10x128xbf16, #tpu.memory_space<vmem>>, vector<2x1x10x128xbf16>,
    %c0_7 = arith.constant 0 : index
    %c0_8 = arith.constant 0 : index
    %c0_9 = arith.constant 0 : index
    %c0_10 = arith.constant 0 : index
    %4 = vector.load %arg8[%c0_7, %c0_8, %c0_9, %c0_10] : memref<2x10x10x128xbf16, #tpu.memory_space<vmem>>, vector<2x10x1x128xbf16>
    tpu.vector_store %arg8[%c0_7, %c0_8, %c0_9, %c0_10], %1 {strides = array<i32>} : memref<2x10x10x128xbf16, #tpu.memory_space<vmem>>, vector<2x10x1x128xbf16>,
    %c0_11 = arith.constant 0 : index
    %c0_12 = arith.constant 0 : index
    %c9_13 = arith.constant 9 : index
    %c0_14 = arith.constant 0 : index
    %5 = vector.load %arg8[%c0_11, %c0_12, %c9_13, %c0_14] : memref<2x10x10x128xbf16, #tpu.memory_space<vmem>>, vector<2x10x1x128xbf16>
    tpu.vector_store %arg8[%c0_11, %c0_12, %c9_13, %c0_14], %1 {strides = array<i32>} : memref<2x10x10x128xbf16, #tpu.memory_space<vmem>>, vector<2x10x1x128xbf16>,
    %c0_15 = arith.constant 0 : index
    %c0_16 = arith.constant 0 : index
    %c0_17 = arith.constant 0 : index
    %c0_18 = arith.constant 0 : index
    %6 = vector.load %arg1[%c0_15, %c0_16, %c0_17, %c0_18] : memref<2x8x8x128xbf16, #tpu.memory_space<vmem>>, vector<2x8x8x128xbf16>
    %7 = arith.extf %6 : vector<2x8x8x128xbf16> to vector<2x8x8x128xf32>
    %c0_19 = arith.constant 0 : index
    %c0_20 = arith.constant 0 : index
    %8 = vector.load %arg2[%c0_19, %c0_20] : memref<1x128xf32, #tpu.memory_space<vmem>>, vector<1x128xf32>
    %9 = vector.shape_cast %8 : vector<1x128xf32> to vector<1x1x1x128xf32>
    %10 = vector.broadcast %9 : vector<1x1x1x128xf32> to vector<2x8x8x128xf32>
    %11 = arith.mulf %7, %10 : vector<2x8x8x128xf32>
    %c0_21 = arith.constant 0 : index
    %c0_22 = arith.constant 0 : index
    %12 = vector.load %arg3[%c0_21, %c0_22] : memref<1x128xf32, #tpu.memory_space<vmem>>, vector<1x128xf32>
    %13 = vector.shape_cast %12 : vector<1x128xf32> to vector<1x1x1x128xf32>
    %14 = vector.broadcast %13 : vector<1x1x1x128xf32> to vector<2x8x8x128xf32>
    %15 = arith.addf %11, %14 : vector<2x8x8x128xf32>
    %cst_23 = arith.constant 0.000000e+00 : f32
    %16 = vector.broadcast %cst_23 : f32 to vector<2x8x8x128xf32>
    %17 = arith.maximumf %15, %16 : vector<2x8x8x128xf32>
    %18 = arith.truncf %17 : vector<2x8x8x128xf32> to vector<2x8x8x128xbf16>
    %c0_24 = arith.constant 0 : index
    %c1 = arith.constant 1 : index
    %c1_25 = arith.constant 1 : index
    %c0_26 = arith.constant 0 : index
    %19 = vector.load %arg8[%c0_24, %c1, %c1_25, %c0_26] : memref<2x10x10x128xbf16, #tpu.memory_space<vmem>>, vector<2x8x8x128xbf16>
    tpu.vector_store %arg8[%c0_24, %c1, %c1_25, %c0_26], %18 {strides = array<i32>} : memref<2x10x10x128xbf16, #tpu.memory_space<vmem>>, vector<2x8x8x128xbf16>,
    %c0_27 = arith.constant 0 : index
    %c0_28 = arith.constant 0 : index
    %c0_29 = arith.constant 0 : index
    %c0_30 = arith.constant 0 : index
    %20 = vector.load %arg8[%c0_27, %c0_28, %c0_29, %c0_30] : memref<2x10x10x128xbf16, #tpu.memory_space<vmem>>, vector<2x10x10x128xbf16>
    %cst_31 = arith.constant 0.000000e+00 : f32
    %21 = vector.broadcast %cst_31 : f32 to vector<128x128xf32>
    %22 = vector.extract_strided_slice %20 {offsets = [0, 0, 0, 0], sizes = [2, 8, 8, 128], strides = [1, 1, 1, 1]} : vector<2x10x10x128xbf16> to vector<2x8x8x128xbf16>
    %23 = vector.shape_cast %22 : vector<2x8x8x128xbf16> to vector<128x128xbf16>
    %c0_32 = arith.constant 0 : index
    %c0_33 = arith.constant 0 : index
    %c0_34 = arith.constant 0 : index
    %24 = vector.load %arg4[%c0_32, %c0_33, %c0_34] : memref<9x128x128xbf16, #tpu.memory_space<vmem>>, vector<1x128x128xbf16>
    %25 = vector.shape_cast %24 : vector<1x128x128xbf16> to vector<128x128xbf16>
    %cst_35 = arith.constant dense<0.000000e+00> : vector<128x128xf32>
    %26 = tpu.matmul %23, %25, %cst_35 {dimension_numbers = #tpu.dot_dimension_numbers<[1], [0], [0], [1], [0, 0, 1, 1], [], []>} : vector<128x128xbf16>, vector<128x128xbf16>, vector<128x128xf32> -> vector<128x128xf32>
    %27 = arith.addf %21, %26 : vector<128x128xf32>
    %28 = vector.extract_strided_slice %20 {offsets = [0, 0, 1, 0], sizes = [2, 8, 8, 128], strides = [1, 1, 1, 1]} : vector<2x10x10x128xbf16> to vector<2x8x8x128xbf16>
    %29 = vector.shape_cast %28 : vector<2x8x8x128xbf16> to vector<128x128xbf16>
    %c1_36 = arith.constant 1 : index
    %c0_37 = arith.constant 0 : index
    %c0_38 = arith.constant 0 : index
    %30 = vector.load %arg4[%c1_36, %c0_37, %c0_38] : memref<9x128x128xbf16, #tpu.memory_space<vmem>>, vector<1x128x128xbf16>
    %31 = vector.shape_cast %30 : vector<1x128x128xbf16> to vector<128x128xbf16>
    %cst_39 = arith.constant dense<0.000000e+00> : vector<128x128xf32>
    %32 = tpu.matmul %29, %31, %cst_39 {dimension_numbers = #tpu.dot_dimension_numbers<[1], [0], [0], [1], [0, 0, 1, 1], [], []>} : vector<128x128xbf16>, vector<128x128xbf16>, vector<128x128xf32> -> vector<128x128xf32>
    %33 = arith.addf %27, %32 : vector<128x128xf32>
    %34 = vector.extract_strided_slice %20 {offsets = [0, 0, 2, 0], sizes = [2, 8, 8, 128], strides = [1, 1, 1, 1]} : vector<2x10x10x128xbf16> to vector<2x8x8x128xbf16>
    %35 = vector.shape_cast %34 : vector<2x8x8x128xbf16> to vector<128x128xbf16>
    %c2 = arith.constant 2 : index
    %c0_40 = arith.constant 0 : index
    %c0_41 = arith.constant 0 : index
    %36 = vector.load %arg4[%c2, %c0_40, %c0_41] : memref<9x128x128xbf16, #tpu.memory_space<vmem>>, vector<1x128x128xbf16>
    %37 = vector.shape_cast %36 : vector<1x128x128xbf16> to vector<128x128xbf16>
    %cst_42 = arith.constant dense<0.000000e+00> : vector<128x128xf32>
    %38 = tpu.matmul %35, %37, %cst_42 {dimension_numbers = #tpu.dot_dimension_numbers<[1], [0], [0], [1], [0, 0, 1, 1], [], []>} : vector<128x128xbf16>, vector<128x128xbf16>, vector<128x128xf32> -> vector<128x128xf32>
    %39 = arith.addf %33, %38 : vector<128x128xf32>
    %40 = vector.extract_strided_slice %20 {offsets = [0, 1, 0, 0], sizes = [2, 8, 8, 128], strides = [1, 1, 1, 1]} : vector<2x10x10x128xbf16> to vector<2x8x8x128xbf16>
    %41 = vector.shape_cast %40 : vector<2x8x8x128xbf16> to vector<128x128xbf16>
    %c3 = arith.constant 3 : index
    %c0_43 = arith.constant 0 : index
    %c0_44 = arith.constant 0 : index
    %42 = vector.load %arg4[%c3, %c0_43, %c0_44] : memref<9x128x128xbf16, #tpu.memory_space<vmem>>, vector<1x128x128xbf16>
    %43 = vector.shape_cast %42 : vector<1x128x128xbf16> to vector<128x128xbf16>
    %cst_45 = arith.constant dense<0.000000e+00> : vector<128x128xf32>
    %44 = tpu.matmul %41, %43, %cst_45 {dimension_numbers = #tpu.dot_dimension_numbers<[1], [0], [0], [1], [0, 0, 1, 1], [], []>} : vector<128x128xbf16>, vector<128x128xbf16>, vector<128x128xf32> -> vector<128x128xf32>
    %45 = arith.addf %39, %44 : vector<128x128xf32>
    %46 = vector.extract_strided_slice %20 {offsets = [0, 1, 1, 0], sizes = [2, 8, 8, 128], strides = [1, 1, 1, 1]} : vector<2x10x10x128xbf16> to vector<2x8x8x128xbf16>
    %47 = vector.shape_cast %46 : vector<2x8x8x128xbf16> to vector<128x128xbf16>
    %c4 = arith.constant 4 : index
    %c0_46 = arith.constant 0 : index
    %c0_47 = arith.constant 0 : index
    %48 = vector.load %arg4[%c4, %c0_46, %c0_47] : memref<9x128x128xbf16, #tpu.memory_space<vmem>>, vector<1x128x128xbf16>
    %49 = vector.shape_cast %48 : vector<1x128x128xbf16> to vector<128x128xbf16>
    %cst_48 = arith.constant dense<0.000000e+00> : vector<128x128xf32>
    %50 = tpu.matmul %47, %49, %cst_48 {dimension_numbers = #tpu.dot_dimension_numbers<[1], [0], [0], [1], [0, 0, 1, 1], [], []>} : vector<128x128xbf16>, vector<128x128xbf16>, vector<128x128xf32> -> vector<128x128xf32>
    %51 = arith.addf %45, %50 : vector<128x128xf32>
    %52 = vector.extract_strided_slice %20 {offsets = [0, 1, 2, 0], sizes = [2, 8, 8, 128], strides = [1, 1, 1, 1]} : vector<2x10x10x128xbf16> to vector<2x8x8x128xbf16>
    %53 = vector.shape_cast %52 : vector<2x8x8x128xbf16> to vector<128x128xbf16>
    %c5 = arith.constant 5 : index
    %c0_49 = arith.constant 0 : index
    %c0_50 = arith.constant 0 : index
    %54 = vector.load %arg4[%c5, %c0_49, %c0_50] : memref<9x128x128xbf16, #tpu.memory_space<vmem>>, vector<1x128x128xbf16>
    %55 = vector.shape_cast %54 : vector<1x128x128xbf16> to vector<128x128xbf16>
    %cst_51 = arith.constant dense<0.000000e+00> : vector<128x128xf32>
    %56 = tpu.matmul %53, %55, %cst_51 {dimension_numbers = #tpu.dot_dimension_numbers<[1], [0], [0], [1], [0, 0, 1, 1], [], []>} : vector<128x128xbf16>, vector<128x128xbf16>, vector<128x128xf32> -> vector<128x128xf32>
    %57 = arith.addf %51, %56 : vector<128x128xf32>
    %58 = vector.extract_strided_slice %20 {offsets = [0, 2, 0, 0], sizes = [2, 8, 8, 128], strides = [1, 1, 1, 1]} : vector<2x10x10x128xbf16> to vector<2x8x8x128xbf16>
    %59 = vector.shape_cast %58 : vector<2x8x8x128xbf16> to vector<128x128xbf16>
    %c6 = arith.constant 6 : index
    %c0_52 = arith.constant 0 : index
    %c0_53 = arith.constant 0 : index
    %60 = vector.load %arg4[%c6, %c0_52, %c0_53] : memref<9x128x128xbf16, #tpu.memory_space<vmem>>, vector<1x128x128xbf16>
    %61 = vector.shape_cast %60 : vector<1x128x128xbf16> to vector<128x128xbf16>
    %cst_54 = arith.constant dense<0.000000e+00> : vector<128x128xf32>
    %62 = tpu.matmul %59, %61, %cst_54 {dimension_numbers = #tpu.dot_dimension_numbers<[1], [0], [0], [1], [0, 0, 1, 1], [], []>} : vector<128x128xbf16>, vector<128x128xbf16>, vector<128x128xf32> -> vector<128x128xf32>
    %63 = arith.addf %57, %62 : vector<128x128xf32>
    %64 = vector.extract_strided_slice %20 {offsets = [0, 2, 1, 0], sizes = [2, 8, 8, 128], strides = [1, 1, 1, 1]} : vector<2x10x10x128xbf16> to vector<2x8x8x128xbf16>
    %65 = vector.shape_cast %64 : vector<2x8x8x128xbf16> to vector<128x128xbf16>
    %c7 = arith.constant 7 : index
    %c0_55 = arith.constant 0 : index
    %c0_56 = arith.constant 0 : index
    %66 = vector.load %arg4[%c7, %c0_55, %c0_56] : memref<9x128x128xbf16, #tpu.memory_space<vmem>>, vector<1x128x128xbf16>
    %67 = vector.shape_cast %66 : vector<1x128x128xbf16> to vector<128x128xbf16>
    %cst_57 = arith.constant dense<0.000000e+00> : vector<128x128xf32>
    %68 = tpu.matmul %65, %67, %cst_57 {dimension_numbers = #tpu.dot_dimension_numbers<[1], [0], [0], [1], [0, 0, 1, 1], [], []>} : vector<128x128xbf16>, vector<128x128xbf16>, vector<128x128xf32> -> vector<128x128xf32>
    %69 = arith.addf %63, %68 : vector<128x128xf32>
    %70 = vector.extract_strided_slice %20 {offsets = [0, 2, 2, 0], sizes = [2, 8, 8, 128], strides = [1, 1, 1, 1]} : vector<2x10x10x128xbf16> to vector<2x8x8x128xbf16>
    %71 = vector.shape_cast %70 : vector<2x8x8x128xbf16> to vector<128x128xbf16>
    %c8 = arith.constant 8 : index
    %c0_58 = arith.constant 0 : index
    %c0_59 = arith.constant 0 : index
    %72 = vector.load %arg4[%c8, %c0_58, %c0_59] : memref<9x128x128xbf16, #tpu.memory_space<vmem>>, vector<1x128x128xbf16>
    %73 = vector.shape_cast %72 : vector<1x128x128xbf16> to vector<128x128xbf16>
    %cst_60 = arith.constant dense<0.000000e+00> : vector<128x128xf32>
    %74 = tpu.matmul %71, %73, %cst_60 {dimension_numbers = #tpu.dot_dimension_numbers<[1], [0], [0], [1], [0, 0, 1, 1], [], []>} : vector<128x128xbf16>, vector<128x128xbf16>, vector<128x128xf32> -> vector<128x128xf32>
    %75 = arith.addf %69, %74 : vector<128x128xf32>
    %76 = vector.shape_cast %75 : vector<128x128xf32> to vector<2x8x8x128xf32>
    %77 = arith.truncf %76 : vector<2x8x8x128xf32> to vector<2x8x8x128xbf16>
    %c0_61 = arith.constant 0 : index
    %c0_62 = arith.constant 0 : index
    %c0_63 = arith.constant 0 : index
    %c0_64 = arith.constant 0 : index
    %78 = vector.load %arg5[%c0_61, %c0_62, %c0_63, %c0_64] : memref<2x8x8x128xbf16, #tpu.memory_space<vmem>>, vector<2x8x8x128xbf16>
    tpu.vector_store %arg5[%c0_61, %c0_62, %c0_63, %c0_64], %77 {strides = array<i32>} : memref<2x8x8x128xbf16, #tpu.memory_space<vmem>>, vector<2x8x8x128xbf16>,
    %cst_65 = arith.constant dense<0.000000e+00> : vector<128xf32>
    %79 = vector.multi_reduction <add>, %75, %cst_65 [0] : vector<128x128xf32> to vector<128xf32>
    %80 = vector.shape_cast %79 : vector<128xf32> to vector<1x128xf32>
    %c0_66 = arith.constant 0 : index
    %c0_67 = arith.constant 0 : index
    %c0_68 = arith.constant 0 : index
    %81 = vector.load %arg6[%c0_66, %c0_67, %c0_68] : memref<1x1x128xf32, #tpu.memory_space<vmem>>, vector<1x1x128xf32>
    %82 = vector.shape_cast %81 : vector<1x1x128xf32> to vector<1x128xf32>
    %83 = vector.shape_cast %80 : vector<1x128xf32> to vector<1x1x128xf32>
    tpu.vector_store %arg6[%c0_66, %c0_67, %c0_68], %83 {strides = array<i32>} : memref<1x1x128xf32, #tpu.memory_space<vmem>>, vector<1x1x128xf32>,
    %84 = arith.mulf %75, %75 : vector<128x128xf32>
    %cst_69 = arith.constant dense<0.000000e+00> : vector<128xf32>
    %85 = vector.multi_reduction <add>, %84, %cst_69 [0] : vector<128x128xf32> to vector<128xf32>
    %86 = vector.shape_cast %85 : vector<128xf32> to vector<1x128xf32>
    %c0_70 = arith.constant 0 : index
    %c0_71 = arith.constant 0 : index
    %c0_72 = arith.constant 0 : index
    %87 = vector.load %arg7[%c0_70, %c0_71, %c0_72] : memref<1x1x128xf32, #tpu.memory_space<vmem>>, vector<1x1x128xf32>
    %88 = vector.shape_cast %87 : vector<1x1x128xf32> to vector<1x128xf32>
    %89 = vector.shape_cast %86 : vector<1x128xf32> to vector<1x1x128xf32>
    tpu.vector_store %arg7[%c0_70, %c0_71, %c0_72], %89 {strides = array<i32>} : memref<1x1x128xf32, #tpu.memory_space<vmem>>, vector<1x1x128xf32>,
    return
  }
  func.func @transform_0(%arg0: i32) -> (i32, i32, i32, i32) {
    %c0_i32 = arith.constant 0 : i32
    %c0_i32_0 = arith.constant 0 : i32
    %c0_i32_1 = arith.constant 0 : i32
    %c0_i32_2 = arith.constant 0 : i32
    return %arg0, %c0_i32, %c0_i32_0, %c0_i32_1 : i32, i32, i32, i32
  }
  func.func @transform_1(%arg0: i32) -> (i32, i32) {
    %c0_i32 = arith.constant 0 : i32
    %c0_i32_0 = arith.constant 0 : i32
    %c0_i32_1 = arith.constant 0 : i32
    return %c0_i32, %c0_i32_0 : i32, i32
  }
  func.func @transform_2(%arg0: i32) -> (i32, i32) {
    %c0_i32 = arith.constant 0 : i32
    %c0_i32_0 = arith.constant 0 : i32
    %c0_i32_1 = arith.constant 0 : i32
    return %c0_i32, %c0_i32_0 : i32, i32
  }
  func.func @transform_3(%arg0: i32) -> (i32, i32, i32) {
    %c0_i32 = arith.constant 0 : i32
    %c0_i32_0 = arith.constant 0 : i32
    %c0_i32_1 = arith.constant 0 : i32
    %c0_i32_2 = arith.constant 0 : i32
    return %c0_i32, %c0_i32_0, %c0_i32_1 : i32, i32, i32
  }
  func.func @transform_4(%arg0: i32) -> (i32, i32, i32, i32) {
    %c0_i32 = arith.constant 0 : i32
    %c0_i32_0 = arith.constant 0 : i32
    %c0_i32_1 = arith.constant 0 : i32
    %c0_i32_2 = arith.constant 0 : i32
    return %arg0, %c0_i32, %c0_i32_0, %c0_i32_1 : i32, i32, i32, i32
  }
  func.func @transform_5(%arg0: i32) -> (i32, i32, i32) {
    %c0_i32 = arith.constant 0 : i32
    %c0_i32_0 = arith.constant 0 : i32
    %c0_i32_1 = arith.constant 0 : i32
    return %arg0, %c0_i32, %c0_i32_0 : i32, i32, i32
  }
  func.func @transform_6(%arg0: i32) -> (i32, i32, i32) {
    %c0_i32 = arith.constant 0 : i32
    %c0_i32_0 = arith.constant 0 : i32
    %c0_i32_1 = arith.constant 0 : i32
    return %arg0, %c0_i32, %c0_i32_0 : i32, i32, i32
  }
}

module attributes {stable_mosaic.version = 11 : i64} {
  func.func @conv1_fold_kernel(%arg0: i32, %arg1: memref<2x8x8x128xbf16, #tpu.memory_space<vmem>>, %arg2: memref<128x128xbf16, #tpu.memory_space<vmem>>, %arg3: memref<128x128xbf16, #tpu.memory_space<vmem>>, %arg4: memref<2x8x8x128xbf16, #tpu.memory_space<vmem>>, %arg5: memref<1x1x128xf32, #tpu.memory_space<vmem>>, %arg6: memref<1x1x128xf32, #tpu.memory_space<vmem>>, %arg7: memref<2x8x8x128xbf16, #tpu.memory_space<vmem>>, %arg8: memref<1x1x128xf32, #tpu.memory_space<vmem>>, %arg9: memref<1x1x128xf32, #tpu.memory_space<vmem>>) attributes {dimension_semantics = [#tpu.dimension_semantics<parallel>], iteration_bounds = array<i64: 1>, scalar_prefetch = 0 : i64, scratch_operands = 0 : i64, tpu.core_type = #tpu.core_type<tc>, window_params = [{transform_indices = @transform_0, window_bounds = array<i64: 2, 8, 8, 128>}, {pipeline_mode = #tpu.pipeline_mode<synchronous>, transform_indices = @transform_1, window_bounds = array<i64: 128, 128>}, {pipeline_mode = #tpu.pipeline_mode<synchronous>, transform_indices = @transform_2, window_bounds = array<i64: 128, 128>}, {transform_indices = @transform_3, window_bounds = array<i64: 2, 8, 8, 128>}, {transform_indices = @transform_4, window_bounds = array<i64: 1, 1, 128>}, {transform_indices = @transform_5, window_bounds = array<i64: 1, 1, 128>}, {transform_indices = @transform_6, window_bounds = array<i64: 2, 8, 8, 128>}, {transform_indices = @transform_7, window_bounds = array<i64: 1, 1, 128>}, {transform_indices = @transform_8, window_bounds = array<i64: 1, 1, 128>}]} {
    %c0 = arith.constant 0 : index
    %c0_0 = arith.constant 0 : index
    %c0_1 = arith.constant 0 : index
    %c0_2 = arith.constant 0 : index
    %0 = vector.load %arg1[%c0, %c0_0, %c0_1, %c0_2] : memref<2x8x8x128xbf16, #tpu.memory_space<vmem>>, vector<2x8x8x128xbf16>
    %1 = vector.shape_cast %0 : vector<2x8x8x128xbf16> to vector<128x128xbf16>
    %c0_3 = arith.constant 0 : index
    %c0_4 = arith.constant 0 : index
    %2 = vector.load %arg2[%c0_3, %c0_4] : memref<128x128xbf16, #tpu.memory_space<vmem>>, vector<128x128xbf16>
    %cst = arith.constant dense<0.000000e+00> : vector<128x128xf32>
    %3 = tpu.matmul %1, %2, %cst {dimension_numbers = #tpu.dot_dimension_numbers<[1], [0], [0], [1], [0, 0, 1, 1], [], []>} : vector<128x128xbf16>, vector<128x128xbf16>, vector<128x128xf32> -> vector<128x128xf32>
    %4 = vector.shape_cast %3 : vector<128x128xf32> to vector<2x8x8x128xf32>
    %5 = arith.truncf %4 : vector<2x8x8x128xf32> to vector<2x8x8x128xbf16>
    %c0_5 = arith.constant 0 : index
    %c0_6 = arith.constant 0 : index
    %c0_7 = arith.constant 0 : index
    %c0_8 = arith.constant 0 : index
    %6 = vector.load %arg4[%c0_5, %c0_6, %c0_7, %c0_8] : memref<2x8x8x128xbf16, #tpu.memory_space<vmem>>, vector<2x8x8x128xbf16>
    tpu.vector_store %arg4[%c0_5, %c0_6, %c0_7, %c0_8], %5 {strides = array<i32>} : memref<2x8x8x128xbf16, #tpu.memory_space<vmem>>, vector<2x8x8x128xbf16>,
    %cst_9 = arith.constant dense<0.000000e+00> : vector<128xf32>
    %7 = vector.multi_reduction <add>, %3, %cst_9 [0] : vector<128x128xf32> to vector<128xf32>
    %8 = vector.shape_cast %7 : vector<128xf32> to vector<1x128xf32>
    %c0_10 = arith.constant 0 : index
    %c0_11 = arith.constant 0 : index
    %c0_12 = arith.constant 0 : index
    %9 = vector.load %arg5[%c0_10, %c0_11, %c0_12] : memref<1x1x128xf32, #tpu.memory_space<vmem>>, vector<1x1x128xf32>
    %10 = vector.shape_cast %9 : vector<1x1x128xf32> to vector<1x128xf32>
    %11 = vector.shape_cast %8 : vector<1x128xf32> to vector<1x1x128xf32>
    tpu.vector_store %arg5[%c0_10, %c0_11, %c0_12], %11 {strides = array<i32>} : memref<1x1x128xf32, #tpu.memory_space<vmem>>, vector<1x1x128xf32>,
    %12 = arith.mulf %3, %3 : vector<128x128xf32>
    %cst_13 = arith.constant dense<0.000000e+00> : vector<128xf32>
    %13 = vector.multi_reduction <add>, %12, %cst_13 [0] : vector<128x128xf32> to vector<128xf32>
    %14 = vector.shape_cast %13 : vector<128xf32> to vector<1x128xf32>
    %c0_14 = arith.constant 0 : index
    %c0_15 = arith.constant 0 : index
    %c0_16 = arith.constant 0 : index
    %15 = vector.load %arg6[%c0_14, %c0_15, %c0_16] : memref<1x1x128xf32, #tpu.memory_space<vmem>>, vector<1x1x128xf32>
    %16 = vector.shape_cast %15 : vector<1x1x128xf32> to vector<1x128xf32>
    %17 = vector.shape_cast %14 : vector<1x128xf32> to vector<1x1x128xf32>
    tpu.vector_store %arg6[%c0_14, %c0_15, %c0_16], %17 {strides = array<i32>} : memref<1x1x128xf32, #tpu.memory_space<vmem>>, vector<1x1x128xf32>,
    %c0_17 = arith.constant 0 : index
    %c0_18 = arith.constant 0 : index
    %18 = vector.load %arg3[%c0_17, %c0_18] : memref<128x128xbf16, #tpu.memory_space<vmem>>, vector<128x128xbf16>
    %cst_19 = arith.constant dense<0.000000e+00> : vector<128x128xf32>
    %19 = tpu.matmul %1, %18, %cst_19 {dimension_numbers = #tpu.dot_dimension_numbers<[1], [0], [0], [1], [0, 0, 1, 1], [], []>} : vector<128x128xbf16>, vector<128x128xbf16>, vector<128x128xf32> -> vector<128x128xf32>
    %20 = vector.shape_cast %19 : vector<128x128xf32> to vector<2x8x8x128xf32>
    %21 = arith.truncf %20 : vector<2x8x8x128xf32> to vector<2x8x8x128xbf16>
    %c0_20 = arith.constant 0 : index
    %c0_21 = arith.constant 0 : index
    %c0_22 = arith.constant 0 : index
    %c0_23 = arith.constant 0 : index
    %22 = vector.load %arg7[%c0_20, %c0_21, %c0_22, %c0_23] : memref<2x8x8x128xbf16, #tpu.memory_space<vmem>>, vector<2x8x8x128xbf16>
    tpu.vector_store %arg7[%c0_20, %c0_21, %c0_22, %c0_23], %21 {strides = array<i32>} : memref<2x8x8x128xbf16, #tpu.memory_space<vmem>>, vector<2x8x8x128xbf16>,
    %cst_24 = arith.constant dense<0.000000e+00> : vector<128xf32>
    %23 = vector.multi_reduction <add>, %19, %cst_24 [0] : vector<128x128xf32> to vector<128xf32>
    %24 = vector.shape_cast %23 : vector<128xf32> to vector<1x128xf32>
    %c0_25 = arith.constant 0 : index
    %c0_26 = arith.constant 0 : index
    %c0_27 = arith.constant 0 : index
    %25 = vector.load %arg8[%c0_25, %c0_26, %c0_27] : memref<1x1x128xf32, #tpu.memory_space<vmem>>, vector<1x1x128xf32>
    %26 = vector.shape_cast %25 : vector<1x1x128xf32> to vector<1x128xf32>
    %27 = vector.shape_cast %24 : vector<1x128xf32> to vector<1x1x128xf32>
    tpu.vector_store %arg8[%c0_25, %c0_26, %c0_27], %27 {strides = array<i32>} : memref<1x1x128xf32, #tpu.memory_space<vmem>>, vector<1x1x128xf32>,
    %28 = arith.mulf %19, %19 : vector<128x128xf32>
    %cst_28 = arith.constant dense<0.000000e+00> : vector<128xf32>
    %29 = vector.multi_reduction <add>, %28, %cst_28 [0] : vector<128x128xf32> to vector<128xf32>
    %30 = vector.shape_cast %29 : vector<128xf32> to vector<1x128xf32>
    %c0_29 = arith.constant 0 : index
    %c0_30 = arith.constant 0 : index
    %c0_31 = arith.constant 0 : index
    %31 = vector.load %arg9[%c0_29, %c0_30, %c0_31] : memref<1x1x128xf32, #tpu.memory_space<vmem>>, vector<1x1x128xf32>
    %32 = vector.shape_cast %31 : vector<1x1x128xf32> to vector<1x128xf32>
    %33 = vector.shape_cast %30 : vector<1x128xf32> to vector<1x1x128xf32>
    tpu.vector_store %arg9[%c0_29, %c0_30, %c0_31], %33 {strides = array<i32>} : memref<1x1x128xf32, #tpu.memory_space<vmem>>, vector<1x1x128xf32>,
    return
  }
  func.func @transform_0(%arg0: i32) -> (i32, i32, i32, i32) {
    %c0_i32 = arith.constant 0 : i32
    %c0_i32_0 = arith.constant 0 : i32
    %c0_i32_1 = arith.constant 0 : i32
    %c0_i32_2 = arith.constant 0 : i32
    return %arg0, %c0_i32, %c0_i32_0, %c0_i32_1 : i32, i32, i32, i32
  }
  func.func @transform_1(%arg0: i32) -> (i32, i32) {
    %c0_i32 = arith.constant 0 : i32
    %c0_i32_0 = arith.constant 0 : i32
    %c0_i32_1 = arith.constant 0 : i32
    return %c0_i32, %c0_i32_0 : i32, i32
  }
  func.func @transform_2(%arg0: i32) -> (i32, i32) {
    %c0_i32 = arith.constant 0 : i32
    %c0_i32_0 = arith.constant 0 : i32
    %c0_i32_1 = arith.constant 0 : i32
    return %c0_i32, %c0_i32_0 : i32, i32
  }
  func.func @transform_3(%arg0: i32) -> (i32, i32, i32, i32) {
    %c0_i32 = arith.constant 0 : i32
    %c0_i32_0 = arith.constant 0 : i32
    %c0_i32_1 = arith.constant 0 : i32
    %c0_i32_2 = arith.constant 0 : i32
    return %arg0, %c0_i32, %c0_i32_0, %c0_i32_1 : i32, i32, i32, i32
  }
  func.func @transform_4(%arg0: i32) -> (i32, i32, i32) {
    %c0_i32 = arith.constant 0 : i32
    %c0_i32_0 = arith.constant 0 : i32
    %c0_i32_1 = arith.constant 0 : i32
    return %arg0, %c0_i32, %c0_i32_0 : i32, i32, i32
  }
  func.func @transform_5(%arg0: i32) -> (i32, i32, i32) {
    %c0_i32 = arith.constant 0 : i32
    %c0_i32_0 = arith.constant 0 : i32
    %c0_i32_1 = arith.constant 0 : i32
    return %arg0, %c0_i32, %c0_i32_0 : i32, i32, i32
  }
  func.func @transform_6(%arg0: i32) -> (i32, i32, i32, i32) {
    %c0_i32 = arith.constant 0 : i32
    %c0_i32_0 = arith.constant 0 : i32
    %c0_i32_1 = arith.constant 0 : i32
    %c0_i32_2 = arith.constant 0 : i32
    return %arg0, %c0_i32, %c0_i32_0, %c0_i32_1 : i32, i32, i32, i32
  }
  func.func @transform_7(%arg0: i32) -> (i32, i32, i32) {
    %c0_i32 = arith.constant 0 : i32
    %c0_i32_0 = arith.constant 0 : i32
    %c0_i32_1 = arith.constant 0 : i32
    return %arg0, %c0_i32, %c0_i32_0 : i32, i32, i32
  }
  func.func @transform_8(%arg0: i32) -> (i32, i32, i32) {
    %c0_i32 = arith.constant 0 : i32
    %c0_i32_0 = arith.constant 0 : i32
    %c0_i32_1 = arith.constant 0 : i32
    return %arg0, %c0_i32, %c0_i32_0 : i32, i32, i32
  }
}

module attributes {stable_mosaic.version = 11 : i64} {
  func.func @finalize_proj_kernel(%arg0: i32, %arg1: memref<2x8x8x128xbf16, #tpu.memory_space<vmem>>, %arg2: memref<2x8x8x128xbf16, #tpu.memory_space<vmem>>, %arg3: memref<1x128xf32, #tpu.memory_space<vmem>>, %arg4: memref<1x128xf32, #tpu.memory_space<vmem>>, %arg5: memref<1x128xf32, #tpu.memory_space<vmem>>, %arg6: memref<1x128xf32, #tpu.memory_space<vmem>>, %arg7: memref<2x8x8x128xbf16, #tpu.memory_space<vmem>>) attributes {dimension_semantics = [#tpu.dimension_semantics<parallel>], iteration_bounds = array<i64: 1>, scalar_prefetch = 0 : i64, scratch_operands = 0 : i64, tpu.core_type = #tpu.core_type<tc>, window_params = [{transform_indices = @transform_0, window_bounds = array<i64: 2, 8, 8, 128>}, {transform_indices = @transform_1, window_bounds = array<i64: 2, 8, 8, 128>}, {pipeline_mode = #tpu.pipeline_mode<synchronous>, transform_indices = @transform_2, window_bounds = array<i64: 1, 128>}, {pipeline_mode = #tpu.pipeline_mode<synchronous>, transform_indices = @transform_3, window_bounds = array<i64: 1, 128>}, {pipeline_mode = #tpu.pipeline_mode<synchronous>, transform_indices = @transform_4, window_bounds = array<i64: 1, 128>}, {pipeline_mode = #tpu.pipeline_mode<synchronous>, transform_indices = @transform_5, window_bounds = array<i64: 1, 128>}, {transform_indices = @transform_6, window_bounds = array<i64: 2, 8, 8, 128>}]} {
    %c0 = arith.constant 0 : index
    %c0_0 = arith.constant 0 : index
    %c0_1 = arith.constant 0 : index
    %c0_2 = arith.constant 0 : index
    %0 = vector.load %arg1[%c0, %c0_0, %c0_1, %c0_2] : memref<2x8x8x128xbf16, #tpu.memory_space<vmem>>, vector<2x8x8x128xbf16>
    %1 = arith.extf %0 : vector<2x8x8x128xbf16> to vector<2x8x8x128xf32>
    %c0_3 = arith.constant 0 : index
    %c0_4 = arith.constant 0 : index
    %2 = vector.load %arg3[%c0_3, %c0_4] : memref<1x128xf32, #tpu.memory_space<vmem>>, vector<1x128xf32>
    %3 = vector.shape_cast %2 : vector<1x128xf32> to vector<1x1x1x128xf32>
    %4 = vector.broadcast %3 : vector<1x1x1x128xf32> to vector<2x8x8x128xf32>
    %5 = arith.mulf %1, %4 : vector<2x8x8x128xf32>
    %c0_5 = arith.constant 0 : index
    %c0_6 = arith.constant 0 : index
    %6 = vector.load %arg4[%c0_5, %c0_6] : memref<1x128xf32, #tpu.memory_space<vmem>>, vector<1x128xf32>
    %7 = vector.shape_cast %6 : vector<1x128xf32> to vector<1x1x1x128xf32>
    %8 = vector.broadcast %7 : vector<1x1x1x128xf32> to vector<2x8x8x128xf32>
    %9 = arith.addf %5, %8 : vector<2x8x8x128xf32>
    %c0_7 = arith.constant 0 : index
    %c0_8 = arith.constant 0 : index
    %c0_9 = arith.constant 0 : index
    %c0_10 = arith.constant 0 : index
    %10 = vector.load %arg2[%c0_7, %c0_8, %c0_9, %c0_10] : memref<2x8x8x128xbf16, #tpu.memory_space<vmem>>, vector<2x8x8x128xbf16>
    %11 = arith.extf %10 : vector<2x8x8x128xbf16> to vector<2x8x8x128xf32>
    %c0_11 = arith.constant 0 : index
    %c0_12 = arith.constant 0 : index
    %12 = vector.load %arg5[%c0_11, %c0_12] : memref<1x128xf32, #tpu.memory_space<vmem>>, vector<1x128xf32>
    %13 = vector.shape_cast %12 : vector<1x128xf32> to vector<1x1x1x128xf32>
    %14 = vector.broadcast %13 : vector<1x1x1x128xf32> to vector<2x8x8x128xf32>
    %15 = arith.mulf %11, %14 : vector<2x8x8x128xf32>
    %c0_13 = arith.constant 0 : index
    %c0_14 = arith.constant 0 : index
    %16 = vector.load %arg6[%c0_13, %c0_14] : memref<1x128xf32, #tpu.memory_space<vmem>>, vector<1x128xf32>
    %17 = vector.shape_cast %16 : vector<1x128xf32> to vector<1x1x1x128xf32>
    %18 = vector.broadcast %17 : vector<1x1x1x128xf32> to vector<2x8x8x128xf32>
    %19 = arith.addf %15, %18 : vector<2x8x8x128xf32>
    %20 = arith.addf %9, %19 : vector<2x8x8x128xf32>
    %cst = arith.constant 0.000000e+00 : f32
    %21 = vector.broadcast %cst : f32 to vector<2x8x8x128xf32>
    %22 = arith.maximumf %20, %21 : vector<2x8x8x128xf32>
    %23 = arith.truncf %22 : vector<2x8x8x128xf32> to vector<2x8x8x128xbf16>
    %c0_15 = arith.constant 0 : index
    %c0_16 = arith.constant 0 : index
    %c0_17 = arith.constant 0 : index
    %c0_18 = arith.constant 0 : index
    %24 = vector.load %arg7[%c0_15, %c0_16, %c0_17, %c0_18] : memref<2x8x8x128xbf16, #tpu.memory_space<vmem>>, vector<2x8x8x128xbf16>
    tpu.vector_store %arg7[%c0_15, %c0_16, %c0_17, %c0_18], %23 {strides = array<i32>} : memref<2x8x8x128xbf16, #tpu.memory_space<vmem>>, vector<2x8x8x128xbf16>,
    return
  }
  func.func @transform_0(%arg0: i32) -> (i32, i32, i32, i32) {
    %c0_i32 = arith.constant 0 : i32
    %c0_i32_0 = arith.constant 0 : i32
    %c0_i32_1 = arith.constant 0 : i32
    %c0_i32_2 = arith.constant 0 : i32
    return %arg0, %c0_i32, %c0_i32_0, %c0_i32_1 : i32, i32, i32, i32
  }
  func.func @transform_1(%arg0: i32) -> (i32, i32, i32, i32) {
    %c0_i32 = arith.constant 0 : i32
    %c0_i32_0 = arith.constant 0 : i32
    %c0_i32_1 = arith.constant 0 : i32
    %c0_i32_2 = arith.constant 0 : i32
    return %arg0, %c0_i32, %c0_i32_0, %c0_i32_1 : i32, i32, i32, i32
  }
  func.func @transform_2(%arg0: i32) -> (i32, i32) {
    %c0_i32 = arith.constant 0 : i32
    %c0_i32_0 = arith.constant 0 : i32
    %c0_i32_1 = arith.constant 0 : i32
    return %c0_i32, %c0_i32_0 : i32, i32
  }
  func.func @transform_3(%arg0: i32) -> (i32, i32) {
    %c0_i32 = arith.constant 0 : i32
    %c0_i32_0 = arith.constant 0 : i32
    %c0_i32_1 = arith.constant 0 : i32
    return %c0_i32, %c0_i32_0 : i32, i32
  }
  func.func @transform_4(%arg0: i32) -> (i32, i32) {
    %c0_i32 = arith.constant 0 : i32
    %c0_i32_0 = arith.constant 0 : i32
    %c0_i32_1 = arith.constant 0 : i32
    return %c0_i32, %c0_i32_0 : i32, i32
  }
  func.func @transform_5(%arg0: i32) -> (i32, i32) {
    %c0_i32 = arith.constant 0 : i32
    %c0_i32_0 = arith.constant 0 : i32
    %c0_i32_1 = arith.constant 0 : i32
    return %c0_i32, %c0_i32_0 : i32, i32
  }
  func.func @transform_6(%arg0: i32) -> (i32, i32, i32, i32) {
    %c0_i32 = arith.constant 0 : i32
    %c0_i32_0 = arith.constant 0 : i32
    %c0_i32_1 = arith.constant 0 : i32
    %c0_i32_2 = arith.constant 0 : i32
    return %arg0, %c0_i32, %c0_i32_0, %c0_i32_1 : i32, i32, i32, i32
  }
}

</mosaic_0001>

<bundles_post_ra>
// kernel: basic_block_forward.5
= control target key start
LH: loop header
LB: loop body
LE: loop exit
PB: predicated region body
PF: predicated region fallthrough
CT: control target
= control target key end

     0   :  { %s555_s0 = inlined_call_operand.vmem [shape: bf16[2,8,8,128], index: 0, kind: input, shape index: {}]   ;;  %s556_s1 = inlined_call_operand.vmem [shape: bf16[2,8,8,128], index: 1, kind: input, shape index: {}]   ;;  %s557_s2 = inlined_call_operand.vmem [shape: f32[1,128], index: 2, kind: input, shape index: {}]   ;;  %s558_s3 = inlined_call_operand.vmem [shape: f32[1,128], index: 3, kind: input, shape index: {}]   ;;  %s559_s4 = inlined_call_operand.vmem [shape: f32[1,128], index: 4, kind: input, shape index: {}]   ;;  %s560_s5 = inlined_call_operand.vmem [shape: f32[1,128], index: 5, kind: input, shape index: {}]   ;;  %s561_s6 = inlined_call_operand.vmem [shape: bf16[2,8,8,128], index: 6, kind: output, shape index: {}]  }
   0x1   :  { %v236_v0 = vld [vmem:[%s555_s0] sm:$0xff]   ;;  %v339_v12 = vld [vmem:[%s555_s0 + $0x8] sm:$0xff]   ;;  %v340_v18 = vld [vmem:[%s555_s0 + $0x10] sm:$0xff]  }
   0x2   :  { %v405_v1 = vld [vmem:[%s557_s2] ss:$0 sm:$0xff]  ;;  %v237_v2 = vunpack.c.l.bf16 %v236_v0  ;;  %v238_v3 = vunpack.c.h.bf16 %v236_v0  ;;  %v346_v13 = vld [vmem:[%s556_s1 + $0x8] sm:$0xff]   ;;  %v241_v16 = vunpack.c.l.bf16 %v339_v12  ;;  %v242_v17 = vunpack.c.h.bf16 %v339_v12  ;;  %v347_v31 = vld [vmem:[%s556_s1 + $0x10] sm:$0xff]  }
   0x3   :  { %v410_v4 = vld [vmem:[%s558_s3] ss:$0 sm:$0xff]  ;;  %v273_v21 = vunpack.c.l.bf16 %v346_v13  ;;  %v274_v22 = vunpack.c.h.bf16 %v346_v13  ;;  %v245_v29 = vunpack.c.l.bf16 %v340_v18  ;;  %v246_v30 = vunpack.c.h.bf16 %v340_v18  ;;  %v341_v40 = vld [vmem:[%s555_s0 + $0x18] sm:$0xff]  }
   0x4   :  { %v268_v5 = vld [vmem:[%s556_s1] sm:$0xff]   ;;  %v59_v9 = vmul.f32 %v405_v1, %v237_v2  ;;  %v60_v10 = vmul.f32 %v405_v1, %v238_v3  ;;  %v61_v25 = vmul.f32 %v405_v1, %v241_v16  ;;  %v62_v26 = vmul.f32 %v405_v1, %v242_v17  ;;  %v348_v45 = vld [vmem:[%s556_s1 + $0x18] sm:$0xff]   ;;  %v343_v16 = vld [vmem:[%s555_s0 + $0x28] sm:$0xff]  }
   0x5   :  { %v269_v6 = vunpack.c.l.bf16 %v268_v5  ;;  %v270_v7 = vunpack.c.h.bf16 %v268_v5  ;;  %v418_v8 = vld [vmem:[%s559_s4] ss:$0 sm:$0xff]  ;;  %v63_v38 = vmul.f32 %v405_v1, %v245_v29  ;;  %v64_v39 = vmul.f32 %v405_v1, %v246_v30  ;;  %v344_v30 = vld [vmem:[%s555_s0 + $0x30] sm:$0xff]  }
   0x6   :  { %v425_v11 = vld [vmem:[%s560_s5] ss:$0 sm:$0xff]  ;;  %v79_v19 = vadd.f32 %v410_v4, %v59_v9  ;;  %v80_v20 = vadd.f32 %v410_v4, %v60_v10  ;;  %v133_v27 = vmul.f32 %v418_v8, %v273_v21  ;;  %v134_v28 = vmul.f32 %v418_v8, %v274_v22 }
   0x7   :  { %v131_v14 = vmul.f32 %v418_v8, %v269_v6  ;;  %v132_v15 = vmul.f32 %v418_v8, %v270_v7  ;;  %v81_v34 = vadd.f32 %v410_v4, %v61_v25  ;;  %v82_v35 = vadd.f32 %v410_v4, %v62_v26  ;;  %v342_v54 = vld [vmem:[%s555_s0 + $0x20] sm:$0xff]   ;;  %v350_v25 = vld [vmem:[%s556_s1 + $0x28] sm:$0xff]  }
   0x8   :  { %v153_v36 = vadd.f32 %v425_v11, %v133_v27  ;;  %v154_v37 = vadd.f32 %v425_v11, %v134_v28  ;;  %v277_v43 = vunpack.c.l.bf16 %v347_v31  ;;  %v278_v44 = vunpack.c.h.bf16 %v347_v31  ;;  %v349_v5 = vld [vmem:[%s556_s1 + $0x20] sm:$0xff]  }
   0x9   :  { %v151_v23 = vadd.f32 %v425_v11, %v131_v14  ;;  %v152_v24 = vadd.f32 %v425_v11, %v132_v15  ;;  %v83_v48 = vadd.f32 %v410_v4, %v63_v38  ;;  %v84_v49 = vadd.f32 %v410_v4, %v64_v39 }
   0xa   :  { %v169_v46 = vadd.f32 %v153_v36, %v81_v34  ;;  %v170_v47 = vadd.f32 %v154_v37, %v82_v35  ;;  %v135_v51 = vmul.f32 %v418_v8, %v277_v43  ;;  %v136_v52 = vmul.f32 %v418_v8, %v278_v44  ;;  %v351_v43 = vld [vmem:[%s556_s1 + $0x30] sm:$0xff]  }
   0xb   :  { %v167_v32 = vadd.f32 %v151_v23, %v79_v19  ;;  %v168_v33 = vadd.f32 %v152_v24, %v80_v20  ;;  %v249_v53 = vunpack.c.l.bf16 %v341_v40  ;;  %v250_v57 = vunpack.c.h.bf16 %v341_v40 }
   0xc   :  { %v185_v55 = vmax.f32 %v169_v46, 0.0  ;;  %v186_v56 = vmax.f32 %v170_v47, 0.0  ;;  %v281_v58 = vunpack.c.l.bf16 %v348_v45  ;;  %v155_v59 = vadd.f32 %v425_v11, %v135_v51 }
   0xd   :  { %v183_v41 = vmax.f32 %v167_v32, 0.0  ;;  %v184_v42 = vmax.f32 %v168_v33, 0.0  ;;  %v156_v60 = vadd.f32 %v425_v11, %v136_v52  ;;  %v65_v61 = vmul.f32 %v405_v1, %v249_v53  ;;  %v345_v52 = vld [vmem:[%s555_s0 + $0x38] sm:$0xff]  }
   0xe   :  { %v282_v62 = vunpack.c.h.bf16 %v348_v45  ;;  %v307_v63 = vpack.c.bf16 %v186_v56, %v185_v55  ;;  %v66_v0 = vmul.f32 %v405_v1, %v250_v57  ;;  %v137_v2 = vmul.f32 %v418_v8, %v281_v58 }
   0xf   :  { %v302_v50 = vpack.c.bf16 %v184_v42, %v183_v41  ;;  %v253_v3 = vunpack.c.l.bf16 %v342_v54  ;;  %v171_v6 = vadd.f32 %v155_v59, %v83_v48  ;;  %v172_v7 = vadd.f32 %v156_v60, %v84_v49 }
  0x10   :  { %v85_v9 = vadd.f32 %v410_v4, %v65_v61  ;;  %v138_v10 = vmul.f32 %v418_v8, %v282_v62  ;;  %353 = vst [vmem:[%s561_s6 + $0x8] sm:$0xff] %v307_v63   ;;  %v86_v12 = vadd.f32 %v410_v4, %v66_v0  ;;  %v157_v13 = vadd.f32 %v425_v11, %v137_v2  ;;  %v352_v2 = vld [vmem:[%s556_s1 + $0x38] sm:$0xff]  }
  0x11   :  { %303 = vst [vmem:[%s561_s6] sm:$0xff] %v302_v50   ;;  %v254_v14 = vunpack.c.h.bf16 %v342_v54  ;;  %v67_v15 = vmul.f32 %v405_v1, %v253_v3  ;;  %v187_v17 = vmax.f32 %v171_v6, 0.0  ;;  %v188_v18 = vmax.f32 %v172_v7, 0.0 }
  0x12   :  { %v158_v19 = vadd.f32 %v425_v11, %v138_v10  ;;  %v285_v20 = vunpack.c.l.bf16 %v349_v5  ;;  %v173_v21 = vadd.f32 %v157_v13, %v85_v9  ;;  %v286_v24 = vunpack.c.h.bf16 %v349_v5 }
  0x13   :  { %v68_v22 = vmul.f32 %v405_v1, %v254_v14  ;;  %v87_v23 = vadd.f32 %v410_v4, %v67_v15  ;;  %v312_v26 = vpack.c.bf16 %v188_v18, %v187_v17  ;;  %v257_v29 = vunpack.c.l.bf16 %v343_v16 }
  0x14   :  { %v174_v27 = vadd.f32 %v158_v19, %v86_v12  ;;  %v139_v28 = vmul.f32 %v418_v8, %v285_v20  ;;  %v189_v31 = vmax.f32 %v173_v21, 0.0  ;;  %v140_v33 = vmul.f32 %v418_v8, %v286_v24 }
  0x15   :  { %v88_v32 = vadd.f32 %v410_v4, %v68_v22  ;;  %v258_v34 = vunpack.c.h.bf16 %v343_v16  ;;  %354 = vst [vmem:[%s561_s6 + $0x10] sm:$0xff] %v312_v26   ;;  %v69_v37 = vmul.f32 %v405_v1, %v257_v29  ;;  %v289_v38 = vunpack.c.l.bf16 %v350_v25 }
  0x16   :  { %v190_v35 = vmax.f32 %v174_v27, 0.0  ;;  %v159_v36 = vadd.f32 %v425_v11, %v139_v28  ;;  %v160_v39 = vadd.f32 %v425_v11, %v140_v33  ;;  %v290_v41 = vunpack.c.h.bf16 %v350_v25 }
  0x17   :  { %v70_v40 = vmul.f32 %v405_v1, %v258_v34  ;;  %v261_v42 = vunpack.c.l.bf16 %v344_v30  ;;  %v89_v46 = vadd.f32 %v410_v4, %v69_v37  ;;  %v141_v47 = vmul.f32 %v418_v8, %v289_v38 }
  0x18   :  { %v317_v44 = vpack.c.bf16 %v190_v35, %v189_v31  ;;  %v175_v45 = vadd.f32 %v159_v36, %v87_v23  ;;  %v176_v48 = vadd.f32 %v160_v39, %v88_v32  ;;  %v142_v50 = vmul.f32 %v418_v8, %v290_v41 }
  0x19   :  { %v90_v49 = vadd.f32 %v410_v4, %v70_v40  ;;  %v262_v51 = vunpack.c.h.bf16 %v344_v30  ;;  %v161_v54 = vadd.f32 %v425_v11, %v141_v47  ;;  %v71_v55 = vmul.f32 %v405_v1, %v261_v42 }
  0x1a   :  { %355 = vst [vmem:[%s561_s6 + $0x18] sm:$0xff] %v317_v44   ;;  %v191_v53 = vmax.f32 %v175_v45, 0.0  ;;  %v293_v56 = vunpack.c.l.bf16 %v351_v43  ;;  %v192_v57 = vmax.f32 %v176_v48, 0.0  ;;  %v162_v58 = vadd.f32 %v425_v11, %v142_v50 }
  0x1b   :  { %v72_v59 = vmul.f32 %v405_v1, %v262_v51  ;;  %v294_v60 = vunpack.c.h.bf16 %v351_v43  ;;  %v177_v61 = vadd.f32 %v161_v54, %v89_v46  ;;  %v91_v62 = vadd.f32 %v410_v4, %v71_v55 }
  0x1c   :  { %v143_v63 = vmul.f32 %v418_v8, %v293_v56  ;;  %v265_v0 = vunpack.c.l.bf16 %v345_v52  ;;  %v322_v3 = vpack.c.bf16 %v192_v57, %v191_v53  ;;  %v178_v5 = vadd.f32 %v162_v58, %v90_v49 }
  0x1d   :  { %v92_v6 = vadd.f32 %v410_v4, %v72_v59  ;;  %v144_v7 = vmul.f32 %v418_v8, %v294_v60  ;;  %v193_v9 = vmax.f32 %v177_v61, 0.0  ;;  %v266_v12 = vunpack.c.h.bf16 %v345_v52 }
  0x1e   :  { %v163_v10 = vadd.f32 %v425_v11, %v143_v63  ;;  %v73_v13 = vmul.f32 %v405_v1, %v265_v0  ;;  %356 = vst [vmem:[%s561_s6 + $0x20] sm:$0xff] %v322_v3   ;;  %v194_v14 = vmax.f32 %v178_v5, 0.0  ;;  %v297_v16 = vunpack.c.l.bf16 %v352_v2 }
  0x1f   :  { %v164_v15 = vadd.f32 %v425_v11, %v144_v7  ;;  %v298_v17 = vunpack.c.h.bf16 %v352_v2  ;;  %v74_v19 = vmul.f32 %v405_v1, %v266_v12 }
  0x20   :  { %v179_v18 = vadd.f32 %v163_v10, %v91_v62  ;;  %v93_v20 = vadd.f32 %v410_v4, %v73_v13  ;;  %v327_v21 = vpack.c.bf16 %v194_v14, %v193_v9  ;;  %v145_v23 = vmul.f32 %v418_v8, %v297_v16 }
  0x21   :  { %v180_v22 = vadd.f32 %v164_v15, %v92_v6  ;;  %v146_v24 = vmul.f32 %v418_v8, %v298_v17  ;;  %v94_v26 = vadd.f32 %v410_v4, %v74_v19 }
  0x22   :  { %v195_v25 = vmax.f32 %v179_v18, 0.0  ;;  %357 = vst [vmem:[%s561_s6 + $0x28] sm:$0xff] %v327_v21   ;;  %v165_v28 = vadd.f32 %v425_v11, %v145_v23 }
  0x23   :  { %v196_v27 = vmax.f32 %v180_v22, 0.0  ;;  %v166_v1 = vadd.f32 %v425_v11, %v146_v24 }
  0x24   :  { %v181_v30 = vadd.f32 %v165_v28, %v93_v20 }
  0x25   :  { %v332_v29 = vpack.c.bf16 %v196_v27, %v195_v25  ;;  %v182_v31 = vadd.f32 %v166_v1, %v94_v26 }
  0x26   :  { %v197_v8 = vmax.f32 %v181_v30, 0.0 }
  0x27   :  { %358 = vst [vmem:[%s561_s6 + $0x30] sm:$0xff] %v332_v29   ;;  %v198_v32 = vmax.f32 %v182_v31, 0.0 }
  0x29   :  { %v337_v33 = vpack.c.bf16 %v198_v32, %v197_v8 }
  0x2b   :  { %359 = vst [vmem:[%s561_s6 + $0x38] sm:$0xff] %v337_v33  }

// kernel: basic_block_forward.3
= control target key start
LH: loop header
LB: loop body
LE: loop exit
PB: predicated region body
PF: predicated region fallthrough
CT: control target
= control target key end

     0   :  { %s997_s1 = inlined_call_operand.vmem [shape: bf16[128,128], index: 1, kind: input, shape index: {}]   ;;  %s998_s2 = inlined_call_operand.vmem [shape: bf16[128,128], index: 2, kind: input, shape index: {}]   ;;  %s999_s0 = inlined_call_operand.vmem [shape: bf16[2,8,8,128], index: 0, kind: input, shape index: {}]   ;;  %s1000_s3 = inlined_call_operand.vmem [shape: bf16[2,8,8,128], index: 3, kind: output, shape index: {0}]   ;;  %s1001_s6 = inlined_call_operand.vmem [shape: bf16[2,8,8,128], index: 6, kind: output, shape index: {3}]   ;;  %s1002_s4 = inlined_call_operand.vmem [shape: f32[1,1,128], index: 4, kind: output, shape index: {1}]   ;;  %s1003_s7 = inlined_call_operand.vmem [shape: f32[1,1,128], index: 7, kind: output, shape index: {4}]   ;;  %s1004_s5 = inlined_call_operand.vmem [shape: f32[1,1,128], index: 5, kind: output, shape index: {2}]   ;;  %s1005_s8 = inlined_call_operand.vmem [shape: f32[1,1,128], index: 8, kind: output, shape index: {5}]  }
   0x1   :  { %v629_v0 = vld [vmem:[%s997_s1 + $0x38] sm:$0xff]  ;;  %v628_v2 = vld [vmem:[%s997_s1 + $0x30] sm:$0xff]  ;;  %v627_v4 = vld [vmem:[%s997_s1 + $0x28] sm:$0xff] }
   0x2   :  { %v637_v1 = vld [vmem:[%s998_s2 + $0x38] sm:$0xff]  ;;  %148 = vmatpush.bf16.msra.mxu0 %v629_v0  ;;  %v636_v3 = vld [vmem:[%s998_s2 + $0x30] sm:$0xff]  ;;  %732 = vmatpush.bf16.msra.mxu2 %v629_v0  ;;  %v635_v5 = vld [vmem:[%s998_s2 + $0x28] sm:$0xff] }
   0x3   :  { %353 = vmatpush.bf16.msra.mxu1 %v637_v1  ;;  %740 = vmatpush.bf16.msra.mxu3 %v637_v1  ;;  %v626_v6 = vld [vmem:[%s997_s1 + $0x20] sm:$0xff]  ;;  %v625_v8 = vld [vmem:[%s997_s1 + $0x18] sm:$0xff]  ;;  %v624_v10 = vld [vmem:[%s997_s1 + $0x10] sm:$0xff] }
   0x4   :  { %v634_v7 = vld [vmem:[%s998_s2 + $0x20] sm:$0xff]  ;;  %v633_v9 = vld [vmem:[%s998_s2 + $0x18] sm:$0xff]  ;;  %v632_v11 = vld [vmem:[%s998_s2 + $0x10] sm:$0xff] }
   0x5   :  { %v623_v12 = vld [vmem:[%s997_s1 + $0x8] sm:$0xff]  ;;  %v622_v14 = vld [vmem:[%s997_s1] sm:$0xff]  ;;  %v616_v20 = vld [vmem:[%s999_s0 + $0x10] sm:$0xff] }
   0x6   :  { %149 = vmatpush.bf16.msra.mxu0 %v628_v2  ;;  %733 = vmatpush.bf16.msra.mxu2 %v628_v2  ;;  %v631_v13 = vld [vmem:[%s998_s2 + $0x8] sm:$0xff]  ;;  %v630_v15 = vld [vmem:[%s998_s2] sm:$0xff]  ;;  %v620_v21 = vld [vmem:[%s999_s0 + $0x30] sm:$0xff] }
   0x7   :  { %354 = vmatpush.bf16.msra.mxu1 %v636_v3  ;;  %741 = vmatpush.bf16.msra.mxu3 %v636_v3  ;;  %v614_v16 = vld [vmem:[%s999_s0] sm:$0xff]  ;;  %v615_v18 = vld [vmem:[%s999_s0 + $0x8] sm:$0xff]  ;;  %v617_v22 = vld [vmem:[%s999_s0 + $0x18] sm:$0xff] }
   0x8   :  { %v618_v17 = vld [vmem:[%s999_s0 + $0x20] sm:$0xff]  ;;  %v619_v19 = vld [vmem:[%s999_s0 + $0x28] sm:$0xff]  ;;  %v621_v23 = vld [vmem:[%s999_s0 + $0x38] sm:$0xff] }
   0xa   :  { %150 = vmatpush.bf16.msra.mxu0 %v627_v4  ;;  %734 = vmatpush.bf16.msra.mxu2 %v627_v4 }
   0xb   :  { %355 = vmatpush.bf16.msra.mxu1 %v635_v5  ;;  %742 = vmatpush.bf16.msra.mxu3 %v635_v5 }
   0xe   :  { %151 = vmatpush.bf16.msra.mxu0 %v626_v6  ;;  %735 = vmatpush.bf16.msra.mxu2 %v626_v6 }
   0xf   :  { %356 = vmatpush.bf16.msra.mxu1 %v634_v7  ;;  %743 = vmatpush.bf16.msra.mxu3 %v634_v7 }
  0x12   :  { %152 = vmatpush.bf16.msra.mxu0 %v625_v8  ;;  %736 = vmatpush.bf16.msra.mxu2 %v625_v8 }
  0x13   :  { %357 = vmatpush.bf16.msra.mxu1 %v633_v9  ;;  %744 = vmatpush.bf16.msra.mxu3 %v633_v9 }
  0x16   :  { %153 = vmatpush.bf16.msra.mxu0 %v624_v10  ;;  %737 = vmatpush.bf16.msra.mxu2 %v624_v10 }
  0x17   :  { %358 = vmatpush.bf16.msra.mxu1 %v632_v11  ;;  %745 = vmatpush.bf16.msra.mxu3 %v632_v11 }
  0x1a   :  { %154 = vmatpush.bf16.msra.mxu0 %v623_v12  ;;  %738 = vmatpush.bf16.msra.mxu2 %v623_v12 }
  0x1b   :  { %359 = vmatpush.bf16.msra.mxu1 %v631_v13  ;;  %746 = vmatpush.bf16.msra.mxu3 %v631_v13 }
  0x1e   :  { %155 = vmatpush.bf16.msra.mxu0 %v622_v14  ;;  %739 = vmatpush.bf16.msra.mxu2 %v622_v14 }
  0x1f   :  { %360 = vmatpush.bf16.msra.mxu1 %v630_v15  ;;  %747 = vmatpush.bf16.msra.mxu3 %v630_v15 }
  0x21   :  { %156 = vmatmul.bf16.vlgmr.msra.gmra.mxu0 %v614_v16  ;;  %176 = vmatmul.bf16.vlgmr.msra.gmra.mxu2 %v618_v17 }
  0x22   :  { %361 = vmatmul.bf16.vlgmr.msra.gmra.mxu1 %v614_v16  ;;  %381 = vmatmul.bf16.vlgmr.msra.gmra.mxu3 %v618_v17 }
  0x31   :  { %161 = vmatmul.bf16.gmra.mxu0 %v615_v18  ;;  %181 = vmatmul.bf16.gmra.mxu2 %v619_v19 }
  0x32   :  { %366 = vmatmul.bf16.gmra.mxu1 %v615_v18  ;;  %386 = vmatmul.bf16.gmra.mxu3 %v619_v19 }
  0x41   :  { %166 = vmatmul.bf16.gmra.mxu0 %v616_v20  ;;  %186 = vmatmul.bf16.gmra.mxu2 %v620_v21 }
  0x42   :  { %371 = vmatmul.bf16.gmra.mxu1 %v616_v20  ;;  %391 = vmatmul.bf16.gmra.mxu3 %v620_v21 }
  0x51   :  { %171 = vmatmul.bf16.gmra.mxu0 %v617_v22  ;;  %191 = vmatmul.bf16.gmra.mxu2 %v621_v23 }
  0x52   :  { %376 = vmatmul.bf16.gmra.mxu1 %v617_v22  ;;  %396 = vmatmul.bf16.gmra.mxu3 %v621_v23 }
  0x9e   :  { %v157_v24 = vpop.f32.mrf.mxu0 }
  0x9f   :  { %v362_v25 = vpop.f32.mrf.mxu1  ;;  %v251_v58 = vmul.f32 %v157_v24, %v157_v24 }
  0xa0   :  { %v456_v60 = vmul.f32 %v362_v25, %v362_v25 }
  0xa4   :  { %v865_v26 = vpop.f32.mrf.mxu2 }
  0xa5   :  { %v867_v27 = vpop.f32.mrf.mxu3 }
  0xa6   :  { %v159_v28 = vpop.f32.mrf.mxu0 }
  0xa7   :  { %v364_v29 = vpop.f32.mrf.mxu1  ;;  %v641_v30 = vpack.c.bf16 %v159_v28, %v157_v24  ;;  %v252_v56 = vmul.f32 %v159_v28, %v159_v28  ;;  %v229_v61 = vadd.f32 %v159_v28, %v157_v24 }
  0xa8   :  { %v681_v31 = vpack.c.bf16 %v364_v29, %v362_v25  ;;  %v457_v57 = vmul.f32 %v364_v29, %v364_v29  ;;  %v434_v62 = vadd.f32 %v364_v29, %v362_v25 }
  0xa9   :  { %642 = vst [vmem:[%s1000_s3] sm:$0xff] %v641_v30   ;;  %v267_v0 = vadd.f32 %v252_v56, %v251_v58 }
  0xaa   :  { %682 = vst [vmem:[%s1001_s6] sm:$0xff] %v681_v31   ;;  %v472_v2 = vadd.f32 %v457_v57, %v456_v60 }
  0xac   :  { %v875_v32 = vpop.f32.mrf.mxu2 }
  0xad   :  { %v877_v33 = vpop.f32.mrf.mxu3  ;;  %v661_v35 = vpack.c.bf16 %v875_v32, %v865_v26 }
  0xae   :  { %v162_v34 = vpop.f32.mrf.mxu0  ;;  %v701_v37 = vpack.c.bf16 %v877_v33, %v867_v27 }
  0xaf   :  { %v367_v36 = vpop.f32.mrf.mxu1  ;;  %721 = vst [vmem:[%s1000_s3 + $0x20] sm:$0xff] %v661_v35   ;;  %v253_v59 = vmul.f32 %v162_v34, %v162_v34  ;;  %v230_v3 = vadd.f32 %v229_v61, %v162_v34 }
  0xb0   :  { %728 = vst [vmem:[%s1001_s6 + $0x20] sm:$0xff] %v701_v37   ;;  %v458_v63 = vmul.f32 %v367_v36, %v367_v36  ;;  %v435_v4 = vadd.f32 %v434_v62, %v367_v36  ;;  %v260_v62 = vmul.f32 %v875_v32, %v875_v32 }
  0xb1   :  { %v268_v8 = vadd.f32 %v267_v0, %v253_v59  ;;  %v464_v59 = vmul.f32 %v867_v27, %v867_v27 }
  0xb2   :  { %v473_v14 = vadd.f32 %v472_v2, %v458_v63 }
  0xb4   :  { %v889_v38 = vpop.f32.mrf.mxu2 }
  0xb5   :  { %v891_v39 = vpop.f32.mrf.mxu3 }
  0xb6   :  { %v164_v40 = vpop.f32.mrf.mxu0 }
  0xb7   :  { %v369_v41 = vpop.f32.mrf.mxu1  ;;  %v646_v42 = vpack.c.bf16 %v164_v40, %v162_v34  ;;  %v254_v1 = vmul.f32 %v164_v40, %v164_v40  ;;  %v231_v15 = vadd.f32 %v230_v3, %v164_v40  ;;  %v261_v3 = vmul.f32 %v889_v38, %v889_v38 }
  0xb8   :  { %v686_v43 = vpack.c.bf16 %v369_v41, %v367_v36  ;;  %v459_v5 = vmul.f32 %v369_v41, %v369_v41  ;;  %v436_v17 = vadd.f32 %v435_v4, %v369_v41 }
  0xb9   :  { %718 = vst [vmem:[%s1000_s3 + $0x8] sm:$0xff] %v646_v42   ;;  %v269_v16 = vadd.f32 %v268_v8, %v254_v1 }
  0xba   :  { %725 = vst [vmem:[%s1001_s6 + $0x8] sm:$0xff] %v686_v43   ;;  %v474_v20 = vadd.f32 %v473_v14, %v459_v5 }
  0xbc   :  { %v899_v44 = vpop.f32.mrf.mxu2 }
  0xbd   :  { %v901_v45 = vpop.f32.mrf.mxu3  ;;  %v666_v47 = vpack.c.bf16 %v899_v44, %v889_v38 }
  0xbe   :  { %v167_v46 = vpop.f32.mrf.mxu0  ;;  %v706_v49 = vpack.c.bf16 %v901_v45, %v891_v39 }
  0xbf   :  { %v372_v48 = vpop.f32.mrf.mxu1  ;;  %722 = vst [vmem:[%s1000_s3 + $0x28] sm:$0xff] %v666_v47   ;;  %v255_v9 = vmul.f32 %v167_v46, %v167_v46  ;;  %v232_v21 = vadd.f32 %v231_v15, %v167_v46 }
  0xc0   :  { %729 = vst [vmem:[%s1001_s6 + $0x28] sm:$0xff] %v706_v49   ;;  %v460_v18 = vmul.f32 %v372_v48, %v372_v48  ;;  %v437_v23 = vadd.f32 %v436_v17, %v372_v48 }
  0xc1   :  { %v270_v22 = vadd.f32 %v269_v16, %v255_v9  ;;  %v466_v9 = vmul.f32 %v891_v39, %v891_v39 }
  0xc2   :  { %v475_v29 = vadd.f32 %v474_v20, %v460_v18 }
  0xc4   :  { %v913_v50 = vpop.f32.mrf.mxu2 }
  0xc5   :  { %v915_v51 = vpop.f32.mrf.mxu3 }
  0xc6   :  { %v169_v52 = vpop.f32.mrf.mxu0 }
  0xc7   :  { %v374_v53 = vpop.f32.mrf.mxu1  ;;  %v651_v54 = vpack.c.bf16 %v169_v52, %v167_v46  ;;  %v256_v19 = vmul.f32 %v169_v52, %v169_v52  ;;  %v233_v28 = vadd.f32 %v232_v21, %v169_v52  ;;  %v259_v52 = vmul.f32 %v865_v26, %v865_v26 }
  0xc8   :  { %v691_v55 = vpack.c.bf16 %v374_v53, %v372_v48  ;;  %v461_v24 = vmul.f32 %v374_v53, %v374_v53  ;;  %v438_v31 = vadd.f32 %v437_v23, %v374_v53 }
  0xc9   :  { %719 = vst [vmem:[%s1000_s3 + $0x10] sm:$0xff] %v651_v54   ;;  %v271_v30 = vadd.f32 %v270_v22, %v256_v19 }
  0xca   :  { %726 = vst [vmem:[%s1001_s6 + $0x10] sm:$0xff] %v691_v55   ;;  %v476_v40 = vadd.f32 %v475_v29, %v461_v24 }
  0xcc   :  { %v923_v6 = vpop.f32.mrf.mxu2 }
  0xcd   :  { %v925_v7 = vpop.f32.mrf.mxu3  ;;  %v671_v11 = vpack.c.bf16 %v923_v6, %v913_v50  ;;  %v264_v20 = vmul.f32 %v923_v6, %v923_v6 }
  0xce   :  { %v172_v10 = vpop.f32.mrf.mxu0  ;;  %v711_v13 = vpack.c.bf16 %v925_v7, %v915_v51 }
  0xcf   :  { %v377_v12 = vpop.f32.mrf.mxu1  ;;  %723 = vst [vmem:[%s1000_s3 + $0x30] sm:$0xff] %v671_v11   ;;  %v257_v25 = vmul.f32 %v172_v10, %v172_v10  ;;  %v234_v35 = vadd.f32 %v233_v28, %v172_v10 }
  0xd0   :  { %730 = vst [vmem:[%s1001_s6 + $0x30] sm:$0xff] %v711_v13   ;;  %v462_v34 = vmul.f32 %v377_v12, %v377_v12  ;;  %v439_v42 = vadd.f32 %v438_v31, %v377_v12 }
  0xd1   :  { %v272_v41 = vadd.f32 %v271_v30, %v257_v25 }
  0xd2   :  { %v477_v48 = vadd.f32 %v476_v40, %v462_v34 }
  0xd4   :  { %v192_v36 = vpop.f32.mrf.mxu2 }
  0xd5   :  { %v397_v37 = vpop.f32.mrf.mxu3  ;;  %v265_v28 = vmul.f32 %v192_v36, %v192_v36 }
  0xd6   :  { %v174_v43 = vpop.f32.mrf.mxu0  ;;  %v470_v31 = vmul.f32 %v397_v37, %v397_v37 }
  0xd7   :  { %v379_v46 = vpop.f32.mrf.mxu1  ;;  %v656_v47 = vpack.c.bf16 %v174_v43, %v172_v10  ;;  %v235_v49 = vadd.f32 %v234_v35, %v174_v43  ;;  %v258_v54 = vmul.f32 %v174_v43, %v174_v43 }
  0xd8   :  { %v696_v55 = vpack.c.bf16 %v379_v46, %v377_v12  ;;  %v440_v56 = vadd.f32 %v439_v42, %v379_v46  ;;  %v463_v57 = vmul.f32 %v379_v46, %v379_v46  ;;  %v262_v12 = vmul.f32 %v899_v44, %v899_v44 }
  0xd9   :  { %720 = vst [vmem:[%s1000_s3 + $0x18] sm:$0xff] %v656_v47   ;;  %v236_v53 = vadd.f32 %v235_v49, %v865_v26  ;;  %v273_v58 = vadd.f32 %v272_v41, %v258_v54  ;;  %v465_v26 = vmul.f32 %v877_v33, %v877_v33 }
  0xda   :  { %727 = vst [vmem:[%s1001_s6 + $0x18] sm:$0xff] %v696_v55   ;;  %v441_v60 = vadd.f32 %v440_v56, %v867_v27  ;;  %v478_v61 = vadd.f32 %v477_v48, %v463_v57 }
  0xdb   :  { %v237_v63 = vadd.f32 %v236_v53, %v875_v32  ;;  %v274_v0 = vadd.f32 %v273_v58, %v259_v52 }
  0xdc   :  { %v442_v1 = vadd.f32 %v441_v60, %v877_v33  ;;  %v479_v2 = vadd.f32 %v478_v61, %v464_v59  ;;  %v194_v27 = vpop.f32.mrf.mxu2 }
  0xdd   :  { %v238_v4 = vadd.f32 %v237_v63, %v889_v38  ;;  %v275_v5 = vadd.f32 %v274_v0, %v260_v62  ;;  %v399_v8 = vpop.f32.mrf.mxu3  ;;  %v676_v11 = vpack.c.bf16 %v194_v27, %v192_v36  ;;  %v467_v38 = vmul.f32 %v901_v45, %v901_v45 }
  0xde   :  { %v443_v32 = vadd.f32 %v442_v1, %v891_v39  ;;  %v480_v10 = vadd.f32 %v479_v2, %v465_v26  ;;  %v716_v14 = vpack.c.bf16 %v399_v8, %v397_v37  ;;  %v263_v39 = vmul.f32 %v913_v50, %v913_v50 }
  0xdf   :  { %v276_v33 = vadd.f32 %v275_v5, %v261_v3  ;;  %v239_v13 = vadd.f32 %v238_v4, %v899_v44  ;;  %724 = vst [vmem:[%s1000_s3 + $0x38] sm:$0xff] %v676_v11   ;;  %v468_v44 = vmul.f32 %v915_v51, %v915_v51  ;;  %v266_v40 = vmul.f32 %v194_v27, %v194_v27 }
  0xe0   :  { %v481_v15 = vadd.f32 %v480_v10, %v466_v9  ;;  %v444_v16 = vadd.f32 %v443_v32, %v901_v45  ;;  %731 = vst [vmem:[%s1001_s6 + $0x38] sm:$0xff] %v716_v14   ;;  %v471_v43 = vmul.f32 %v399_v8, %v399_v8 }
  0xe1   :  { %v240_v17 = vadd.f32 %v239_v13, %v913_v50  ;;  %v277_v18 = vadd.f32 %v276_v33, %v262_v12  ;;  %v469_v50 = vmul.f32 %v925_v7, %v925_v7 }
  0xe2   :  { %v445_v19 = vadd.f32 %v444_v16, %v915_v51  ;;  %v482_v45 = vadd.f32 %v481_v15, %v467_v38 }
  0xe3   :  { %v241_v21 = vadd.f32 %v240_v17, %v923_v6  ;;  %v278_v22 = vadd.f32 %v277_v18, %v263_v39 }
  0xe4   :  { %v446_v23 = vadd.f32 %v445_v19, %v925_v7  ;;  %v483_v24 = vadd.f32 %v482_v45, %v468_v44 }
  0xe5   :  { %v242_v25 = vadd.f32 %v241_v21, %v192_v36  ;;  %v279_v29 = vadd.f32 %v278_v22, %v264_v20 }
  0xe6   :  { %v447_v30 = vadd.f32 %v446_v23, %v397_v37  ;;  %v484_v34 = vadd.f32 %v483_v24, %v469_v50 }
  0xe7   :  { %v280_v51 = vadd.f32 %v279_v29, %v265_v28  ;;  %v243_v35 = vadd.f32 %v242_v25, %v194_v27 }
  0xe8   :  { %v485_v41 = vadd.f32 %v484_v34, %v470_v31  ;;  %v448_v42 = vadd.f32 %v447_v30, %v399_v8 }
  0xe9   :  { %v244_v6 = vrot.slane %v243_v35, 4  ;;  %v281_v46 = vadd.f32 %v280_v51, %v266_v40 }
  0xea   :  { %v449_v47 = vrot.slane %v448_v42, 4  ;;  %v486_v49 = vadd.f32 %v485_v41, %v471_v43 }
  0xeb   :  { %v245_v54 = vadd.f32 %v244_v6, %v243_v35  ;;  %v282_v55 = vrot.slane %v281_v46, 4 }
  0xec   :  { %v450_v7 = vadd.f32 %v449_v47, %v448_v42  ;;  %v487_v48 = vrot.slane %v486_v49, 4 }
  0xed   :  { %v246_v56 = vrot.slane %v245_v54, 2  ;;  %v283_v36 = vadd.f32 %v282_v55, %v281_v46 }
  0xee   :  { %v451_v57 = vrot.slane %v450_v7, 2  ;;  %v488_v52 = vadd.f32 %v487_v48, %v486_v49 }
  0xef   :  { %v247_v37 = vadd.f32 %v246_v56, %v245_v54  ;;  %v284_v53 = vrot.slane %v283_v36, 2 }
  0xf0   :  { %v452_v58 = vadd.f32 %v451_v57, %v450_v7  ;;  %v489_v59 = vrot.slane %v488_v52, 2 }
  0xf1   :  { %v248_v60 = vrot.slane %v247_v37, 1  ;;  %v285_v61 = vadd.f32 %v284_v53, %v283_v36 }
  0xf2   :  { %v453_v62 = vrot.slane %v452_v58, 1  ;;  %v490_v63 = vadd.f32 %v489_v59, %v488_v52 }
  0xf3   :  { %v249_v0 = vadd.f32 %v248_v60, %v247_v37  ;;  %v286_v26 = vrot.slane %v285_v61, 1 }
  0xf4   :  { %v454_v1 = vadd.f32 %v453_v62, %v452_v58  ;;  %v491_v2 = vrot.slane %v490_v63, 1 }
  0xf5   :  { %250 = vst [vmem:[%s1002_s4] sm:$0x1] %v249_v0  ;;  %v287_v3 = vadd.f32 %v286_v26, %v285_v61 }
  0xf6   :  { %455 = vst [vmem:[%s1003_s7] sm:$0x1] %v454_v1  ;;  %v492_v4 = vadd.f32 %v491_v2, %v490_v63 }
  0xf7   :  { %288 = vst [vmem:[%s1004_s5] sm:$0x1] %v287_v3 }
  0xf8   :  { %493 = vst [vmem:[%s1005_s8] sm:$0x1] %v492_v4 }

// kernel: basic_block_forward.4
= control target key start
LH: loop header
LB: loop body
LE: loop exit
PB: predicated region body
PF: predicated region fallthrough
CT: control target
= control target key end

     0   :  { %vm30_vm0 = vcmask 1040384   ;;  %vm31_vm1 = vsmask.f32 256  ;;  %v45_v1 = vld [vmem:[#allocation2 + $0x20] sm:$0x1]  ;;  %v3008_v4 = vmov 0   ;;  %s4165_s3 = inlined_call_operand.vmem [shape: bf16[9,128,128], index: 3, kind: input, shape index: {}]   ;;  %s4166_s0 = inlined_call_operand.vmem [shape: bf16[2,8,8,128], index: 0, kind: input, shape index: {}]   ;;  %s4167_s1 = inlined_call_operand.vmem [shape: f32[1,128], index: 1, kind: input, shape index: {}]   ;;  %s4168_s2 = inlined_call_operand.vmem [shape: f32[1,128], index: 2, kind: input, shape index: {}]   ;;  %s4169_s4 = inlined_call_operand.vmem [shape: bf16[2,8,8,128], index: 4, kind: output, shape index: {0}]   ;;  %s4170_s5 = inlined_call_operand.vmem [shape: f32[1,1,128], index: 5, kind: output, shape index: {1}]   ;;  %s4171_s6 = inlined_call_operand.vmem [shape: f32[1,1,128], index: 6, kind: output, shape index: {2}]  }
   0x1   :  { %v2824_v0 = vld [vmem:[%s4165_s3 + $0x78] sm:$0xff]  ;;  %vm93_vm2 = vsmask.f32 7938  ;;  %v2823_v2 = vld [vmem:[%s4165_s3 + $0x70] sm:$0xff]  ;;  %vm3051_vm3 = vmand %vm30_vm0, %vm31_vm1  ;;  %23 = vst [vmem:[#allocation2 + $0x50] sm:$0xf] %v3008_v4 }
   0x2   :  { %2967 = vmatpush.bf16.msra.mxu1 %v2824_v0  ;;  %2968 = vmatpush.bf16.msra.mxu2 %v2824_v0  ;;  %v46_v5 = vsel %vm3051_vm3, 0, %v45_v1  ;;  %v48_v6 = vld [vmem:[#allocation2 + $0x28] sm:$0x1]  ;;  %vm3060_vm4 = vmand %vm30_vm0, %vm93_vm2  ;;  %v107_v8 = vld [vmem:[#allocation2 + $0x24] sm:$0x1]  ;;  %vm420_vm5 = vcmask 1043456  }
   0x3   :  { %2969 = vmatpush.bf16.msra.mxu3 %v2824_v0  ;;  %898 = vmatpush.bf16.msra.mxu0 %v2824_v0  ;;  %47 = vst [vmem:[#allocation2 + $0x20] sm:$0x1] %v46_v5  ;;  %v49_v9 = vsel %vm3051_vm3, 0, %v48_v6  ;;  %v108_v10 = vsel %vm3060_vm4, 0, %v107_v8  ;;  %v110_v11 = vld [vmem:[#allocation2 + $0x2c] sm:$0x1]  ;;  %vm3165_vm8 = vmand %vm420_vm5, %vm93_vm2 }
   0x4   :  { %v2822_v12 = vld [vmem:[%s4165_s3 + $0x68] sm:$0xff]  ;;  %50 = vst [vmem:[#allocation2 + $0x28] sm:$0x1] %v49_v9  ;;  %v111_v13 = vsel %vm3060_vm4, 0, %v110_v11  ;;  %v3081_v15 = vld [vmem:[%s4166_s0 + $0x10] sm:$0xff]   ;;  %v3105_v27 = vld [vmem:[%s4166_s0 + $0x20] sm:$0xff]  }
   0x5   :  { %v3076_v14 = vld [vmem:[%s4166_s0 + $0x8] sm:$0xff]   ;;  %109 = vst [vmem:[#allocation2 + $0x24] sm:$0x1] %v108_v10  ;;  %v2891_v17 = vunpack.c.l.bf16 %v3081_v15  ;;  %v3088_v18 = vld [vmem:[%s4167_s1] ss:$0 sm:$0xff]  ;;  %v2899_v33 = vunpack.c.l.bf16 %v3105_v27  ;;  %v3123_v34 = vld [vmem:[%s4166_s0 + $0x30] sm:$0xff]   ;;  %v2892_v54 = vunpack.c.h.bf16 %v3081_v15 }
   0x6   :  { %2970 = vmatpush.bf16.msra.mxu1 %v2823_v2  ;;  %2971 = vmatpush.bf16.msra.mxu2 %v2823_v2  ;;  %v2888_v16 = vunpack.c.h.bf16 %v3076_v14  ;;  %112 = vst [vmem:[#allocation2 + $0x2c] sm:$0x1] %v111_v13  ;;  %v3093_v19 = vld [vmem:[%s4168_s2] ss:$0 sm:$0xff]  ;;  %v66_v22 = vld [vmem:[#allocation2 + $0x58] sm:$0x1]  ;;  %v2907_v36 = vunpack.c.l.bf16 %v3123_v34 }
   0x7   :  { %2972 = vmatpush.bf16.msra.mxu3 %v2823_v2  ;;  %899 = vmatpush.bf16.msra.mxu0 %v2823_v2  ;;  %v195_v21 = vmul.f32 %v3088_v18, %v2891_v17  ;;  %24 = vst [vmem:[#allocation2 + $0x54] sm:$0x1] %v3008_v4  ;;  %v128_v23 = vld [vmem:[#allocation2 + $0x5c] sm:$0x1]  ;;  %v67_v25 = vsel %vm3051_vm3, 0, %v66_v22  ;;  %v3110_v28 = vld [vmem:[%s4166_s0 + $0x28] sm:$0xff]   ;;  %v199_v40 = vmul.f32 %v3088_v18, %v2899_v33 }
   0x8   :  { %v194_v20 = vmul.f32 %v3088_v18, %v2888_v16  ;;  %v63_v24 = vld [vmem:[#allocation2 + $0x50] sm:$0x1]  ;;  %v129_v26 = vsel %vm3060_vm4, 0, %v128_v23  ;;  %v2821_v29 = vld [vmem:[%s4165_s3 + $0x60] sm:$0xff]  ;;  %68 = vst [vmem:[#allocation2 + $0x58] sm:$0x1] %v67_v25  ;;  %v2904_v35 = vunpack.c.h.bf16 %v3110_v28  ;;  %v203_v44 = vmul.f32 %v3088_v18, %v2907_v36 }
   0x9   :  { %v215_v31 = vadd.f32 %v3093_v19, %v195_v21  ;;  %v64_v32 = vsel %vm3051_vm3, 0, %v63_v24  ;;  %v3130_v37 = vld [vmem:[%s4166_s0] sm:$0xff]   ;;  %130 = vst [vmem:[#allocation2 + $0x5c] sm:$0x1] %v129_v26  ;;  %v75_v41 = vld [vmem:[#allocation2 + $0x70] sm:$0x1]  ;;  %v219_v49 = vadd.f32 %v3093_v19, %v199_v40 }
   0xa   :  { %2973 = vmatpush.bf16.msra.mxu1 %v2822_v12  ;;  %2974 = vmatpush.bf16.msra.mxu2 %v2822_v12  ;;  %v214_v30 = vadd.f32 %v3093_v19, %v194_v20  ;;  %65 = vst [vmem:[#allocation2 + $0x50] sm:$0x1] %v64_v32  ;;  %v3134_v42 = vld [vmem:[#allocation2 + $0x78] sm:$0x1]  ;;  %v202_v43 = vmul.f32 %v3088_v18, %v2904_v35  ;;  %v2883_v45 = vunpack.c.l.bf16 %v3130_v37  ;;  %v137_v50 = vld [vmem:[#allocation2 + $0x74] sm:$0x1] }
   0xb   :  { %2975 = vmatpush.bf16.msra.mxu3 %v2822_v12  ;;  %900 = vmatpush.bf16.msra.mxu0 %v2822_v12  ;;  %v231_v39 = vmax.f32 %v215_v31, 0.0  ;;  %21 = vst [vmem:[#allocation2] sm:$0xf] %v3008_v4  ;;  %v2820_v46 = vld [vmem:[%s4165_s3 + $0x58] sm:$0xff]  ;;  %v76_v52 = vsel %vm3051_vm3, 0, %v75_v41  ;;  %v79_v53 = vsel %vm3051_vm3, 0, %v3134_v42  ;;  %v223_v10 = vadd.f32 %v3093_v19, %v203_v44 }
   0xc   :  { %v230_v38 = vmax.f32 %v214_v30, 0.0  ;;  %22 = vst [vmem:[#allocation2 + $0x4] sm:$0x1] %v3008_v4  ;;  %v2819_v59 = vld [vmem:[%s4165_s3 + $0x50] sm:$0xff]  ;;  %v440_v60 = vld [vmem:[#allocation2 + $0x20] sm:$0xf]  ;;  %v191_v2 = vmul.f32 %v3088_v18, %v2883_v45  ;;  %v222_v9 = vadd.f32 %v3093_v19, %v202_v43 }
   0xd   :  { %v247_v48 = vpack.c.bf16 %v231_v39, %v231_v39  ;;  %26 = vst [vmem:[#allocation2 + $0x48] sm:$0xf] %v3008_v4  ;;  %v443_v61 = vld [vmem:[#allocation2 + $0x24] sm:$0x1]  ;;  %v446_v62 = vld [vmem:[#allocation2 + $0x28] sm:$0xf] }
   0xe   :  { %2976 = vmatpush.bf16.msra.mxu1 %v2821_v29  ;;  %2977 = vmatpush.bf16.msra.mxu2 %v2821_v29  ;;  %v246_v47 = vpack.c.bf16 %v230_v38, %v230_v38  ;;  %v125_v51 = vld [vmem:[#allocation2 + $0x54] sm:$0x1]  ;;  %27 = vst [vmem:[#allocation2 + $0x4c] sm:$0x1] %v3008_v4  ;;  %vm574_vm6 = vsmask.f32 3328  ;;  %v3171_v20 = vadd.f32 %v3093_v19, %v191_v2 }
   0xf   :  { %2978 = vmatpush.bf16.msra.mxu3 %v2821_v29  ;;  %901 = vmatpush.bf16.msra.mxu0 %v2821_v29  ;;  %v292_v57 = vshrl.u32 %v247_v48, 16  ;;  %v295_v58 = vshll.u32 %v247_v48, 16  ;;  %vm575_vm7 = vsmask.f32 7440  ;;  %v126_v63 = vsel %vm3060_vm4, 0, %v125_v51  ;;  %v2818_v21 = vld [vmem:[%s4165_s3 + $0x48] sm:$0xff] }
  0x10   :  { %v284_v55 = vshrl.u32 %v246_v47, 16  ;;  %v287_v56 = vshll.u32 %v246_v47, 16  ;;  %v235_v0 = vmax.f32 %v219_v49, 0.0  ;;  %28 = vst [vmem:[#allocation2 + $0x98] sm:$0xf] %v3008_v4  ;;  %v138_v1 = vsel %vm3060_vm4, 0, %v137_v50  ;;  %vm3220_vm9 = vmor %vm574_vm6, %vm575_vm7 }
  0x11   :  { %v294_v6 = vrot.slane %v292_v57, 7  ;;  %127 = vst [vmem:[#allocation2 + $0x54] sm:$0x1] %v126_v63  ;;  %v538_v8 = vld [vmem:[#allocation2 + $0x50] sm:$0xf]  ;;  %v238_v45 = vmax.f32 %v222_v9, 0.0 }
  0x12   :  { %2979 = vmatpush.bf16.msra.mxu1 %v2820_v46  ;;  %2980 = vmatpush.bf16.msra.mxu2 %v2820_v46  ;;  %v286_v5 = vrot.slane %v284_v55, 7  ;;  %v449_v12 = vld [vmem:[#allocation2 + $0x2c] sm:$0x1]  ;;  %v251_v13 = vpack.c.bf16 %v235_v0, %v235_v0  ;;  %v690_v16 = vshrl.u32 %v538_v8, 16  ;;  %v693_v17 = vshll.u32 %v538_v8, 16  ;;  %v2840_v9 = vld [vmem:[%s4165_s3 + $0xf8] sm:$0xff] }
  0x13   :  { %2981 = vmatpush.bf16.msra.mxu3 %v2820_v46  ;;  %902 = vmatpush.bf16.msra.mxu0 %v2820_v46  ;;  %29 = vst [vmem:[#allocation2 + $0x9c] sm:$0x1] %v3008_v4  ;;  %v297_v24 = vor.u32 %v295_v58, %v294_v6  ;;  %v298_v25 = vrot.slane %v294_v6, 4  ;;  %v140_v26 = vld [vmem:[#allocation2 + $0x7c] sm:$0x1]  ;;  %v239_v46 = vmax.f32 %v223_v10, 0.0 }
  0x14   :  { %v289_v22 = vor.u32 %v287_v56, %v286_v5  ;;  %v290_v23 = vrot.slane %v286_v5, 4  ;;  %77 = vst [vmem:[#allocation2 + $0x70] sm:$0x1] %v76_v52  ;;  %v324_v29 = vshrl.u32 %v251_v13, 16  ;;  %v327_v30 = vshll.u32 %v251_v13, 16  ;;  %v3237_v13 = vld [vmem:[%s4166_s0 + $0x18] sm:$0xff]  }
  0x15   :  { %v692_v31 = vrot.slane %v690_v16, 4  ;;  %v695_v32 = vrot.slane %v693_v17, 5  ;;  %80 = vst [vmem:[#allocation2 + $0x78] sm:$0x1] %v79_v53  ;;  %v447_v35 = vsel %vm3165_vm8, %v297_v24, %v446_v62  ;;  %v470_v36 = vld [vmem:[#allocation2 + $0x58] sm:$0xf]  ;;  %v450_v40 = vsel %vm3051_vm3, %v298_v25, %v449_v12 }
  0x16   :  { %2982 = vmatpush.bf16.msra.mxu1 %v2819_v59  ;;  %2983 = vmatpush.bf16.msra.mxu2 %v2819_v59  ;;  %v441_v4 = vsel %vm3165_vm8, %v289_v22, %v440_v60  ;;  %v444_v33 = vsel %vm3051_vm3, %v290_v23, %v443_v61  ;;  %139 = vst [vmem:[#allocation2 + $0x74] sm:$0x1] %v138_v1  ;;  %v3182_v38 = vld [vmem:[#allocation2] sm:$0x1]  ;;  %v3184_v39 = vld [vmem:[#allocation2 + $0x8] sm:$0x1]  ;;  %v2903_v23 = vunpack.c.l.bf16 %v3110_v28 }
  0x17   :  { %2984 = vmatpush.bf16.msra.mxu3 %v2819_v59  ;;  %903 = vmatpush.bf16.msra.mxu0 %v2819_v59  ;;  %442 = vst [vmem:[#allocation2 + $0x20] sm:$0xf] %v441_v4  ;;  %v326_v41 = vrot.slane %v324_v29, 7  ;;  %v473_v42 = vld [vmem:[#allocation2 + $0x5c] sm:$0x1]  ;;  %v696_v43 = vor.u32 %v695_v32, %v692_v31  ;;  %v141_v44 = vsel %vm3060_vm4, 0, %v140_v26  ;;  %v196_v52 = vmul.f32 %v3088_v18, %v2892_v54 }
  0x18   :  { %445 = vst [vmem:[#allocation2 + $0x24] sm:$0x1] %v444_v33  ;;  %v34_v47 = vsel %vm3051_vm3, 0, %v3182_v38  ;;  %v539_v50 = vld [vmem:[#allocation2 + $0x54] sm:$0x1]  ;;  %v37_v51 = vsel %vm3051_vm3, 0, %v3184_v39  ;;  %v254_v56 = vpack.c.bf16 %v238_v45, %v238_v45  ;;  %v255_v57 = vpack.c.bf16 %v239_v46, %v239_v46 }
  0x19   :  { %448 = vst [vmem:[#allocation2 + $0x28] sm:$0xf] %v447_v35  ;;  %v329_v48 = vor.u32 %v327_v30, %v326_v41  ;;  %v330_v49 = vrot.slane %v326_v41, 4  ;;  %v2817_v53 = vld [vmem:[%s4165_s3 + $0x40] sm:$0xff]  ;;  %v699_v55 = vshll.u32 %v539_v50, 16  ;;  %v2900_v59 = vunpack.c.h.bf16 %v3105_v27  ;;  %v2832_v61 = vld [vmem:[%s4165_s3 + $0xb8] sm:$0xff] }
  0x1a   :  { %2985 = vmatpush.bf16.msra.mxu1 %v2818_v21  ;;  %2986 = vmatpush.bf16.msra.mxu2 %v2818_v21  ;;  %451 = vst [vmem:[#allocation2 + $0x2c] sm:$0x1] %v450_v40  ;;  %v3202_v58 = vld [vmem:[#allocation2 + $0x4] sm:$0x1]  ;;  %v3209_v60 = vrot.slane %v696_v43, 4  ;;  %v2816_v62 = vld [vmem:[%s4165_s3 + $0x38] sm:$0xff]  ;;  %v3240_v16 = vadd.f32 %v3093_v19, %v196_v52  ;;  %v2895_v32 = vunpack.c.l.bf16 %v3237_v13 }
  0x1b   :  { %2987 = vmatpush.bf16.msra.mxu3 %v2818_v21  ;;  %904 = vmatpush.bf16.msra.mxu0 %v2818_v21  ;;  %v471_v15 = vsel %vm3165_vm8, %v329_v48, %v470_v36  ;;  %v474_v54 = vsel %vm3051_vm3, %v330_v49, %v473_v42  ;;  %142 = vst [vmem:[#allocation2 + $0x7c] sm:$0x1] %v141_v44  ;;  %v227_v27 = vmax.f32 %v3171_v20, 0.0  ;;  %v3224_v0 = vrot.slane %v699_v55, 5  ;;  %v488_v8 = vld [vmem:[#allocation2 + $0x70] sm:$0xf] }
  0x1c   :  { %472 = vst [vmem:[#allocation2 + $0x58] sm:$0xf] %v471_v15  ;;  %v348_v1 = vshrl.u32 %v254_v56, 16  ;;  %v351_v2 = vshll.u32 %v254_v56, 16  ;;  %v356_v5 = vshrl.u32 %v255_v57, 16  ;;  %v359_v6 = vshll.u32 %v255_v57, 16 }
  0x1d   :  { %475 = vst [vmem:[#allocation2 + $0x5c] sm:$0x1] %v474_v54  ;;  %v96_v10 = vsel %vm3060_vm4, 0, %v3202_v58  ;;  %v3232_v12 = vpack.c.bf16 %v227_v27, %v227_v27  ;;  %v491_v22 = vld [vmem:[#allocation2 + $0x74] sm:$0x1]  ;;  %v3244_v24 = vmul.f32 %v3088_v18, %v2900_v59  ;;  %v702_v30 = vsel %vm3220_vm9, %v3209_v60, %v3224_v0  ;;  %v2848_v49 = vld [vmem:[%s4165_s3 + $0x138] sm:$0xff] }
  0x1e   :  { %2988 = vmatpush.bf16.msra.mxu1 %v2817_v53  ;;  %2989 = vmatpush.bf16.msra.mxu2 %v2817_v53  ;;  %v526_v17 = vld [vmem:[#allocation2 + $0x20] sm:$0xf]  ;;  %v350_v20 = vrot.slane %v348_v1, 7  ;;  %v358_v21 = vrot.slane %v356_v5, 7  ;;  %v494_v31 = vld [vmem:[#allocation2 + $0x78] sm:$0xf]  ;;  %v826_v58 = vunpack.c.l.b16 %v702_v30 }
  0x1f   :  { %2990 = vmatpush.bf16.msra.mxu3 %v2817_v53  ;;  %905 = vmatpush.bf16.msra.mxu0 %v2817_v53  ;;  %v527_v25 = vld [vmem:[#allocation2 + $0x24] sm:$0x1]  ;;  %v634_v26 = vshrl.u32 %v526_v17, 16  ;;  %v637_v29 = vshll.u32 %v526_v17, 16  ;;  %35 = vst [vmem:[#allocation2] sm:$0x1] %v34_v47  ;;  %v3310_v60 = vadd.f32 %v3093_v19, %v3244_v24 }
  0x20   :  { %v528_v4 = vld [vmem:[#allocation2 + $0x28] sm:$0xf]  ;;  %v643_v33 = vshll.u32 %v527_v25, 16  ;;  %v353_v35 = vor.u32 %v351_v2, %v350_v20  ;;  %v354_v36 = vrot.slane %v350_v20, 4  ;;  %v361_v38 = vor.u32 %v359_v6, %v358_v21  ;;  %38 = vst [vmem:[#allocation2 + $0x8] sm:$0x1] %v37_v51 }
  0x21   :  { %v529_v39 = vld [vmem:[#allocation2 + $0x2c] sm:$0x1]  ;;  %v636_v40 = vrot.slane %v634_v26, 4  ;;  %v639_v41 = vrot.slane %v637_v29, 5  ;;  %v648_v42 = vshrl.u32 %v528_v4, 16  ;;  %v651_v43 = vshll.u32 %v528_v4, 16 }
  0x22   :  { %1272 = vmatpush.bf16.msrb.mxu2 %v2832_v61  ;;  %1043 = vmatpush.bf16.msrb.mxu1 %v2816_v62  ;;  %v645_v44 = vrot.slane %v643_v33, 5  ;;  %v657_v45 = vshll.u32 %v529_v39, 16  ;;  %v362_v46 = vrot.slane %v358_v21, 4  ;;  %v489_v47 = vsel %vm3165_vm8, %v353_v35, %v488_v8  ;;  %v497_v48 = vld [vmem:[#allocation2 + $0x7c] sm:$0x1]  ;;  %v2831_v61 = vld [vmem:[%s4165_s3 + $0xb0] sm:$0xff] }
  0x23   :  { %1422 = vmatpush.bf16.msrb.mxu3 %v2840_v9  ;;  %v640_v50 = vor.u32 %v639_v41, %v636_v40  ;;  %v650_v52 = vrot.slane %v648_v42, 4  ;;  %v653_v51 = vrot.slane %v651_v43, 5  ;;  %v540_v53 = vld [vmem:[#allocation2 + $0x58] sm:$0xf]  ;;  %490 = vst [vmem:[#allocation2 + $0x70] sm:$0xf] %v489_v47  ;;  %v492_v55 = vsel %vm3051_vm3, %v354_v36, %v491_v22  ;;  %1598 = vmatpush.bf16.msrb.mxu0 %v2848_v49 }
  0x24   :  { %v659_v56 = vrot.slane %v657_v45, 5  ;;  %v541_v57 = vld [vmem:[#allocation2 + $0x5c] sm:$0x1]  ;;  %v704_v59 = vshrl.u32 %v540_v53, 16  ;;  %v707_v15 = vshll.u32 %v540_v53, 16  ;;  %v495_v54 = vsel %vm3165_vm8, %v361_v38, %v494_v31  ;;  %v2815_v26 = vld [vmem:[%s4165_s3 + $0x30] sm:$0xff] }
  0x25   :  { %v641_v62 = vrot.slane %v640_v50, 4  ;;  %v654_v27 = vor.u32 %v653_v51, %v650_v52  ;;  %v713_v1 = vshll.u32 %v541_v57, 16  ;;  %493 = vst [vmem:[#allocation2 + $0x74] sm:$0x1] %v492_v55  ;;  %v498_v2 = vsel %vm3051_vm3, %v362_v46, %v497_v48  ;;  %v98_v5 = vld [vmem:[#allocation2 + $0xc] sm:$0x1] }
  0x26   :  { %v706_v6 = vrot.slane %v704_v59, 4  ;;  %v709_v8 = vrot.slane %v707_v15, 5  ;;  %496 = vst [vmem:[#allocation2 + $0x78] sm:$0xf] %v495_v54  ;;  %v99_v9 = vsel %vm3060_vm4, 0, %v98_v5  ;;  %v260_v17 = vshrl.u32 %v3232_v12, 16  ;;  %1273 = vmatpush.bf16.msrb.mxu2 %v2831_v61  ;;  %1044 = vmatpush.bf16.msrb.mxu1 %v2815_v26 }
  0x27   :  { %v646_v20 = vsel %vm3220_vm9, %v641_v62, %v645_v44  ;;  %v655_v21 = vrot.slane %v654_v27, 4  ;;  %v715_v22 = vrot.slane %v713_v1, 5  ;;  %499 = vst [vmem:[#allocation2 + $0x7c] sm:$0x1] %v498_v2  ;;  %v263_v25 = vshll.u32 %v3232_v12, 16  ;;  %v2839_v35 = vld [vmem:[%s4165_s3 + $0xf0] sm:$0xff] }
  0x28   :  { %v3274_v29 = vunpack.c.l.b16 %v646_v20  ;;  %v710_v31 = vor.u32 %v709_v8, %v706_v6  ;;  %97 = vst [vmem:[#allocation2 + $0x4] sm:$0x1] %v96_v10  ;;  %v3280_v4 = vrot.slane %v260_v17, 7  ;;  %v422_v33 = vld [vmem:[#allocation2 + $0x8] sm:$0xf]  ;;  %v3288_v12 = vmul.f32 %v3088_v18, %v2903_v23  ;;  %v2847_v28 = vld [vmem:[%s4165_s3 + $0x130] sm:$0xff]  ;;  %1423 = vmatpush.bf16.msrb.mxu3 %v2839_v35 }
  0x29   :  { %v660_v36 = vsel %vm3220_vm9, %v655_v21, %v659_v56  ;;  %100 = vst [vmem:[#allocation2 + $0xc] sm:$0x1] %v99_v9  ;;  %v3297_v10 = vld [vmem:[#allocation2] sm:$0xf]  ;;  %v2830_v23 = vld [vmem:[%s4165_s3 + $0xa8] sm:$0xff]  ;;  %v197_v38 = vmul.f32 %v3088_v18, %v2895_v32  ;;  %v2908_v32 = vunpack.c.h.bf16 %v3123_v34  ;;  %1599 = vmatpush.bf16.msrb.mxu0 %v2847_v28  ;;  %v3362_v28 = vld [vmem:[%s4166_s0 + $0x38] sm:$0xff]  }
  0x2a   :  { %v3312_v0 = vunpack.c.l.b16 %v660_v36  ;;  %v711_v30 = vrot.slane %v710_v31, 4  ;;  %v546_v39 = vld [vmem:[#allocation2 + $0x70] sm:$0xf]  ;;  %v265_v40 = vor.u32 %v263_v25, %v3280_v4  ;;  %v2814_v41 = vld [vmem:[%s4165_s3 + $0x28] sm:$0xff]  ;;  %v266_v44 = vrot.slane %v3280_v4, 4  ;;  %1274 = vmatpush.bf16.msrb.mxu2 %v2830_v23  ;;  %v2829_v47 = vld [vmem:[%s4165_s3 + $0xa0] sm:$0xff] }
  0x2b   :  { %v2838_v42 = vld [vmem:[%s4165_s3 + $0xe8] sm:$0xff]  ;;  %v746_v43 = vshrl.u32 %v546_v39, 16  ;;  %v749_v24 = vshll.u32 %v546_v39, 16  ;;  %v578_v45 = vshrl.u32 %v3297_v10, 16  ;;  %v581_v52 = vshll.u32 %v3297_v10, 16  ;;  %v2813_v51 = vld [vmem:[%s4165_s3 + $0x20] sm:$0xff]  ;;  %1045 = vmatpush.bf16.msrb.mxu1 %v2814_v41 }
  0x2c   :  { %v2846_v46 = vld [vmem:[%s4165_s3 + $0x128] sm:$0xff]  ;;  %v3332_v48 = vpack.c.b16 %v3312_v0, %v3274_v29  ;;  %v716_v34 = vsel %vm3220_vm9, %v711_v30, %v715_v22  ;;  %v547_v49 = vld [vmem:[#allocation2 + $0x74] sm:$0x1]  ;;  %v423_v50 = vsel %vm3165_vm8, %v265_v40, %v422_v33  ;;  %v2837_v53 = vld [vmem:[%s4165_s3 + $0xe0] sm:$0xff]  ;;  %1424 = vmatpush.bf16.msrb.mxu3 %v2838_v42  ;;  %v217_v1 = vadd.f32 %v3093_v19, %v197_v38 }
  0x2d   :  { %v3345_v55 = vunpack.c.l.b16 %v716_v34  ;;  %v548_v56 = vld [vmem:[#allocation2 + $0x78] sm:$0xf]  ;;  %v748_v57 = vrot.slane %v746_v43, 4  ;;  %v751_v59 = vrot.slane %v749_v24, 5  ;;  %v755_v15 = vshll.u32 %v547_v49, 16  ;;  %v2845_v54 = vld [vmem:[%s4165_s3 + $0x120] sm:$0xff]  ;;  %1600 = vmatpush.bf16.msrb.mxu0 %v2846_v46 }
  0x2e   :  { %916 = vmatmul.bf16.vlgmr.msra.gmra.mxu1 %v3332_v48  ;;  %v549_v61 = vld [vmem:[#allocation2 + $0x7c] sm:$0x1]  ;;  %v760_v62 = vshrl.u32 %v548_v56, 16  ;;  %v763_v27 = vshll.u32 %v548_v56, 16  ;;  %424 = vst [vmem:[#allocation2 + $0x8] sm:$0xf] %v423_v50  ;;  %v204_v2 = vmul.f32 %v3088_v18, %v2908_v32  ;;  %1275 = vmatpush.bf16.msrb.mxu2 %v2829_v47  ;;  %v2911_v24 = vunpack.c.l.bf16 %v3362_v28 }
  0x2f   :  { %v838_v5 = vpack.c.b16 %v3345_v55, %v826_v58  ;;  %v752_v6 = vor.u32 %v751_v59, %v748_v57  ;;  %v757_v8 = vrot.slane %v755_v15, 5  ;;  %v769_v9 = vshll.u32 %v549_v61, 16  ;;  %v3354_v17 = vld [vmem:[#allocation2 + $0x4] sm:$0x1]  ;;  %v51_v20 = vld [vmem:[#allocation2 + $0x30] sm:$0x1]  ;;  %1046 = vmatpush.bf16.msrb.mxu1 %v2813_v51 }
  0x30   :  { %v762_v21 = vrot.slane %v760_v62, 4  ;;  %v765_v22 = vrot.slane %v763_v27, 5  ;;  %v425_v25 = vld [vmem:[#allocation2 + $0xc] sm:$0x1]  ;;  %v580_v26 = vrot.slane %v578_v45, 4  ;;  %v583_v31 = vrot.slane %v581_v52, 5  ;;  %1425 = vmatpush.bf16.msrb.mxu3 %v2837_v53 }
  0x31   :  { %926 = vmatmul.bf16.vlgmr.msra.gmra.mxu2 %v838_v5  ;;  %v753_v4 = vrot.slane %v752_v6, 4  ;;  %v771_v33 = vrot.slane %v769_v9, 5  ;;  %v426_v35 = vsel %vm3051_vm3, %v266_v44, %v425_v25  ;;  %v587_v36 = vshll.u32 %v3354_v17, 16  ;;  %v54_v58 = vld [vmem:[#allocation2 + $0x38] sm:$0x1]  ;;  %1601 = vmatpush.bf16.msrb.mxu0 %v2845_v54 }
  0x32   :  { %v766_v23 = vor.u32 %v765_v22, %v762_v21  ;;  %427 = vst [vmem:[#allocation2 + $0xc] sm:$0x1] %v426_v35  ;;  %v584_v38 = vor.u32 %v583_v31, %v580_v26  ;;  %v52_v30 = vsel %vm3051_vm3, 0, %v51_v20  ;;  %v55_v39 = vsel %vm3051_vm3, 0, %v54_v58  ;;  %v113_v40 = vld [vmem:[#allocation2 + $0x34] sm:$0x1] }
  0x33   :  { %v758_v41 = vsel %vm3220_vm9, %v753_v4, %v757_v8  ;;  %v589_v42 = vrot.slane %v587_v36, 5  ;;  %53 = vst [vmem:[#allocation2 + $0x30] sm:$0x1] %v52_v30  ;;  %v114_v32 = vsel %vm3060_vm4, 0, %v113_v40  ;;  %v116_v43 = vld [vmem:[#allocation2 + $0x3c] sm:$0x1]  ;;  %v3377_v47 = vadd.f32 %v3093_v19, %v3288_v12 }
  0x34   :  { %v767_v44 = vrot.slane %v766_v23, 4  ;;  %v585_v45 = vrot.slane %v584_v38, 4  ;;  %56 = vst [vmem:[#allocation2 + $0x38] sm:$0x1] %v55_v39  ;;  %v117_v46 = vsel %vm3060_vm4, 0, %v116_v43  ;;  %v3379_v34 = vunpack.c.l.b16 %v758_v41 }
  0x35   :  { %v3381_v49 = vld [vmem:[#allocation2 + $0x8] sm:$0xf]  ;;  %115 = vst [vmem:[#allocation2 + $0x34] sm:$0x1] %v114_v32  ;;  %v232_v50 = vmax.f32 %v3240_v16, 0.0  ;;  %v233_v52 = vmax.f32 %v217_v1, 0.0  ;;  %v205_v51 = vmul.f32 %v3088_v18, %v2911_v24  ;;  %v3390_v59 = vadd.f32 %v3093_v19, %v204_v2 }
  0x36   :  { %v772_v53 = vsel %vm3220_vm9, %v767_v44, %v771_v33  ;;  %v592_v56 = vshrl.u32 %v3381_v49, 16  ;;  %v595_v57 = vshll.u32 %v3381_v49, 16  ;;  %118 = vst [vmem:[#allocation2 + $0x3c] sm:$0x1] %v117_v46  ;;  %v69_v12 = vld [vmem:[#allocation2 + $0x60] sm:$0x1]  ;;  %v590_v16 = vsel %vm3220_vm9, %v585_v45, %v589_v42 }
  0x37   :  { %v3392_v15 = vunpack.c.l.b16 %v772_v53  ;;  %v248_v54 = vpack.c.bf16 %v232_v50, %v232_v50  ;;  %v249_v61 = vpack.c.bf16 %v233_v52, %v233_v52  ;;  %v72_v62 = vld [vmem:[#allocation2 + $0x68] sm:$0x1]  ;;  %v131_v27 = vld [vmem:[#allocation2 + $0x64] sm:$0x1]  ;;  %v70_v6 = vsel %vm3051_vm3, 0, %v69_v12 }
  0x38   :  { %v594_v1 = vrot.slane %v592_v56, 4  ;;  %v597_v5 = vrot.slane %v595_v57, 5  ;;  %v73_v8 = vsel %vm3051_vm3, 0, %v72_v62  ;;  %v134_v9 = vld [vmem:[#allocation2 + $0x6c] sm:$0x1]  ;;  %v818_v33 = vunpack.c.l.b16 %v590_v16 }
  0x39   :  { %v3402_v2 = vpack.c.b16 %v3392_v15, %v3379_v34  ;;  %v3404_v20 = vld [vmem:[#allocation2 + $0xc] sm:$0x1]  ;;  %v300_v21 = vshrl.u32 %v248_v54, 16  ;;  %v303_v22 = vshll.u32 %v248_v54, 16  ;;  %v308_v25 = vshrl.u32 %v249_v61, 16 }
  0x3a   :  { %v81_v26 = vld [vmem:[#allocation2 + $0x80] sm:$0x1]  ;;  %v598_v31 = vor.u32 %v597_v5, %v594_v1  ;;  %v601_v4 = vshll.u32 %v3404_v20, 16  ;;  %v311_v35 = vshll.u32 %v249_v61, 16  ;;  %v452_v36 = vld [vmem:[#allocation2 + $0x30] sm:$0xf]  ;;  %v225_v30 = vadd.f32 %v3093_v19, %v205_v51 }
  0x3b   :  { %4199 = vst [vmem:[#allocation3_spill] sm:$0xff] %v3402_v2  ;;  %936 = vmatmul.bf16.vlgmr.msra.gmra.mxu3 %v3402_v2  ;;  %v302_v58 = vrot.slane %v300_v21, 7  ;;  %v310_v23 = vrot.slane %v308_v25, 7  ;;  %v458_v38 = vld [vmem:[#allocation2 + $0x38] sm:$0xf]  ;;  %v2884_v39 = vunpack.c.h.bf16 %v3130_v37  ;;  %v132_v32 = vsel %vm3060_vm4, 0, %v131_v27 }
  0x3c   :  { %71 = vst [vmem:[#allocation2 + $0x60] sm:$0x1] %v70_v6  ;;  %v599_v40 = vrot.slane %v598_v31, 4  ;;  %v603_v41 = vrot.slane %v601_v4, 5  ;;  %v455_v42 = vld [vmem:[#allocation2 + $0x34] sm:$0x1]  ;;  %v2887_v1 = vunpack.c.l.bf16 %v3076_v14 }
  0x3d   :  { %74 = vst [vmem:[#allocation2 + $0x68] sm:$0x1] %v73_v8  ;;  %v135_v43 = vsel %vm3060_vm4, 0, %v134_v9  ;;  %v305_v24 = vor.u32 %v303_v22, %v302_v58  ;;  %v306_v44 = vrot.slane %v302_v58, 4  ;;  %v313_v45 = vor.u32 %v311_v35, %v310_v23  ;;  %v461_v50 = vld [vmem:[#allocation2 + $0x3c] sm:$0x1] }
  0x3e   :  { %v314_v46 = vrot.slane %v310_v23, 4  ;;  %133 = vst [vmem:[#allocation2 + $0x64] sm:$0x1] %v132_v32  ;;  %v604_v52 = vsel %vm3220_vm9, %v599_v40, %v603_v41  ;;  %v236_v37 = vmax.f32 %v3310_v60, 0.0  ;;  %v237_v51 = vmax.f32 %v3377_v47, 0.0  ;;  %v2828_v40 = vld [vmem:[%s4165_s3 + $0x98] sm:$0xff] }
  0x3f   :  { %136 = vst [vmem:[#allocation2 + $0x6c] sm:$0x1] %v135_v43  ;;  %v82_v53 = vsel %vm3051_vm3, 0, %v81_v26  ;;  %v3420_v56 = vunpack.c.l.b16 %v604_v52  ;;  %v453_v57 = vsel %vm3165_vm8, %v305_v24, %v452_v36  ;;  %v456_v12 = vsel %vm3051_vm3, %v306_v44, %v455_v42  ;;  %v84_v54 = vld [vmem:[#allocation2 + $0x88] sm:$0x1]  ;;  %v2812_v41 = vld [vmem:[%s4165_s3 + $0x18] sm:$0xff]  ;;  %1276 = vmatpush.bf16.msrb.mxu2 %v2828_v40 }
  0x40   :  { %v459_v16 = vsel %vm3165_vm8, %v313_v45, %v458_v38  ;;  %83 = vst [vmem:[#allocation2 + $0x80] sm:$0x1] %v82_v53  ;;  %v143_v61 = vld [vmem:[#allocation2 + $0x84] sm:$0x1]  ;;  %v462_v60 = vsel %vm3051_vm3, %v314_v46, %v461_v50  ;;  %v252_v47 = vpack.c.bf16 %v236_v37, %v236_v37  ;;  %v253_v62 = vpack.c.bf16 %v237_v51, %v237_v51  ;;  %v146_v27 = vld [vmem:[#allocation2 + $0x8c] sm:$0x1] }
  0x41   :  { %454 = vst [vmem:[#allocation2 + $0x30] sm:$0xf] %v453_v57  ;;  %v834_v5 = vpack.c.b16 %v3420_v56, %v818_v33  ;;  %v85_v6 = vsel %vm3051_vm3, 0, %v84_v54  ;;  %v144_v8 = vsel %vm3060_vm4, 0, %v143_v61  ;;  %v192_v9 = vmul.f32 %v3088_v18, %v2884_v39  ;;  %1047 = vmatpush.bf16.msrb.mxu1 %v2812_v41  ;;  %v2836_v54 = vld [vmem:[%s4165_s3 + $0xd8] sm:$0xff] }
  0x42   :  { %457 = vst [vmem:[#allocation2 + $0x34] sm:$0x1] %v456_v12  ;;  %v332_v21 = vshrl.u32 %v252_v47, 16  ;;  %v335_v22 = vshll.u32 %v252_v47, 16  ;;  %v340_v25 = vshrl.u32 %v253_v62, 16  ;;  %v343_v26 = vshll.u32 %v253_v62, 16  ;;  %1426 = vmatpush.bf16.msrb.mxu3 %v2836_v54 }
  0x43   :  { %460 = vst [vmem:[#allocation2 + $0x38] sm:$0xf] %v459_v16  ;;  %906 = vmatmul.bf16.vlgmr.msra.gmra.mxu0 %v834_v5  ;;  %v476_v31 = vld [vmem:[#allocation2 + $0x60] sm:$0xf]  ;;  %v147_v14 = vsel %vm3060_vm4, 0, %v146_v27  ;;  %v240_v4 = vmax.f32 %v3390_v59, 0.0  ;;  %v193_v42 = vmul.f32 %v3088_v18, %v2887_v1  ;;  %v3448_v59 = vadd.f32 %v3093_v19, %v192_v9 }
  0x44   :  { %463 = vst [vmem:[#allocation2 + $0x3c] sm:$0x1] %v462_v60  ;;  %v241_v33 = vmax.f32 %v225_v30, 0.0  ;;  %v334_v35 = vrot.slane %v332_v21, 7  ;;  %v342_v36 = vrot.slane %v340_v25, 7  ;;  %vm1108_vm10 = vcmask 1042432  }
  0x45   :  { %v482_v58 = vld [vmem:[#allocation2 + $0x68] sm:$0xf]  ;;  %86 = vst [vmem:[#allocation2 + $0x88] sm:$0x1] %v85_v6  ;;  %v479_v23 = vld [vmem:[#allocation2 + $0x64] sm:$0x1]  ;;  %v256_v38 = vpack.c.bf16 %v240_v4, %v240_v4 }
  0x46   :  { %145 = vst [vmem:[#allocation2 + $0x84] sm:$0x1] %v144_v8  ;;  %v257_v39 = vpack.c.bf16 %v241_v33, %v241_v33  ;;  %v337_v30 = vor.u32 %v335_v22, %v334_v35  ;;  %v338_v32 = vrot.slane %v334_v35, 4  ;;  %v345_v43 = vor.u32 %v343_v26, %v342_v36  ;;  %v485_v44 = vld [vmem:[#allocation2 + $0x6c] sm:$0x1] }
  0x47   :  { %v346_v24 = vrot.slane %v342_v36, 4  ;;  %148 = vst [vmem:[#allocation2 + $0x8c] sm:$0x1] %v147_v14  ;;  %v364_v46 = vshrl.u32 %v256_v38, 16  ;;  %v367_v50 = vshll.u32 %v256_v38, 16  ;;  %v228_v38 = vmax.f32 %v3448_v59, 0.0 }
  0x48   :  { %v3450_v45 = vld [vmem:[#allocation2 + $0x30] sm:$0xf]  ;;  %v372_v52 = vshrl.u32 %v257_v39, 16  ;;  %v375_v37 = vshll.u32 %v257_v39, 16  ;;  %v477_v57 = vsel %vm3165_vm8, %v337_v30, %v476_v31  ;;  %v480_v12 = vsel %vm3051_vm3, %v338_v32, %v479_v23  ;;  %v500_v16 = vld [vmem:[#allocation2 + $0x80] sm:$0xf] }
  0x49   :  { %v3452_v51 = vld [vmem:[#allocation2 + $0x34] sm:$0x1]  ;;  %v662_v18 = vshrl.u32 %v3450_v45, 16  ;;  %v665_v53 = vshll.u32 %v3450_v45, 16  ;;  %478 = vst [vmem:[#allocation2 + $0x60] sm:$0xf] %v477_v57  ;;  %v483_v47 = vsel %vm3165_vm8, %v345_v43, %v482_v58  ;;  %v486_v62 = vsel %vm3051_vm3, %v346_v24, %v485_v44 }
  0x4a   :  { %v3463_v61 = vld [vmem:[#allocation2 + $0x38] sm:$0xf]  ;;  %v671_v60 = vshll.u32 %v3452_v51, 16  ;;  %v366_v27 = vrot.slane %v364_v46, 7  ;;  %481 = vst [vmem:[#allocation2 + $0x64] sm:$0x1] %v480_v12  ;;  %v213_v23 = vadd.f32 %v3093_v19, %v193_v42 }
  0x4b   :  { %v3470_v1 = vld [vmem:[#allocation2 + $0x3c] sm:$0x1]  ;;  %v664_v5 = vrot.slane %v662_v18, 4  ;;  %v667_v6 = vrot.slane %v665_v53, 5  ;;  %v676_v8 = vshrl.u32 %v3463_v61, 16  ;;  %v679_v9 = vshll.u32 %v3463_v61, 16 }
  0x4c   :  { %v673_v21 = vrot.slane %v671_v60, 5  ;;  %v685_v22 = vshll.u32 %v3470_v1, 16  ;;  %v369_v25 = vor.u32 %v367_v50, %v366_v27  ;;  %v370_v26 = vrot.slane %v366_v27, 4  ;;  %484 = vst [vmem:[#allocation2 + $0x68] sm:$0xf] %v483_v47 }
  0x4d   :  { %v668_v31 = vor.u32 %v667_v6, %v664_v5  ;;  %v678_v14 = vrot.slane %v676_v8, 4  ;;  %v681_v4 = vrot.slane %v679_v9, 5  ;;  %v374_v33 = vrot.slane %v372_v52, 7  ;;  %487 = vst [vmem:[#allocation2 + $0x6c] sm:$0x1] %v486_v62 }
  0x4e   :  { %v687_v35 = vrot.slane %v685_v22, 5  ;;  %v501_v36 = vsel %vm3165_vm8, %v369_v25, %v500_v16  ;;  %v503_v58 = vld [vmem:[#allocation2 + $0x84] sm:$0x1]  ;;  %v506_v32 = vld [vmem:[#allocation2 + $0x88] sm:$0xf]  ;;  %v229_v60 = vmax.f32 %v213_v23, 0.0  ;;  %v3501_v47 = vpack.c.bf16 %v228_v38, %v228_v38 }
  0x4f   :  { %v669_v39 = vrot.slane %v668_v31, 4  ;;  %v682_v40 = vor.u32 %v681_v4, %v678_v14  ;;  %v377_v41 = vor.u32 %v375_v37, %v374_v33  ;;  %v378_v30 = vrot.slane %v374_v33, 4  ;;  %502 = vst [vmem:[#allocation2 + $0x80] sm:$0xf] %v501_v36  ;;  %v509_v24 = vld [vmem:[#allocation2 + $0x8c] sm:$0x1] }
  0x50   :  { %v504_v43 = vsel %vm3051_vm3, %v370_v26, %v503_v58  ;;  %v39_v44 = vld [vmem:[#allocation2 + $0x10] sm:$0x1]  ;;  %v42_v46 = vld [vmem:[#allocation2 + $0x18] sm:$0x1]  ;;  %v3483_v18 = vld [vmem:[#allocation2 + $0x60] sm:$0xf]  ;;  %v3512_v25 = vpack.c.bf16 %v229_v60, %v229_v60 }
  0x51   :  { %v674_v50 = vsel %vm3220_vm9, %v669_v39, %v673_v21  ;;  %v683_v52 = vrot.slane %v682_v40, 4  ;;  %505 = vst [vmem:[#allocation2 + $0x84] sm:$0x1] %v504_v43  ;;  %v507_v19 = vsel %vm3165_vm8, %v377_v41, %v506_v32  ;;  %v510_v42 = vsel %vm3051_vm3, %v378_v30, %v509_v24  ;;  %v3497_v16 = vld [vmem:[#allocation2 + $0x64] sm:$0x1] }
  0x52   :  { %v3489_v59 = vunpack.c.l.b16 %v674_v50  ;;  %v718_v37 = vshrl.u32 %v3483_v18, 16  ;;  %v721_v53 = vshll.u32 %v3483_v18, 16  ;;  %508 = vst [vmem:[#allocation2 + $0x88] sm:$0xf] %v507_v19  ;;  %v40_v57 = vsel %vm3051_vm3, 0, %v39_v44 }
  0x53   :  { %v688_v12 = vsel %vm3220_vm9, %v683_v52, %v687_v35  ;;  %511 = vst [vmem:[#allocation2 + $0x8c] sm:$0x1] %v510_v42  ;;  %v43_v54 = vsel %vm3051_vm3, 0, %v42_v46  ;;  %v3505_v27 = vld [vmem:[#allocation2 + $0x68] sm:$0xf]  ;;  %v727_v8 = vshll.u32 %v3497_v16, 16 }
  0x54   :  { %v3503_v62 = vunpack.c.l.b16 %v688_v12  ;;  %v720_v5 = vrot.slane %v718_v37, 4  ;;  %v723_v6 = vrot.slane %v721_v53, 5  ;;  %v3508_v9 = vld [vmem:[#allocation2 + $0x6c] sm:$0x1]  ;;  %v732_v21 = vshrl.u32 %v3505_v27, 16  ;;  %v2844_v52 = vld [vmem:[%s4165_s3 + $0x118] sm:$0xff] }
  0x55   :  { %v735_v22 = vshll.u32 %v3505_v27, 16  ;;  %41 = vst [vmem:[#allocation2 + $0x10] sm:$0x1] %v40_v57  ;;  %v729_v14 = vrot.slane %v727_v8, 5  ;;  %v741_v4 = vshll.u32 %v3508_v9, 16  ;;  %v268_v32 = vshrl.u32 %v3501_v47, 16  ;;  %1602 = vmatpush.bf16.msrb.mxu0 %v2844_v52 }
  0x56   :  { %v3516_v26 = vpack.c.b16 %v3503_v62, %v3489_v59  ;;  %v724_v31 = vor.u32 %v723_v6, %v720_v5  ;;  %v3519_v33 = vld [vmem:[#allocation2 + $0x80] sm:$0xf]  ;;  %44 = vst [vmem:[#allocation2 + $0x18] sm:$0x1] %v43_v54  ;;  %v734_v35 = vrot.slane %v732_v21, 4  ;;  %v963_v57 = vunpack.c.l.b16 %v3297_v10  ;;  %v2827_v8 = vld [vmem:[%s4165_s3 + $0x90] sm:$0xff] }
  0x57   :  { %v737_v36 = vrot.slane %v735_v22, 5  ;;  %v774_v58 = vshrl.u32 %v3519_v33, 16  ;;  %v777_v23 = vshll.u32 %v3519_v33, 16  ;;  %v101_v38 = vld [vmem:[#allocation2 + $0x14] sm:$0x1]  ;;  %v743_v40 = vrot.slane %v741_v4, 5  ;;  %1277 = vmatpush.bf16.msrb.mxu2 %v2827_v8 }
  0x58   :  { %921 = vmatmul.bf16.gmra.mxu1 %v3516_v26  ;;  %v725_v39 = vrot.slane %v724_v31, 4  ;;  %v3524_v41 = vld [vmem:[#allocation2 + $0x84] sm:$0x1]  ;;  %v102_v30 = vsel %vm3060_vm4, 0, %v101_v38  ;;  %v104_v6 = vld [vmem:[#allocation2 + $0x1c] sm:$0x1] }
  0x59   :  { %v738_v43 = vor.u32 %v737_v36, %v734_v35  ;;  %v3529_v24 = vld [vmem:[#allocation2 + $0x88] sm:$0xf]  ;;  %v776_v44 = vrot.slane %v774_v58, 4  ;;  %v779_v46 = vrot.slane %v777_v23, 5  ;;  %v783_v50 = vshll.u32 %v3524_v41, 16  ;;  %v2811_v21 = vld [vmem:[%s4165_s3 + $0x10] sm:$0xff] }
  0x5a   :  { %v730_v19 = vsel %vm3220_vm9, %v725_v39, %v729_v14  ;;  %v3537_v42 = vld [vmem:[#allocation2 + $0x8c] sm:$0x1]  ;;  %v788_v37 = vshrl.u32 %v3529_v24, 16  ;;  %v791_v53 = vshll.u32 %v3529_v24, 16  ;;  %103 = vst [vmem:[#allocation2 + $0x14] sm:$0x1] %v102_v30  ;;  %1048 = vmatpush.bf16.msrb.mxu1 %v2811_v21 }
  0x5b   :  { %v739_v12 = vrot.slane %v738_v43, 4  ;;  %v3542_v54 = vunpack.c.l.b16 %v730_v19  ;;  %v780_v60 = vor.u32 %v779_v46, %v776_v44  ;;  %v785_v5 = vrot.slane %v783_v50, 5  ;;  %v2835_v38 = vld [vmem:[%s4165_s3 + $0xd0] sm:$0xff] }
  0x5c   :  { %v790_v22 = vrot.slane %v788_v37, 4  ;;  %v793_v31 = vrot.slane %v791_v53, 5  ;;  %v797_v14 = vshll.u32 %v3537_v42, 16  ;;  %v105_v4 = vsel %vm3060_vm4, 0, %v104_v6  ;;  %v428_v46 = vld [vmem:[#allocation2 + $0x10] sm:$0xf]  ;;  %1427 = vmatpush.bf16.msrb.mxu3 %v2835_v38 }
  0x5d   :  { %v744_v35 = vsel %vm3220_vm9, %v739_v12, %v743_v40  ;;  %v781_v36 = vrot.slane %v780_v60, 4  ;;  %106 = vst [vmem:[#allocation2 + $0x1c] sm:$0x1] %v105_v4  ;;  %v270_v58 = vrot.slane %v268_v32, 7  ;;  %v271_v23 = vshll.u32 %v3501_v47, 16  ;;  %v2843_v40 = vld [vmem:[%s4165_s3 + $0x110] sm:$0xff] }
  0x5e   :  { %v3559_v39 = vunpack.c.l.b16 %v744_v35  ;;  %v794_v30 = vor.u32 %v793_v31, %v790_v22  ;;  %v799_v43 = vrot.slane %v797_v14, 5  ;;  %v276_v44 = vshrl.u32 %v3512_v25, 16  ;;  %v2826_v47 = vld [vmem:[%s4165_s3 + $0x88] sm:$0xff]  ;;  %v434_v8 = vld [vmem:[#allocation2 + $0x18] sm:$0xf]  ;;  %1603 = vmatpush.bf16.msrb.mxu0 %v2843_v40  ;;  %v2825_v31 = vld [vmem:[%s4165_s3 + $0x80] sm:$0xff] }
  0x5f   :  { %v786_v32 = vsel %vm3220_vm9, %v781_v36, %v785_v5  ;;  %v273_v50 = vor.u32 %v271_v23, %v270_v58  ;;  %v274_v52 = vrot.slane %v270_v58, 4  ;;  %v279_v19 = vshll.u32 %v3512_v25, 16  ;;  %v2810_v37 = vld [vmem:[%s4165_s3 + $0x8] sm:$0xff]  ;;  %1278 = vmatpush.bf16.msrb.mxu2 %v2826_v47  ;;  %v2809_v14 = vld [vmem:[%s4165_s3] sm:$0xff]  ;;  %v2864_v38 = vld [vmem:[%s4165_s3 + $0x1b8] sm:$0xff] }
  0x60   :  { %v2834_v53 = vld [vmem:[%s4165_s3 + $0xc8] sm:$0xff]  ;;  %v3579_v12 = vpack.c.b16 %v3559_v39, %v3542_v54  ;;  %v795_v60 = vrot.slane %v794_v30, 4  ;;  %v3581_v6 = vunpack.c.l.b16 %v786_v32  ;;  %v278_v5 = vrot.slane %v276_v44, 7  ;;  %1049 = vmatpush.bf16.msrb.mxu1 %v2810_v37  ;;  %v2833_v32 = vld [vmem:[%s4165_s3 + $0xc0] sm:$0xff] }
  0x61   :  { %v2842_v25 = vld [vmem:[%s4165_s3 + $0x108] sm:$0xff]  ;;  %v429_v21 = vsel %vm3165_vm8, %v273_v50, %v428_v46  ;;  %v431_v22 = vld [vmem:[#allocation2 + $0x14] sm:$0x1]  ;;  %v4172_v4 = vunpack.c.l.b16 %v3381_v49  ;;  %vm1109_vm11 = vcmask 1046532   ;;  %1428 = vmatpush.bf16.msrb.mxu3 %v2834_v53  ;;  %v1113_v46 = vrot.slane %v3354_v17, 5  ;;  %v2841_v50 = vld [vmem:[%s4165_s3 + $0x100] sm:$0xff] }
  0x62   :  { %4200 = vst [vmem:[#allocation4_spill] sm:$0xff] %v3579_v12  ;;  %931 = vmatmul.bf16.gmra.mxu2 %v3579_v12  ;;  %v800_v35 = vsel %vm3220_vm9, %v795_v60, %v799_v43  ;;  %v281_v36 = vor.u32 %v279_v19, %v278_v5  ;;  %v282_v58 = vrot.slane %v278_v5, 4  ;;  %v432_v23 = vsel %vm3051_vm3, %v274_v52, %v431_v22  ;;  %vm3605_vm12 = vmor %vm1108_vm10, %vm1109_vm11 }
  0x63   :  { %430 = vst [vmem:[#allocation2 + $0x10] sm:$0xf] %v429_v21  ;;  %v3603_v30 = vunpack.c.l.b16 %v800_v35  ;;  %v2453_v43 = vrot.slane %v3297_v10, 9  ;;  %1604 = vmatpush.bf16.msrb.mxu0 %v2842_v25  ;;  %v2454_v52 = vrot.slane %v3381_v49, 9  ;;  %v1117_v19 = vrot.slane %v3404_v20, 5  ;;  %1279 = vmatpush.bf16.msrb.mxu2 %v2825_v31  ;;  %v2856_v31 = vld [vmem:[%s4165_s3 + $0x178] sm:$0xff] }
  0x64   :  { %433 = vst [vmem:[#allocation2 + $0x14] sm:$0x1] %v432_v23  ;;  %v435_v40 = vsel %vm3165_vm8, %v281_v36, %v434_v8  ;;  %v437_v47 = vld [vmem:[#allocation2 + $0x1c] sm:$0x1]  ;;  %1050 = vmatpush.bf16.msrb.mxu1 %v2809_v14  ;;  %v979_v53 = vpack.c.b16 %v4172_v4, %v963_v57  ;;  %v2863_v23 = vld [vmem:[%s4165_s3 + $0x1b0] sm:$0xff] }
  0x65   :  { %v3623_v17 = vpack.c.b16 %v3603_v30, %v3581_v6  ;;  %436 = vst [vmem:[#allocation2 + $0x18] sm:$0xf] %v435_v40  ;;  %v438_v37 = vsel %vm3051_vm3, %v282_v58, %v437_v47  ;;  %v1114_v60 = vsel %vm3605_vm12, %v2453_v43, %v1113_v46  ;;  %v1118_v20 = vsel %vm3605_vm12, %v2454_v52, %v1117_v19  ;;  %v2872_v57 = vld [vmem:[%s4165_s3 + $0x1f8] sm:$0xff] }
  0x66   :  { %439 = vst [vmem:[#allocation2 + $0x1c] sm:$0x1] %v438_v37  ;;  %1429 = vmatpush.bf16.msrb.mxu3 %v2833_v32  ;;  %v1192_v8 = vunpack.c.l.b16 %v1114_v60  ;;  %v1193_v25 = vunpack.c.l.b16 %v1118_v20  ;;  %v2880_v35 = vld [vmem:[%s4165_s3 + $0x238] sm:$0xff] }
  0x67   :  { %4203 = vst [vmem:[#allocation5_spill] sm:$0xff] %v3623_v17  ;;  %1894 = vmatpush.bf16.msra.mxu2 %v2864_v38  ;;  %941 = vmatmul.bf16.gmra.mxu3 %v3623_v17 }
  0x68   :  { %1605 = vmatpush.bf16.msrb.mxu0 %v2841_v50  ;;  %1051 = vmatmul.bf16.vlgmr.msrb.gmra.mxu1 %v979_v53  ;;  %v1208_v50 = vpack.c.b16 %v1193_v25, %v1192_v8 }
  0x69   :  { %1756 = vmatpush.bf16.msra.mxu1 %v2856_v31 }
  0x6a   :  { %v522_v5 = vld [vmem:[#allocation2 + $0x10] sm:$0xf]  ;;  %2058 = vmatpush.bf16.msra.mxu3 %v2872_v57 }
  0x6b   :  { %v523_v10 = vld [vmem:[#allocation2 + $0x14] sm:$0x1]  ;;  %v606_v21 = vshrl.u32 %v522_v5, 16  ;;  %v609_v22 = vshll.u32 %v522_v5, 16  ;;  %v2455_v36 = vrot.slane %v522_v5, 9  ;;  %1895 = vmatpush.bf16.msra.mxu2 %v2863_v23  ;;  %v4204_v23 = vunpack.c.l.b16 %v3381_v49 }
  0x6c   :  { %v615_v14 = vshll.u32 %v523_v10, 16  ;;  %v1121_v58 = vrot.slane %v523_v10, 5  ;;  %v3648_v38 = vld [vmem:[#allocation2 + $0x18] sm:$0xf]  ;;  %2204 = vmatpush.bf16.msra.mxu0 %v2880_v35  ;;  %v965_v10 = vunpack.c.l.b16 %v522_v5 }
  0x6d   :  { %v608_v43 = vrot.slane %v606_v21, 4  ;;  %v611_v46 = vrot.slane %v609_v22, 5  ;;  %v525_v40 = vld [vmem:[#allocation2 + $0x1c] sm:$0x1]  ;;  %v620_v47 = vshrl.u32 %v3648_v38, 16  ;;  %v623_v32 = vshll.u32 %v3648_v38, 16 }
  0x6e   :  { %v617_v19 = vrot.slane %v615_v14, 5  ;;  %v629_v37 = vshll.u32 %v525_v40, 16  ;;  %v1122_v53 = vsel %vm3605_vm12, %v2455_v36, %v1121_v58  ;;  %v966_v4 = vunpack.c.l.b16 %v3648_v38 }
  0x6f   :  { %v612_v52 = vor.u32 %v611_v46, %v608_v43  ;;  %v622_v60 = vrot.slane %v620_v47, 4  ;;  %v625_v20 = vrot.slane %v623_v32, 5  ;;  %v1194_v22 = vunpack.c.l.b16 %v1122_v53  ;;  %v2855_v53 = vld [vmem:[%s4165_s3 + $0x170] sm:$0xff] }
  0x70   :  { %v631_v31 = vrot.slane %v629_v37, 5  ;;  %v1358_v43 = vpack.c.b16 %v965_v10, %v4204_v23  ;;  %v2456_v36 = vrot.slane %v3648_v38, 9  ;;  %v1125_v58 = vrot.slane %v525_v40, 5  ;;  %v3685_v40 = vld [vmem:[%s4168_s2] ss:$0 sm:$0xff]  ;;  %v2871_v37 = vld [vmem:[%s4165_s3 + $0x1f0] sm:$0xff]  ;;  %1757 = vmatpush.bf16.msra.mxu1 %v2855_v53 }
  0x71   :  { %v613_v21 = vrot.slane %v612_v52, 4  ;;  %v626_v57 = vor.u32 %v625_v20, %v622_v60  ;;  %v3657_v35 = vpack.c.b16 %v1194_v22, %v1193_v25  ;;  %v2896_v46 = vunpack.c.h.bf16 %v3237_v13  ;;  %v3672_v25 = vld [vmem:[%s4167_s1] ss:$0 sm:$0xff]  ;;  %v2879_v60 = vld [vmem:[%s4165_s3 + $0x230] sm:$0xff]  ;;  %v2862_v20 = vld [vmem:[%s4165_s3 + $0x1a8] sm:$0xff]  ;;  %2059 = vmatpush.bf16.msra.mxu3 %v2871_v37 }
  0x72   :  { %1280 = vmatmul.bf16.vlgmr.msrb.gmra.mxu2 %v1208_v50  ;;  %v3665_v32 = vpack.c.b16 %v966_v4, %v965_v10  ;;  %v3677_v38 = vsel %vm3605_vm12, %v2456_v36, %v1125_v58  ;;  %v57_v10 = vld [vmem:[#allocation2 + $0x40] sm:$0x1]  ;;  %2205 = vmatpush.bf16.msra.mxu0 %v2879_v60  ;;  %v2998_v60 = vld [vmem:[#allocation2 + $0x24] sm:$0x1] }
  0x73   :  { %v618_v8 = vsel %vm3220_vm9, %v613_v21, %v617_v19  ;;  %v627_v14 = vrot.slane %v626_v57, 4  ;;  %v198_v49 = vmul.f32 %v3672_v25, %v2896_v46  ;;  %v4173_v19 = vunpack.c.l.b16 %v3677_v38  ;;  %1896 = vmatpush.bf16.msra.mxu2 %v2862_v20 }
  0x74   :  { %v820_v5 = vunpack.c.l.b16 %v618_v8  ;;  %v58_v57 = vsel %vm3051_vm3, 0, %v57_v10  ;;  %v2996_v8 = vld [vmem:[#allocation2 + $0x20] sm:$0xf]  ;;  %v2999_v10 = vld [vmem:[#allocation2 + $0x2c] sm:$0x1] }
  0x75   :  { %v632_v47 = vsel %vm3220_vm9, %v627_v14, %v631_v31  ;;  %v218_v50 = vadd.f32 %v3685_v40, %v198_v49  ;;  %59 = vst [vmem:[#allocation2 + $0x40] sm:$0x1] %v58_v57  ;;  %v3707_v31 = vpack.c.b16 %v4173_v19, %v1194_v22  ;;  %v967_v14 = vunpack.c.l.b16 %v2996_v8 }
  0x76   :  { %v3667_v52 = vunpack.c.l.b16 %v632_v47  ;;  %v2997_v47 = vld [vmem:[#allocation2 + $0x28] sm:$0xf]  ;;  %v2457_v53 = vrot.slane %v2996_v8, 9  ;;  %v1129_v22 = vrot.slane %v2998_v60, 5  ;;  %v1133_v57 = vrot.slane %v2999_v10, 5 }
  0x77   :  { %1430 = vmatmul.bf16.vlgmr.msrb.gmra.mxu3 %v1358_v43  ;;  %v234_v21 = vmax.f32 %v218_v50, 0.0  ;;  %v119_v43 = vld [vmem:[#allocation2 + $0x44] sm:$0x1]  ;;  %v968_v49 = vunpack.c.l.b16 %v2997_v47  ;;  %v1359_v50 = vpack.c.b16 %v967_v14, %v966_v4  ;;  %v2458_v20 = vrot.slane %v2997_v47, 9  ;;  %v2878_v47 = vld [vmem:[%s4165_s3 + $0x228] sm:$0xff] }
  0x78   :  { %v3680_v13 = vpack.c.b16 %v3667_v52, %v820_v5  ;;  %1056 = vmatmul.bf16.gmra.mxu1 %v3665_v32  ;;  %v120_v36 = vsel %vm3060_vm4, 0, %v119_v43  ;;  %v1534_v43 = vpack.c.b16 %v820_v5, %v3420_v56  ;;  %v3719_v4 = vsel %vm3605_vm12, %v2457_v53, %v1129_v22  ;;  %v2861_v53 = vld [vmem:[%s4165_s3 + $0x1a0] sm:$0xff]  ;;  %2206 = vmatpush.bf16.msra.mxu0 %v2878_v47 }
  0x79   :  { %v250_v23 = vpack.c.bf16 %v234_v21, %v234_v21  ;;  %121 = vst [vmem:[#allocation2 + $0x44] sm:$0x1] %v120_v36  ;;  %v3712_v17 = vpack.c.b16 %v968_v49, %v967_v14  ;;  %v3723_v8 = vsel %vm3605_vm12, %v2458_v20, %v1133_v57  ;;  %v4178_v56 = vunpack.c.l.b16 %v3719_v4  ;;  %1897 = vmatpush.bf16.msra.mxu2 %v2861_v53  ;;  %v3001_v53 = vld [vmem:[#allocation2 + $0x58] sm:$0xf] }
  0x7a   :  { %911 = vmatmul.bf16.gmra.mxu0 %v3680_v13  ;;  %v4177_v5 = vunpack.c.l.b16 %v3723_v8  ;;  %v970_v20 = vunpack.c.l.b16 %v3463_v61  ;;  %v2459_v57 = vrot.slane %v3450_v45, 9 }
  0x7b   :  { %v316_v58 = vshrl.u32 %v250_v23, 16  ;;  %v319_v46 = vshll.u32 %v250_v23, 16 }
  0x7c   :  { %v464_v19 = vld [vmem:[#allocation2 + $0x40] sm:$0xf]  ;;  %v3752_v22 = vpack.c.b16 %v4177_v5, %v4178_v56  ;;  %v1536_v56 = vpack.c.b16 %v3489_v59, %v3312_v0  ;;  %v2868_v0 = vld [vmem:[%s4165_s3 + $0x1d8] sm:$0xff] }
  0x7d   :  { %v318_v37 = vrot.slane %v316_v58, 7  ;;  %v2852_v59 = vld [vmem:[%s4165_s3 + $0x158] sm:$0xff] }
  0x7f   :  { %v321_v21 = vor.u32 %v319_v46, %v318_v37  ;;  %v322_v36 = vrot.slane %v318_v37, 4  ;;  %v2854_v46 = vld [vmem:[%s4165_s3 + $0x168] sm:$0xff]  ;;  %v1141_v37 = vrot.slane %v3470_v1, 5  ;;  %v969_v1 = vunpack.c.l.b16 %v3450_v45  ;;  %v2869_v45 = vld [vmem:[%s4165_s3 + $0x1e0] sm:$0xff] }
  0x80   :  { %v467_v58 = vld [vmem:[#allocation2 + $0x44] sm:$0x1]  ;;  %1758 = vmatpush.bf16.msra.mxu1 %v2854_v46 }
  0x81   :  { %v465_v23 = vsel %vm3165_vm8, %v321_v21, %v464_v19  ;;  %v468_v14 = vsel %vm3051_vm3, %v322_v36, %v467_v58  ;;  %v2870_v19 = vld [vmem:[%s4165_s3 + $0x1e8] sm:$0xff]  ;;  %v1360_v10 = vpack.c.b16 %v969_v1, %v968_v49  ;;  %v1137_v21 = vrot.slane %v3452_v51, 5  ;;  %v2877_v51 = vld [vmem:[%s4165_s3 + $0x220] sm:$0xff]  ;;  %v2860_v58 = vld [vmem:[%s4165_s3 + $0x198] sm:$0xff] }
  0x82   :  { %1285 = vmatmul.bf16.gmra.mxu2 %v3707_v31  ;;  %466 = vst [vmem:[#allocation2 + $0x40] sm:$0xf] %v465_v23  ;;  %2060 = vmatpush.bf16.msra.mxu3 %v2870_v19  ;;  %v1535_v23 = vpack.c.b16 %v3274_v29, %v3667_v52  ;;  %v2853_v29 = vld [vmem:[%s4165_s3 + $0x160] sm:$0xff] }
  0x83   :  { %469 = vst [vmem:[#allocation2 + $0x44] sm:$0x1] %v468_v14  ;;  %v3765_v36 = vsel %vm3605_vm12, %v2459_v57, %v1137_v21  ;;  %2207 = vmatpush.bf16.msra.mxu0 %v2877_v51  ;;  %1898 = vmatpush.bf16.msra.mxu2 %v2860_v58  ;;  %v2462_v51 = vrot.slane %v3001_v53, 9  ;;  %v3003_v58 = vld [vmem:[#allocation2 + $0x5c] sm:$0x1] }
  0x84   :  { %1759 = vmatpush.bf16.msra.mxu1 %v2853_v29 }
  0x86   :  { %2061 = vmatpush.bf16.msra.mxu3 %v2869_v45  ;;  %v3002_v45 = vld [vmem:[#allocation2 + $0x54] sm:$0x1] }
  0x87   :  { %1435 = vmatmul.bf16.gmra.mxu3 %v1359_v50  ;;  %v2460_v50 = vrot.slane %v3463_v61, 9  ;;  %v4176_v61 = vunpack.c.l.b16 %v3765_v36  ;;  %v1145_v29 = vrot.slane %v3002_v45, 5  ;;  %v1153_v45 = vrot.slane %v3497_v16, 5 }
  0x88   :  { %1061 = vmatmul.bf16.gmra.mxu1 %v3712_v17 }
  0x89   :  { %v3746_v60 = vsel %vm3605_vm12, %v2460_v50, %v1141_v37  ;;  %v3779_v52 = vld [vmem:[#allocation2 + $0x40] sm:$0xf]  ;;  %v3000_v50 = vld [vmem:[#allocation2 + $0x50] sm:$0xf]  ;;  %1760 = vmatpush.bf16.msra.mxu1 %v2852_v59 }
  0x8a   :  { %1606 = vmatmul.bf16.vlgmr.msrb.gmra.mxu0 %v1534_v43  ;;  %v3759_v43 = vpack.c.b16 %v970_v20, %v969_v1  ;;  %v4175_v49 = vunpack.c.l.b16 %v3746_v60  ;;  %v4189_v19 = vunpack.c.l.b16 %v3779_v52  ;;  %v1488_v46 = vshrl.u32 %v3779_v52, 16  ;;  %2062 = vmatpush.bf16.msra.mxu3 %v2868_v0  ;;  %v87_v59 = vld [vmem:[#allocation2 + $0x90] sm:$0x1] }
  0x8b   :  { %v1491_v47 = vshll.u32 %v3779_v52, 16  ;;  %v971_v37 = vunpack.c.l.b16 %v3000_v50  ;;  %v972_v1 = vunpack.c.l.b16 %v3001_v53 }
  0x8c   :  { %v3788_v14 = vpack.c.b16 %v4175_v49, %v4176_v61  ;;  %v1490_v57 = vrot.slane %v1488_v46, 4  ;;  %v1149_v49 = vrot.slane %v3003_v58, 5  ;;  %v3796_v61 = vld [vmem:[#allocation2 + $0x44] sm:$0x1]  ;;  %v2912_v58 = vunpack.c.h.bf16 %v3362_v28 }
  0x8d   :  { %v1493_v21 = vrot.slane %v1491_v47, 5  ;;  %v983_v5 = vpack.c.b16 %v972_v1, %v971_v37  ;;  %v1497_v12 = vshll.u32 %v3796_v61, 16  ;;  %v2876_v37 = vld [vmem:[%s4165_s3 + $0x218] sm:$0xff] }
  0x8e   :  { %v3805_v46 = vsel %vm3605_vm12, %v2462_v51, %v1149_v49  ;;  %2208 = vmatpush.bf16.msra.mxu0 %v2876_v37  ;;  %v1157_v51 = vrot.slane %v3508_v9, 5  ;;  %v206_v0 = vmul.f32 %v3672_v25, %v2912_v58  ;;  %v2851_v9 = vld [vmem:[%s4165_s3 + $0x150] sm:$0xff] }
  0x8f   :  { %v1494_v2 = vor.u32 %v1493_v21, %v1490_v57  ;;  %v1499_v49 = vrot.slane %v1497_v12, 5  ;;  %v974_v21 = vunpack.c.l.b16 %v3505_v27  ;;  %v2875_v25 = vld [vmem:[%s4165_s3 + $0x210] sm:$0xff]  ;;  %1761 = vmatpush.bf16.msra.mxu1 %v2851_v9 }
  0x90   :  { %v226_v16 = vadd.f32 %v3685_v40, %v206_v0  ;;  %v2858_v40 = vld [vmem:[%s4165_s3 + $0x188] sm:$0xff] }
  0x91   :  { %v1495_v53 = vrot.slane %v1494_v2, 4 }
  0x92   :  { %1290 = vmatmul.bf16.gmra.mxu2 %v3752_v22  ;;  %v242_v37 = vmax.f32 %v226_v16, 0.0  ;;  %2209 = vmatpush.bf16.msra.mxu0 %v2875_v25 }
  0x93   :  { %v1500_v57 = vsel %vm3220_vm9, %v1495_v53, %v1499_v49  ;;  %v88_v53 = vsel %vm3051_vm3, 0, %v87_v59 }
  0x94   :  { %v3826_v2 = vunpack.c.l.b16 %v1500_v57  ;;  %89 = vst [vmem:[#allocation2 + $0x90] sm:$0x1] %v88_v53  ;;  %v149_v57 = vld [vmem:[#allocation2 + $0x94] sm:$0x1] }
  0x97   :  { %1440 = vmatmul.bf16.gmra.mxu3 %v1360_v10  ;;  %v1361_v10 = vpack.c.b16 %v4189_v19, %v970_v20 }
  0x98   :  { %1066 = vmatmul.bf16.gmra.mxu1 %v3759_v43 }
  0x9a   :  { %1611 = vmatmul.bf16.gmra.mxu0 %v1535_v23  ;;  %v2461_v23 = vrot.slane %v3000_v50, 9  ;;  %v4187_v50 = vunpack.c.l.b16 %v3805_v46 }
  0x9b   :  { %v512_v53 = vld [vmem:[#allocation2 + $0x90] sm:$0xf] }
  0x9c   :  { %v1146_v20 = vsel %vm3605_vm12, %v2461_v23, %v1145_v29  ;;  %v2463_v23 = vrot.slane %v3483_v18, 9  ;;  %v2464_v29 = vrot.slane %v3505_v27, 9  ;;  %v2867_v27 = vld [vmem:[%s4165_s3 + $0x1d0] sm:$0xff] }
  0x9d   :  { %v1200_v47 = vunpack.c.l.b16 %v1146_v20  ;;  %2063 = vmatpush.bf16.msra.mxu3 %v2867_v27  ;;  %v3006_v27 = vld [vmem:[#allocation2 + $0x74] sm:$0x1] }
  0x9e   :  { %v1161_v9 = vrot.slane %v3006_v27, 5 }
  0xa2   :  { %1295 = vmatmul.bf16.gmra.mxu2 %v3788_v14 }
  0xa7   :  { %1445 = vmatmul.bf16.gmra.mxu3 %v1361_v10  ;;  %v973_v10 = vunpack.c.l.b16 %v3483_v18  ;;  %v3844_v18 = vsel %vm3605_vm12, %v2464_v29, %v1157_v51  ;;  %v3005_v51 = vld [vmem:[#allocation2 + $0x78] sm:$0xf] }
  0xa8   :  { %1071 = vmatmul.bf16.gmra.mxu1 %v983_v5  ;;  %v1212_v5 = vpack.c.b16 %v4187_v50, %v1200_v47  ;;  %v1537_v47 = vpack.c.b16 %v3826_v2, %v3503_v62  ;;  %v4181_v62 = vunpack.c.l.b16 %v3844_v18  ;;  %v976_v58 = vunpack.c.l.b16 %v3005_v51 }
  0xa9   :  { %v1362_v12 = vpack.c.b16 %v973_v10, %v972_v1  ;;  %v3833_v20 = vpack.c.b16 %v974_v21, %v973_v10  ;;  %v3840_v1 = vsel %vm3605_vm12, %v2463_v23, %v1153_v45  ;;  %v258_v10 = vpack.c.bf16 %v242_v37, %v242_v37 }
  0xaa   :  { %1616 = vmatmul.bf16.gmra.mxu0 %v1536_v56  ;;  %v2859_v56 = vld [vmem:[%s4165_s3 + $0x190] sm:$0xff]  ;;  %v4186_v28 = vunpack.c.l.b16 %v3840_v1  ;;  %v2466_v25 = vrot.slane %v3005_v51, 9 }
  0xab   :  { %1899 = vmatpush.bf16.msra.mxu2 %v2859_v56  ;;  %v3004_v56 = vld [vmem:[#allocation2 + $0x70] sm:$0xf]  ;;  %v380_v23 = vshrl.u32 %v258_v10, 16  ;;  %v383_v45 = vshll.u32 %v258_v10, 16  ;;  %v3872_v29 = vpop.f32.mrf.mxu1  ;;  %v1538_v10 = vpack.c.b16 %v3542_v54, %v3345_v55  ;;  %v2866_v54 = vld [vmem:[%s4165_s3 + $0x1c8] sm:$0xff] }
  0xac   :  { %v3868_v49 = vpack.c.b16 %v4181_v62, %v4186_v28  ;;  %v2465_v16 = vrot.slane %v3004_v56, 9  ;;  %2064 = vmatpush.bf16.msra.mxu3 %v2866_v54 }
  0xad   :  { %v382_v0 = vrot.slane %v380_v23, 7 }
  0xaf   :  { %1900 = vmatpush.bf16.msra.mxu2 %v2858_v40  ;;  %v3007_v40 = vld [vmem:[#allocation2 + $0x7c] sm:$0x1]  ;;  %v385_v37 = vor.u32 %v383_v45, %v382_v0  ;;  %v386_v62 = vrot.slane %v382_v0, 4  ;;  %v2850_v45 = vld [vmem:[%s4165_s3 + $0x148] sm:$0xff]  ;;  %v977_v0 = vunpack.c.l.b16 %v3519_v33 }
  0xb0   :  { %v1165_v59 = vrot.slane %v3007_v40, 5  ;;  %1762 = vmatpush.bf16.msra.mxu1 %v2850_v45  ;;  %v2468_v40 = vrot.slane %v3529_v24, 9 }
  0xb1   :  { %v1364_v27 = vpack.c.b16 %v977_v0, %v976_v58 }
  0xb2   :  { %1300 = vmatmul.bf16.gmra.mxu2 %v1212_v5  ;;  %v975_v5 = vunpack.c.l.b16 %v3004_v56  ;;  %v3887_v56 = vsel %vm3605_vm12, %v2466_v25, %v1165_v59  ;;  %v1169_v25 = vrot.slane %v3524_v41, 5  ;;  %v1173_v59 = vrot.slane %v3537_v42, 5 }
  0xb3   :  { %v4184_v55 = vunpack.c.l.b16 %v3887_v56  ;;  %v3903_v51 = vpop.f32.mrf.mxu1 }
  0xb4   :  { %v3934_v41 = vsel %vm3605_vm12, %v2468_v40, %v1173_v59 }
  0xb5   :  { %v4182_v42 = vunpack.c.l.b16 %v3934_v41 }
  0xb7   :  { %1450 = vmatmul.bf16.gmra.mxu3 %v1362_v12  ;;  %v150_v12 = vsel %vm3060_vm4, 0, %v149_v57  ;;  %v3875_v57 = vpack.c.b16 %v976_v58, %v975_v5  ;;  %v2849_v58 = vld [vmem:[%s4165_s3 + $0x140] sm:$0xff] }
  0xb8   :  { %1076 = vmatmul.bf16.gmra.mxu1 %v3833_v20  ;;  %151 = vst [vmem:[#allocation2 + $0x94] sm:$0x1] %v150_v12  ;;  %v513_v12 = vsel %vm3165_vm8, %v385_v37, %v512_v53  ;;  %v978_v37 = vunpack.c.l.b16 %v3529_v24  ;;  %v2857_v24 = vld [vmem:[%s4165_s3 + $0x180] sm:$0xff] }
  0xb9   :  { %514 = vst [vmem:[#allocation2 + $0x90] sm:$0xf] %v513_v12  ;;  %1901 = vmatpush.bf16.msra.mxu2 %v2857_v24  ;;  %1763 = vmatpush.bf16.msra.mxu1 %v2849_v58 }
  0xba   :  { %1621 = vmatmul.bf16.gmra.mxu0 %v1537_v47  ;;  %v1363_v47 = vpack.c.b16 %v975_v5, %v974_v21  ;;  %v3883_v21 = vsel %vm3605_vm12, %v2465_v16, %v1161_v9  ;;  %v3912_v16 = vpop.f32.mrf.mxu2  ;;  %v2467_v9 = vrot.slane %v3519_v33, 9 }
  0xbb   :  { %v4185_v11 = vunpack.c.l.b16 %v3883_v21 }
  0xbc   :  { %v3930_v33 = vsel %vm3605_vm12, %v2467_v9, %v1169_v25  ;;  %v2873_v25 = vld [vmem:[%s4165_s3 + $0x200] sm:$0xff] }
  0xbe   :  { %v3924_v12 = vpop.f32.mrf.mxu3 }
  0xbf   :  { %v515_v23 = vld [vmem:[#allocation2 + $0x94] sm:$0x1] }
  0xc0   :  { %v516_v5 = vsel %vm3051_vm3, %v386_v62, %v515_v23  ;;  %v2874_v62 = vld [vmem:[%s4165_s3 + $0x208] sm:$0xff]  ;;  %v3926_v23 = vpack.c.b16 %v978_v37, %v977_v0  ;;  %v3950_v54 = vld [vmem:[#allocation2 + $0x90] sm:$0xf]  ;;  %v907_v59 = vpop.f32.mrf.mxu0 }
  0xc1   :  { %517 = vst [vmem:[#allocation2 + $0x94] sm:$0x1] %v516_v5  ;;  %2210 = vmatpush.bf16.msra.mxu0 %v2874_v62  ;;  %v4188_v0 = vunpack.c.l.b16 %v3950_v54  ;;  %v1505_v9 = vshll.u32 %v3950_v54, 16 }
  0xc2   :  { %1305 = vmatmul.bf16.gmra.mxu2 %v3868_v49  ;;  %v3948_v5 = vpop.f32.mrf.mxu2 }
  0xc5   :  { %2211 = vmatpush.bf16.msra.mxu0 %v2873_v25 }
  0xc6   :  { %v3966_v40 = vpop.f32.mrf.mxu3 }
  0xc7   :  { %1455 = vmatmul.bf16.gmra.mxu3 %v1363_v47  ;;  %v3909_v47 = vpack.c.b16 %v4184_v55, %v4185_v11 }
  0xc8   :  { %1081 = vmatmul.bf16.gmra.mxu1 %v3875_v57  ;;  %v3971_v58 = vld [vmem:[#allocation2 + $0x94] sm:$0x1] }
  0xc9   :  { %v1511_v25 = vshll.u32 %v3971_v58, 16 }
  0xca   :  { %1626 = vmatmul.bf16.gmra.mxu0 %v1538_v10  ;;  %v1539_v10 = vpack.c.b16 %v3379_v34, %v3559_v39  ;;  %v4183_v34 = vunpack.c.l.b16 %v3930_v33  ;;  %v2865_v39 = vld [vmem:[%s4165_s3 + $0x1c0] sm:$0xff] }
  0xcb   :  { %2065 = vmatpush.bf16.msra.mxu3 %v2865_v39  ;;  %v1507_v39 = vrot.slane %v1505_v9, 5  ;;  %v909_v9 = vpop.f32.mrf.mxu0 }
  0xcc   :  { %v3958_v62 = vpack.c.b16 %v4182_v42, %v4183_v34  ;;  %v1540_v34 = vpack.c.b16 %v3581_v6, %v3392_v15 }
  0xce   :  { %4205 = vst [vmem:[#allocation6_spill] sm:$0xff] %v3958_v62 }
  0xd2   :  { %1310 = vmatmul.bf16.gmra.mxu2 %v3909_v47 }
  0xd5   :  { %v3920_v53 = vpop.f32.mrf.mxu1 }
  0xd7   :  { %1460 = vmatmul.bf16.gmra.mxu3 %v1364_v27  ;;  %v1502_v27 = vshrl.u32 %v3950_v54, 16 }
  0xd8   :  { %1086 = vmatmul.bf16.gmra.mxu1 %v3926_v23 }
  0xd9   :  { %v1504_v24 = vrot.slane %v1502_v27, 4  ;;  %v1513_v27 = vrot.slane %v1511_v25, 5 }
  0xda   :  { %1631 = vmatmul.bf16.gmra.mxu0 %v1539_v10  ;;  %v1365_v10 = vpack.c.b16 %v4188_v0, %v978_v37 }
  0xdb   :  { %v1508_v11 = vor.u32 %v1507_v39, %v1504_v24  ;;  %v4208_v39 = vunpack.c.l.b16 %v3719_v4 }
  0xdd   :  { %v3952_v45 = vpop.f32.mrf.mxu1  ;;  %v1509_v37 = vrot.slane %v1508_v11, 4 }
  0xdf   :  { %v1514_v15 = vsel %vm3220_vm9, %v1509_v37, %v1513_v27 }
  0xe2   :  { %1315 = vmatmul.bf16.gmra.mxu2 %v3958_v62 }
  0xe5   :  { %v3973_v42 = vpop.f32.mrf.mxu2  ;;  %v1052_v55 = vpop.f32.mrf.mxu1 }
  0xe6   :  { %v1053_v28 = vadd.f32 %v1052_v55, %v907_v59  ;;  %v4207_v59 = vunpack.c.l.b16 %v3677_v38 }
  0xe7   :  { %1465 = vmatmul.bf16.gmra.mxu3 %v1365_v10  ;;  %v3985_v10 = vunpack.c.l.b16 %v1514_v15 }
  0xe8   :  { %1764 = vmatmul.bf16.vlgmr.msra.gmra.mxu1 %v3657_v35  ;;  %v1693_v25 = vpack.c.b16 %v4208_v39, %v4207_v59 }
  0xe9   :  { %v1541_v55 = vpack.c.b16 %v3985_v10, %v3603_v30 }
  0xea   :  { %1636 = vmatmul.bf16.gmra.mxu0 %v1540_v34  ;;  %v3979_v50 = vpop.f32.mrf.mxu3 }
  0xed   :  { %v3981_v0 = vpop.f32.mrf.mxu2  ;;  %v1054_v19 = vpop.f32.mrf.mxu1 }
  0xee   :  { %v1055_v6 = vadd.f32 %v1054_v19, %v909_v9 }
  0xf2   :  { %v3987_v24 = vpop.f32.mrf.mxu3  ;;  %1902 = vmatmul.bf16.vlgmr.msra.gmra.mxu2 %v3665_v32 }
  0xf3   :  { %4206 = vst [vmem:[#allocation7_spill] sm:$0xff] %v3987_v24 }
  0xf5   :  { %v1281_v35 = vpop.f32.mrf.mxu2  ;;  %v1057_v34 = vpop.f32.mrf.mxu1 }
  0xf6   :  { %v1321_v11 = vadd.f32 %v1281_v35, %v1053_v28  ;;  %v60_v28 = vld [vmem:[#allocation2 + $0x48] sm:$0x1] }
  0xf7   :  { %v912_v62 = vpop.f32.mrf.mxu0  ;;  %2066 = vmatmul.bf16.vlgmr.msra.gmra.mxu3 %v3680_v13  ;;  %v61_v38 = vsel %vm3051_vm3, 0, %v60_v28 }
  0xf8   :  { %v1058_v19 = vadd.f32 %v1057_v34, %v912_v62  ;;  %1769 = vmatmul.bf16.gmra.mxu1 %v1693_v25  ;;  %62 = vst [vmem:[#allocation2 + $0x48] sm:$0x1] %v61_v38  ;;  %v122_v62 = vld [vmem:[#allocation2 + $0x4c] sm:$0x1] }
  0xfa   :  { %1641 = vmatmul.bf16.gmra.mxu0 %v1541_v55  ;;  %v1431_v37 = vpop.f32.mrf.mxu3 }
  0xfb   :  { %v1471_v27 = vadd.f32 %v1431_v37, %v1321_v11  ;;  %v4209_v11 = vunpack.c.l.b16 %v3723_v8 }
  0xfd   :  { %v1283_v32 = vpop.f32.mrf.mxu2  ;;  %v1059_v15 = vpop.f32.mrf.mxu1 }
  0xfe   :  { %v1322_v9 = vadd.f32 %v1283_v32, %v1055_v6  ;;  %v4210_v6 = vunpack.c.l.b16 %v3765_v36 }
  0xff   :  { %v914_v24 = vpop.f32.mrf.mxu0  ;;  %v4011_v37 = vld [vmem:[#allocation2 + $0x48] sm:$0xf] }
 0x100   :  { %v1060_v30 = vadd.f32 %v1059_v15, %v914_v24  ;;  %v1694_v59 = vpack.c.b16 %v4210_v6, %v4209_v11  ;;  %v123_v24 = vsel %vm3060_vm4, 0, %v122_v62  ;;  %v1960_v36 = vshrl.u32 %v4011_v37, 16 }
 0x101   :  { %124 = vst [vmem:[#allocation2 + $0x4c] sm:$0x1] %v123_v24  ;;  %v1963_v32 = vshll.u32 %v4011_v37, 16 }
 0x102   :  { %v1433_v35 = vpop.f32.mrf.mxu3  ;;  %1907 = vmatmul.bf16.gmra.mxu2 %v3712_v17 }
 0x103   :  { %v1472_v4 = vadd.f32 %v1433_v35, %v1322_v9  ;;  %v1962_v35 = vrot.slane %v1960_v36, 4 }
 0x105   :  { %v1286_v13 = vpop.f32.mrf.mxu2  ;;  %v1062_v55 = vpop.f32.mrf.mxu1 }
 0x106   :  { %v1323_v34 = vadd.f32 %v1286_v13, %v1058_v19  ;;  %v1063_v17 = vadd.f32 %v1062_v55, %v3872_v29  ;;  %v1667_v13 = vrot.slane %v3796_v61, 5 }
 0x107   :  { %v1607_v39 = vpop.f32.mrf.mxu0  ;;  %2071 = vmatmul.bf16.gmra.mxu3 %v3332_v48 }
 0x108   :  { %v4008_v25 = vadd.f32 %v1607_v39, %v1471_v27  ;;  %1774 = vmatmul.bf16.gmra.mxu1 %v1694_v59  ;;  %v1965_v27 = vrot.slane %v1963_v32, 5  ;;  %v537_v62 = vld [vmem:[#allocation2 + $0x4c] sm:$0x1] }
 0x109   :  { %v1969_v59 = vshll.u32 %v537_v62, 16 }
 0x10a   :  { %2212 = vmatmul.bf16.vlgmr.msra.gmra.mxu0 %v3707_v31  ;;  %v1436_v19 = vpop.f32.mrf.mxu3  ;;  %v2613_v31 = vrot.slane %v3779_v52, 9  ;;  %v1966_v6 = vor.u32 %v1965_v27, %v1962_v35 }
 0x10b   :  { %v1473_v8 = vadd.f32 %v1436_v19, %v1323_v34 }
 0x10c   :  { %v1967_v32 = vrot.slane %v1966_v6, 4 }
 0x10d   :  { %v1288_v9 = vpop.f32.mrf.mxu2  ;;  %v1064_v28 = vpop.f32.mrf.mxu1 }
 0x10e   :  { %v1324_v15 = vadd.f32 %v1288_v9, %v1060_v30  ;;  %v1065_v29 = vadd.f32 %v1064_v28, %v3903_v51  ;;  %v1668_v30 = vsel %vm3605_vm12, %v2613_v31, %v1667_v13  ;;  %v1840_v28 = vunpack.c.l.b16 %v4011_v37 }
 0x10f   :  { %v1609_v48 = vpop.f32.mrf.mxu0  ;;  %v1690_v11 = vunpack.c.l.b16 %v1668_v30 }
 0x110   :  { %v4016_v38 = vadd.f32 %v1609_v48, %v1472_v4  ;;  %v4211_v4 = vunpack.c.l.b16 %v3746_v60 }
 0x112   :  { %v1438_v34 = vpop.f32.mrf.mxu3  ;;  %1912 = vmatmul.bf16.gmra.mxu2 %v3759_v43  ;;  %v1695_v19 = vpack.c.b16 %v1690_v11, %v4211_v4  ;;  %v1971_v43 = vrot.slane %v1969_v59, 5 }
 0x113   :  { %v1474_v55 = vadd.f32 %v1438_v34, %v1324_v15 }
 0x114   :  { %v1972_v60 = vsel %vm3220_vm9, %v1967_v32, %v1971_v43 }
 0x115   :  { %v1291_v51 = vpop.f32.mrf.mxu2  ;;  %v1067_v39 = vpop.f32.mrf.mxu1  ;;  %v2004_v13 = vunpack.c.l.b16 %v1972_v60 }
 0x116   :  { %v1325_v24 = vadd.f32 %v1291_v51, %v1063_v17  ;;  %v1068_v61 = vadd.f32 %v1067_v39, %v3920_v53 }
 0x117   :  { %v1612_v36 = vpop.f32.mrf.mxu0  ;;  %2076 = vmatmul.bf16.gmra.mxu3 %v3516_v26  ;;  %v4212_v26 = vunpack.c.l.b16 %v3779_v52  ;;  %v2006_v6 = vpack.c.b16 %v2004_v13, %v3826_v2  ;;  %v4214_v52 = vunpack.c.l.b16 %v3840_v1  ;;  %v4217_v13 = vld [vmem:[#allocation4_spill] sm:$0xff] }
 0x118   :  { %v4027_v9 = vadd.f32 %v1612_v36, %v1473_v8  ;;  %1779 = vmatmul.bf16.gmra.mxu1 %v1695_v19  ;;  %v2127_v36 = vrot.slane %v537_v62, 5 }
 0x119   :  { %v1842_v27 = vpack.c.b16 %v1840_v28, %v4212_v26  ;;  %v4215_v26 = vunpack.c.l.b16 %v3844_v18  ;;  %v90_v18 = vld [vmem:[#allocation2 + $0x98] sm:$0x1] }
 0x11a   :  { %2217 = vmatmul.bf16.gmra.mxu0 %v3752_v22  ;;  %v1441_v15 = vpop.f32.mrf.mxu3 }
 0x11b   :  { %v1475_v17 = vadd.f32 %v1441_v15, %v1325_v24 }
 0x11d   :  { %v1293_v48 = vpop.f32.mrf.mxu2  ;;  %v1069_v53 = vpop.f32.mrf.mxu1 }
 0x11e   :  { %v1326_v35 = vadd.f32 %v1293_v48, %v1065_v29  ;;  %v1070_v8 = vadd.f32 %v1069_v53, %v3952_v45  ;;  %v4213_v29 = vunpack.c.l.b16 %v3805_v46 }
 0x11f   :  { %v1614_v31 = vpop.f32.mrf.mxu0 }
 0x120   :  { %v4036_v34 = vadd.f32 %v1614_v31, %v1474_v55  ;;  %v1696_v39 = vpack.c.b16 %v4214_v52, %v4213_v29  ;;  %v2759_v55 = vrot.slane %v4011_v37, 9 }
 0x122   :  { %v1443_v22 = vpop.f32.mrf.mxu3  ;;  %1917 = vmatmul.bf16.gmra.mxu2 %v1842_v27  ;;  %v2128_v46 = vsel %vm3605_vm12, %v2759_v55, %v2127_v36  ;;  %v4216_v27 = vunpack.c.l.b16 %v3883_v21  ;;  %v4218_v55 = vunpack.c.l.b16 %v3887_v56  ;;  %v4219_v36 = vunpack.c.l.b16 %v3930_v33 }
 0x123   :  { %v1476_v30 = vadd.f32 %v1443_v22, %v1326_v35  ;;  %v2150_v28 = vunpack.c.l.b16 %v2128_v46 }
 0x124   :  { %v1697_v53 = vpack.c.b16 %v4216_v27, %v4215_v26 }
 0x125   :  { %v1296_v59 = vpop.f32.mrf.mxu2  ;;  %v1072_v24 = vpop.f32.mrf.mxu1  ;;  %v2152_v37 = vpack.c.b16 %v2150_v28, %v1690_v11 }
 0x126   :  { %v1327_v51 = vadd.f32 %v1296_v59, %v1068_v61 }
 0x127   :  { %v1617_v4 = vpop.f32.mrf.mxu0  ;;  %2081 = vmatmul.bf16.gmra.mxu3 %v2006_v6 }
 0x128   :  { %v4043_v19 = vadd.f32 %v1617_v4, %v1475_v17  ;;  %1784 = vmatmul.bf16.gmra.mxu1 %v1696_v39  ;;  %v152_v4 = vld [vmem:[#allocation2 + $0x9c] sm:$0x1] }
 0x12a   :  { %2222 = vmatmul.bf16.gmra.mxu0 %v3788_v14  ;;  %v1446_v45 = vpop.f32.mrf.mxu3  ;;  %v1073_v14 = vadd.f32 %v1072_v24, %v3912_v16  ;;  %v91_v24 = vsel %vm3051_vm3, 0, %v90_v18 }
 0x12b   :  { %v1477_v2 = vadd.f32 %v1446_v45, %v1327_v51  ;;  %92 = vst [vmem:[#allocation2 + $0x98] sm:$0x1] %v91_v24 }
 0x12d   :  { %v1298_v32 = vpop.f32.mrf.mxu2  ;;  %v1074_v43 = vpop.f32.mrf.mxu1 }
 0x12e   :  { %v1328_v61 = vadd.f32 %v1298_v32, %v1070_v8  ;;  %v1075_v16 = vadd.f32 %v1074_v43, %v3948_v5  ;;  %v153_v32 = vsel %vm3060_vm4, 0, %v152_v4 }
 0x12f   :  { %v1619_v15 = vpop.f32.mrf.mxu0  ;;  %154 = vst [vmem:[#allocation2 + $0x9c] sm:$0x1] %v153_v32 }
 0x130   :  { %v4049_v1 = vadd.f32 %v1619_v15, %v1476_v30 }
 0x132   :  { %v1448_v17 = vpop.f32.mrf.mxu3  ;;  %1922 = vmatmul.bf16.gmra.mxu2 %v3833_v20  ;;  %v4077_v43 = vld [vmem:[#allocation2 + $0x98] sm:$0xf] }
 0x133   :  { %v1478_v60 = vadd.f32 %v1448_v17, %v1328_v61  ;;  %v4220_v61 = vld [vmem:[#allocation3_spill] sm:$0xff]  ;;  %v1974_v33 = vshrl.u32 %v4077_v43, 16  ;;  %v1977_v7 = vshll.u32 %v4077_v43, 16  ;;  %v1841_v24 = vunpack.c.l.b16 %v4077_v43 }
 0x135   :  { %v1301_v48 = vpop.f32.mrf.mxu2  ;;  %v1077_v35 = vpop.f32.mrf.mxu1 }
 0x136   :  { %v1329_v62 = vadd.f32 %v1301_v48, %v1073_v14  ;;  %v1078_v52 = vadd.f32 %v1077_v35, %v3973_v42  ;;  %v1976_v14 = vrot.slane %v1974_v33, 4  ;;  %v1979_v48 = vrot.slane %v1977_v7, 5  ;;  %v557_v35 = vld [vmem:[#allocation2 + $0x9c] sm:$0x1] }
 0x137   :  { %v1622_v31 = vpop.f32.mrf.mxu0  ;;  %2086 = vmatmul.bf16.gmra.mxu3 %v4217_v13 }
 0x138   :  { %v4058_v8 = vadd.f32 %v1622_v31, %v1477_v2  ;;  %1789 = vmatmul.bf16.gmra.mxu1 %v1697_v53  ;;  %v1698_v2 = vpack.c.b16 %v4219_v36, %v4218_v55  ;;  %v1980_v13 = vor.u32 %v1979_v48, %v1976_v14 }
 0x13a   :  { %2227 = vmatmul.bf16.gmra.mxu0 %v2152_v37  ;;  %v1451_v20 = vpop.f32.mrf.mxu3  ;;  %v1981_v18 = vrot.slane %v1980_v13, 4 }
 0x13b   :  { %v1479_v22 = vadd.f32 %v1451_v20, %v1329_v62  ;;  %v1671_v62 = vrot.slane %v3971_v58, 5  ;;  %v1983_v20 = vshll.u32 %v557_v35, 16 }
 0x13d   :  { %v1303_v30 = vpop.f32.mrf.mxu2  ;;  %v1079_v6 = vpop.f32.mrf.mxu1 }
 0x13e   :  { %v1330_v11 = vadd.f32 %v1303_v30, %v1075_v16  ;;  %v1080_v56 = vadd.f32 %v1079_v6, %v3981_v0 }
 0x13f   :  { %v1624_v59 = vpop.f32.mrf.mxu0 }
 0x140   :  { %v4061_v51 = vadd.f32 %v1624_v59, %v1478_v60  ;;  %v4222_v59 = vld [vmem:[#allocation5_spill] sm:$0xff] }
 0x142   :  { %v1453_v21 = vpop.f32.mrf.mxu3  ;;  %1927 = vmatmul.bf16.gmra.mxu2 %v3875_v57 }
 0x143   :  { %v1480_v29 = vadd.f32 %v1453_v21, %v1330_v11  ;;  %v4221_v11 = vunpack.c.l.b16 %v3934_v41 }
 0x145   :  { %v1306_v39 = vpop.f32.mrf.mxu2  ;;  %v1082_v45 = vpop.f32.mrf.mxu1 }
 0x146   :  { %v1331_v5 = vadd.f32 %v1306_v39, %v1078_v52  ;;  %v1083_v53 = vadd.f32 %v1082_v45, %v3924_v12 }
 0x147   :  { %v1627_v57 = vpop.f32.mrf.mxu0  ;;  %2091 = vmatmul.bf16.gmra.mxu3 %v4220_v61 }
 0x148   :  { %v4074_v3 = vadd.f32 %v1627_v57, %v1479_v22  ;;  %1794 = vmatmul.bf16.gmra.mxu1 %v1698_v2 }
 0x14a   :  { %2232 = vmatmul.bf16.gmra.mxu0 %v3868_v49  ;;  %v1456_v42 = vpop.f32.mrf.mxu3  ;;  %v2614_v49 = vrot.slane %v3950_v54, 9 }
 0x14b   :  { %v1481_v15 = vadd.f32 %v1456_v42, %v1331_v5  ;;  %v4223_v5 = vunpack.c.l.b16 %v3950_v54  ;;  %v4224_v54 = vld [vmem:[#allocation6_spill] sm:$0xff] }
 0x14c   :  { %v1672_v27 = vsel %vm3605_vm12, %v2614_v49, %v1671_v62 }
 0x14d   :  { %v1308_v46 = vpop.f32.mrf.mxu2  ;;  %v1084_v17 = vpop.f32.mrf.mxu1  ;;  %v1691_v31 = vunpack.c.l.b16 %v1672_v27  ;;  %v1843_v45 = vpack.c.b16 %v1841_v24, %v4223_v5 }
 0x14e   :  { %v1332_v28 = vadd.f32 %v1308_v46, %v1080_v56  ;;  %v1085_v52 = vadd.f32 %v1084_v17, %v3966_v40  ;;  %v2760_v46 = vrot.slane %v4077_v43, 9 }
 0x14f   :  { %v1629_v60 = vpop.f32.mrf.mxu0  ;;  %v1699_v6 = vpack.c.b16 %v1691_v31, %v4221_v11 }
 0x150   :  { %v4082_v37 = vadd.f32 %v1629_v60, %v1480_v29  ;;  %v4225_v60 = vld [vmem:[#allocation7_spill] sm:$0xff] }
 0x152   :  { %v1458_v26 = vpop.f32.mrf.mxu3  ;;  %1932 = vmatmul.bf16.gmra.mxu2 %v3926_v23  ;;  %v1985_v23 = vrot.slane %v1983_v20, 5 }
 0x153   :  { %v1482_v0 = vadd.f32 %v1458_v26, %v1332_v28  ;;  %v2131_v28 = vrot.slane %v557_v35, 5 }
 0x154   :  { %v1986_v41 = vsel %vm3220_vm9, %v1981_v18, %v1985_v23 }
 0x155   :  { %v1311_v22 = vpop.f32.mrf.mxu2  ;;  %v1087_v30 = vpop.f32.mrf.mxu1  ;;  %v2005_v2 = vunpack.c.l.b16 %v1986_v41  ;;  %v2132_v62 = vsel %vm3605_vm12, %v2760_v46, %v2131_v28 }
 0x156   :  { %v1333_v16 = vadd.f32 %v1311_v22, %v1083_v53  ;;  %v1088_v40 = vadd.f32 %v1087_v30, %v3979_v50 }
 0x157   :  { %v1632_v58 = vpop.f32.mrf.mxu0  ;;  %2096 = vmatmul.bf16.gmra.mxu3 %v4222_v59  ;;  %v2007_v61 = vpack.c.b16 %v2005_v2, %v3985_v10 }
 0x158   :  { %v4093_v21 = vadd.f32 %v1632_v58, %v1481_v15  ;;  %1799 = vmatmul.bf16.gmra.mxu1 %v1699_v6 }
 0x15a   :  { %2237 = vmatmul.bf16.gmra.mxu0 %v3909_v47  ;;  %v1461_v12 = vpop.f32.mrf.mxu3 }
 0x15b   :  { %v1483_v29 = vadd.f32 %v1461_v12, %v1333_v16 }
 0x15d   :  { %v1313_v39 = vpop.f32.mrf.mxu2  ;;  %v1089_v55 = vpop.f32.mrf.mxu1 }
 0x15e   :  { %v1334_v4 = vadd.f32 %v1313_v39, %v1085_v52  ;;  %v1090_v14 = vadd.f32 %v1089_v55, %v4225_v60 }
 0x15f   :  { %v1634_v36 = vpop.f32.mrf.mxu0 }
 0x160   :  { %v4102_v32 = vadd.f32 %v1634_v36, %v1482_v0  ;;  %v2151_v0 = vunpack.c.l.b16 %v2132_v62 }
 0x162   :  { %v1463_v47 = vpop.f32.mrf.mxu3  ;;  %1937 = vmatmul.bf16.gmra.mxu2 %v1843_v45  ;;  %v2153_v20 = vpack.c.b16 %v2151_v0, %v1691_v31 }
 0x163   :  { %v1484_v57 = vadd.f32 %v1463_v47, %v1334_v4 }
 0x165   :  { %v1316_v42 = vpop.f32.mrf.mxu2  ;;  %v1765_v15 = vpop.f32.mrf.mxu1 }
 0x166   :  { %v1335_v63 = vadd.f32 %v1316_v42, %v1088_v40  ;;  %v1805_v59 = vadd.f32 %v1765_v15, %v4008_v25 }
 0x167   :  { %v1637_v56 = vpop.f32.mrf.mxu0  ;;  %2101 = vmatmul.bf16.gmra.mxu3 %v2007_v61 }
 0x168   :  { %v4106_v33 = vadd.f32 %v1637_v56, %v1483_v29 }
 0x16a   :  { %2242 = vmatmul.bf16.gmra.mxu0 %v4224_v54  ;;  %v1466_v7 = vpop.f32.mrf.mxu3 }
 0x16b   :  { %v1485_v17 = vadd.f32 %v1466_v7, %v1335_v63 }
 0x16d   :  { %v1318_v48 = vpop.f32.mrf.mxu2  ;;  %v1767_v49 = vpop.f32.mrf.mxu1 }
 0x16e   :  { %v1336_v10 = vadd.f32 %v1318_v48, %v1090_v14  ;;  %v1806_v12 = vadd.f32 %v1767_v49, %v4016_v38 }
 0x16f   :  { %v1639_v50 = vpop.f32.mrf.mxu0 }
 0x170   :  { %v4113_v26 = vadd.f32 %v1639_v50, %v1484_v57 }
 0x172   :  { %v1468_v27 = vpop.f32.mrf.mxu3 }
 0x173   :  { %v1486_v53 = vadd.f32 %v1468_v27, %v1336_v10 }
 0x175   :  { %v1903_v13 = vpop.f32.mrf.mxu2  ;;  %v1770_v22 = vpop.f32.mrf.mxu1 }
 0x176   :  { %v1943_v23 = vadd.f32 %v1903_v13, %v1805_v59  ;;  %v1807_v45 = vadd.f32 %v1770_v22, %v4027_v9 }
 0x177   :  { %v1642_v43 = vpop.f32.mrf.mxu0 }
 0x178   :  { %v4115_v35 = vadd.f32 %v1642_v43, %v1485_v17 }
 0x17a   :  { %2247 = vmatmul.bf16.gmra.mxu0 %v2153_v20  ;;  %v2067_v16 = vpop.f32.mrf.mxu3 }
 0x17b   :  { %v2107_v52 = vadd.f32 %v2067_v16, %v1943_v23 }
 0x17d   :  { %v1905_v30 = vpop.f32.mrf.mxu2  ;;  %v1772_v11 = vpop.f32.mrf.mxu1 }
 0x17e   :  { %v1944_v29 = vadd.f32 %v1905_v30, %v1806_v12  ;;  %v1808_v56 = vadd.f32 %v1772_v11, %v4036_v34 }
 0x17f   :  { %v1644_v6 = vpop.f32.mrf.mxu0 }
 0x180   :  { %v4117_v58 = vadd.f32 %v1644_v6, %v1486_v53 }
 0x182   :  { %v2069_v44 = vpop.f32.mrf.mxu3 }
 0x183   :  { %v2108_v39 = vadd.f32 %v2069_v44, %v1944_v29 }
 0x185   :  { %v1908_v18 = vpop.f32.mrf.mxu2  ;;  %v1775_v24 = vpop.f32.mrf.mxu1 }
 0x186   :  { %v1945_v47 = vadd.f32 %v1908_v18, %v1807_v45  ;;  %v1809_v49 = vadd.f32 %v1775_v24, %v4043_v19 }
 0x187   :  { %v2213_v31 = vpop.f32.mrf.mxu0 }
 0x188   :  { %v2253_v5 = vadd.f32 %v2213_v31, %v2107_v52 }
 0x18a   :  { %v2072_v41 = vpop.f32.mrf.mxu3  ;;  %v2323_v57 = vmul.f32 %v2253_v5, %v2253_v5 }
 0x18b   :  { %v2109_v63 = vadd.f32 %v2072_v41, %v1945_v47 }
 0x18d   :  { %v1910_v4 = vpop.f32.mrf.mxu2  ;;  %v1777_v36 = vpop.f32.mrf.mxu1 }
 0x18e   :  { %v1946_v7 = vadd.f32 %v1910_v4, %v1808_v56  ;;  %v1810_v30 = vadd.f32 %v1777_v36, %v4049_v1 }
 0x18f   :  { %v2215_v55 = vpop.f32.mrf.mxu0 }
 0x190   :  { %v2254_v2 = vadd.f32 %v2215_v55, %v2108_v39 }
 0x192   :  { %v2916_v25 = vpack.c.bf16 %v2254_v2, %v2253_v5  ;;  %v2301_v61 = vadd.f32 %v2254_v2, %v2253_v5  ;;  %v2324_v40 = vmul.f32 %v2254_v2, %v2254_v2  ;;  %v2074_v42 = vpop.f32.mrf.mxu3 }
 0x193   :  { %v2110_v48 = vadd.f32 %v2074_v42, %v1946_v7 }
 0x194   :  { %2917 = vst [vmem:[%s4169_s4] sm:$0xff] %v2916_v25   ;;  %v2339_v38 = vadd.f32 %v2324_v40, %v2323_v57 }
 0x195   :  { %v1913_v15 = vpop.f32.mrf.mxu2  ;;  %v1780_v46 = vpop.f32.mrf.mxu1 }
 0x196   :  { %v1947_v0 = vadd.f32 %v1913_v15, %v1809_v49  ;;  %v1811_v29 = vadd.f32 %v1780_v46, %v4058_v8 }
 0x197   :  { %v2218_v54 = vpop.f32.mrf.mxu0 }
 0x198   :  { %v2255_v9 = vadd.f32 %v2218_v54, %v2109_v63 }
 0x19a   :  { %v2302_v28 = vadd.f32 %v2301_v61, %v2255_v9  ;;  %v2325_v17 = vmul.f32 %v2255_v9, %v2255_v9  ;;  %v2077_v60 = vpop.f32.mrf.mxu3 }
 0x19b   :  { %v2111_v43 = vadd.f32 %v2077_v60, %v1947_v0 }
 0x19c   :  { %v2340_v14 = vadd.f32 %v2339_v38, %v2325_v17 }
 0x19d   :  { %v1915_v10 = vpop.f32.mrf.mxu2  ;;  %v1782_v34 = vpop.f32.mrf.mxu1 }
 0x19e   :  { %v1948_v19 = vadd.f32 %v1915_v10, %v1810_v30  ;;  %v1812_v47 = vadd.f32 %v1782_v34, %v4061_v51 }
 0x19f   :  { %v2220_v50 = vpop.f32.mrf.mxu0 }
 0x1a0   :  { %v2256_v62 = vadd.f32 %v2220_v50, %v2110_v48 }
 0x1a2   :  { %v2921_v27 = vpack.c.bf16 %v2256_v62, %v2255_v9  ;;  %v2303_v53 = vadd.f32 %v2302_v28, %v2256_v62  ;;  %v2326_v13 = vmul.f32 %v2256_v62, %v2256_v62  ;;  %v2079_v20 = vpop.f32.mrf.mxu3 }
 0x1a3   :  { %v2112_v12 = vadd.f32 %v2079_v20, %v1948_v19 }
 0x1a4   :  { %2960 = vst [vmem:[%s4169_s4 + $0x8] sm:$0xff] %v2921_v27   ;;  %v2341_v22 = vadd.f32 %v2340_v14, %v2326_v13 }
 0x1a5   :  { %v1918_v16 = vpop.f32.mrf.mxu2  ;;  %v1785_v31 = vpop.f32.mrf.mxu1 }
 0x1a6   :  { %v1949_v39 = vadd.f32 %v1918_v16, %v1811_v29  ;;  %v1813_v54 = vadd.f32 %v1785_v31, %v4074_v3 }
 0x1a7   :  { %v2223_v11 = vpop.f32.mrf.mxu0 }
 0x1a8   :  { %v2257_v6 = vadd.f32 %v2223_v11, %v2111_v43 }
 0x1aa   :  { %v2304_v44 = vadd.f32 %v2303_v53, %v2257_v6  ;;  %v2327_v59 = vmul.f32 %v2257_v6, %v2257_v6  ;;  %v2082_v18 = vpop.f32.mrf.mxu3 }
 0x1ab   :  { %v2113_v36 = vadd.f32 %v2082_v18, %v1949_v39 }
 0x1ac   :  { %v2342_v23 = vadd.f32 %v2341_v22, %v2327_v59 }
 0x1ad   :  { %v1920_v24 = vpop.f32.mrf.mxu2  ;;  %v1787_v25 = vpop.f32.mrf.mxu1 }
 0x1ae   :  { %v1950_v8 = vadd.f32 %v1920_v24, %v1812_v47  ;;  %v1814_v50 = vadd.f32 %v1787_v25, %v4082_v37 }
 0x1af   :  { %v2225_v52 = vpop.f32.mrf.mxu0 }
 0x1b0   :  { %v2258_v41 = vadd.f32 %v2225_v52, %v2112_v12 }
 0x1b2   :  { %v2926_v4 = vpack.c.bf16 %v2258_v41, %v2257_v6  ;;  %v2305_v5 = vadd.f32 %v2304_v44, %v2258_v41  ;;  %v2328_v45 = vmul.f32 %v2258_v41, %v2258_v41  ;;  %v2084_v55 = vpop.f32.mrf.mxu3 }
 0x1b3   :  { %v2114_v15 = vadd.f32 %v2084_v55, %v1950_v8 }
 0x1b4   :  { %2961 = vst [vmem:[%s4169_s4 + $0x10] sm:$0xff] %v2926_v4   ;;  %v2343_v1 = vadd.f32 %v2342_v23, %v2328_v45 }
 0x1b5   :  { %v1923_v2 = vpop.f32.mrf.mxu2  ;;  %v1790_v28 = vpop.f32.mrf.mxu1 }
 0x1b6   :  { %v1951_v46 = vadd.f32 %v1923_v2, %v1813_v54  ;;  %v1815_v16 = vadd.f32 %v1790_v28, %v4093_v21 }
 0x1b7   :  { %v2228_v57 = vpop.f32.mrf.mxu0 }
 0x1b8   :  { %v2259_v61 = vadd.f32 %v2228_v57, %v2113_v36 }
 0x1ba   :  { %v2306_v40 = vadd.f32 %v2305_v5, %v2259_v61  ;;  %v2329_v42 = vmul.f32 %v2259_v61, %v2259_v61  ;;  %v2087_v38 = vpop.f32.mrf.mxu3 }
 0x1bb   :  { %v2115_v10 = vadd.f32 %v2087_v38, %v1951_v46 }
 0x1bc   :  { %v2344_v63 = vadd.f32 %v2343_v1, %v2329_v42 }
 0x1bd   :  { %v1925_v56 = vpop.f32.mrf.mxu2  ;;  %v1792_v20 = vpop.f32.mrf.mxu1 }
 0x1be   :  { %v1952_v3 = vadd.f32 %v1925_v56, %v1814_v50  ;;  %v1816_v24 = vadd.f32 %v1792_v20, %v4102_v32 }
 0x1bf   :  { %v2230_v9 = vpop.f32.mrf.mxu0 }
 0x1c0   :  { %v2260_v7 = vadd.f32 %v2230_v9, %v2114_v15 }
 0x1c2   :  { %v2931_v17 = vpack.c.bf16 %v2260_v7, %v2259_v61  ;;  %v2307_v60 = vadd.f32 %v2306_v40, %v2260_v7  ;;  %v2330_v14 = vmul.f32 %v2260_v7, %v2260_v7  ;;  %v2089_v51 = vpop.f32.mrf.mxu3 }
 0x1c3   :  { %v2116_v22 = vadd.f32 %v2089_v51, %v1952_v3 }
 0x1c4   :  { %2962 = vst [vmem:[%s4169_s4 + $0x18] sm:$0xff] %v2931_v17   ;;  %v2345_v48 = vadd.f32 %v2344_v63, %v2330_v14 }
 0x1c5   :  { %v1928_v49 = vpop.f32.mrf.mxu2  ;;  %v1795_v12 = vpop.f32.mrf.mxu1 }
 0x1c6   :  { %v1953_v6 = vadd.f32 %v1928_v49, %v1815_v16  ;;  %v1817_v55 = vadd.f32 %v1795_v12, %v4106_v33 }
 0x1c7   :  { %v2233_v62 = vpop.f32.mrf.mxu0 }
 0x1c8   :  { %v2261_v0 = vadd.f32 %v2233_v62, %v2115_v10 }
 0x1ca   :  { %v2308_v27 = vadd.f32 %v2307_v60, %v2261_v0  ;;  %v2331_v53 = vmul.f32 %v2261_v0, %v2261_v0  ;;  %v2092_v13 = vpop.f32.mrf.mxu3 }
 0x1cb   :  { %v2117_v23 = vadd.f32 %v2092_v13, %v1953_v6 }
 0x1cc   :  { %v2346_v34 = vadd.f32 %v2345_v48, %v2331_v53 }
 0x1cd   :  { %v1930_v43 = vpop.f32.mrf.mxu2  ;;  %v1797_v36 = vpop.f32.mrf.mxu1 }
 0x1ce   :  { %v1954_v21 = vadd.f32 %v1930_v43, %v1816_v24  ;;  %v1818_v42 = vadd.f32 %v1797_v36, %v4113_v26 }
 0x1cf   :  { %v2235_v30 = vpop.f32.mrf.mxu0 }
 0x1d0   :  { %v2262_v11 = vadd.f32 %v2235_v30, %v2116_v22 }
 0x1d2   :  { %v2936_v19 = vpack.c.bf16 %v2262_v11, %v2261_v0  ;;  %v2309_v44 = vadd.f32 %v2308_v27, %v2262_v11  ;;  %v2332_v59 = vmul.f32 %v2262_v11, %v2262_v11  ;;  %v2094_v18 = vpop.f32.mrf.mxu3 }
 0x1d3   :  { %v2118_v5 = vadd.f32 %v2094_v18, %v1954_v21 }
 0x1d4   :  { %2963 = vst [vmem:[%s4169_s4 + $0x20] sm:$0xff] %v2936_v19   ;;  %v2347_v37 = vadd.f32 %v2346_v34, %v2332_v59 }
 0x1d5   :  { %v1933_v29 = vpop.f32.mrf.mxu2  ;;  %v1800_v56 = vpop.f32.mrf.mxu1 }
 0x1d6   :  { %v1955_v47 = vadd.f32 %v1933_v29, %v1817_v55  ;;  %v1819_v17 = vadd.f32 %v1800_v56, %v4115_v35 }
 0x1d7   :  { %v2238_v31 = vpop.f32.mrf.mxu0 }
 0x1d8   :  { %v2263_v52 = vadd.f32 %v2238_v31, %v2117_v23 }
 0x1da   :  { %v2310_v41 = vadd.f32 %v2309_v44, %v2263_v52  ;;  %v2333_v39 = vmul.f32 %v2263_v52, %v2263_v52  ;;  %v2097_v45 = vpop.f32.mrf.mxu3 }
 0x1db   :  { %v2119_v40 = vadd.f32 %v2097_v45, %v1955_v47 }
 0x1dc   :  { %v2348_v4 = vadd.f32 %v2347_v37, %v2333_v39 }
 0x1dd   :  { %v1935_v57 = vpop.f32.mrf.mxu2  ;;  %v1802_v26 = vpop.f32.mrf.mxu1 }
 0x1de   :  { %v1956_v33 = vadd.f32 %v1935_v57, %v1818_v42  ;;  %v1820_v27 = vadd.f32 %v1802_v26, %v4117_v58 }
 0x1df   :  { %v2240_v1 = vpop.f32.mrf.mxu0 }
 0x1e0   :  { %v2264_v2 = vadd.f32 %v2240_v1, %v2118_v5 }
 0x1e2   :  { %v2941_v25 = vpack.c.bf16 %v2264_v2, %v2263_v52  ;;  %v2311_v61 = vadd.f32 %v2310_v41, %v2264_v2  ;;  %v2334_v8 = vmul.f32 %v2264_v2, %v2264_v2  ;;  %v2099_v63 = vpop.f32.mrf.mxu3 }
 0x1e3   :  { %v2120_v28 = vadd.f32 %v2099_v63, %v1956_v33 }
 0x1e4   :  { %2964 = vst [vmem:[%s4169_s4 + $0x28] sm:$0xff] %v2941_v25   ;;  %v2349_v32 = vadd.f32 %v2348_v4, %v2334_v8 }
 0x1e5   :  { %v1938_v7 = vpop.f32.mrf.mxu2 }
 0x1e6   :  { %v1957_v51 = vadd.f32 %v1938_v7, %v1819_v17 }
 0x1e7   :  { %v2243_v38 = vpop.f32.mrf.mxu0 }
 0x1e8   :  { %v2265_v15 = vadd.f32 %v2243_v38, %v2119_v40 }
 0x1ea   :  { %v2312_v54 = vadd.f32 %v2311_v61, %v2265_v15  ;;  %v2335_v9 = vmul.f32 %v2265_v15, %v2265_v15  ;;  %v2102_v48 = vpop.f32.mrf.mxu3 }
 0x1eb   :  { %v2121_v0 = vadd.f32 %v2102_v48, %v1957_v51 }
 0x1ec   :  { %v2350_v46 = vadd.f32 %v2349_v32, %v2335_v9 }
 0x1ed   :  { %v1940_v3 = vpop.f32.mrf.mxu2 }
 0x1ee   :  { %v1958_v35 = vadd.f32 %v1940_v3, %v1820_v27 }
 0x1ef   :  { %v2245_v60 = vpop.f32.mrf.mxu0 }
 0x1f0   :  { %v2266_v14 = vadd.f32 %v2245_v60, %v2120_v28 }
 0x1f2   :  { %v2946_v10 = vpack.c.bf16 %v2266_v14, %v2265_v15  ;;  %v2313_v49 = vadd.f32 %v2312_v54, %v2266_v14  ;;  %v2336_v50 = vmul.f32 %v2266_v14, %v2266_v14  ;;  %v2104_v22 = vpop.f32.mrf.mxu3 }
 0x1f3   :  { %v2122_v16 = vadd.f32 %v2104_v22, %v1958_v35 }
 0x1f4   :  { %2965 = vst [vmem:[%s4169_s4 + $0x30] sm:$0xff] %v2946_v10   ;;  %v2351_v62 = vadd.f32 %v2350_v46, %v2336_v50 }
 0x1f7   :  { %v2248_v53 = vpop.f32.mrf.mxu0 }
 0x1f8   :  { %v2267_v13 = vadd.f32 %v2248_v53, %v2121_v0 }
 0x1fa   :  { %v2314_v20 = vadd.f32 %v2313_v49, %v2267_v13  ;;  %v2337_v34 = vmul.f32 %v2267_v13, %v2267_v13 }
 0x1fc   :  { %v2352_v43 = vadd.f32 %v2351_v62, %v2337_v34 }
 0x1ff   :  { %v2250_v30 = vpop.f32.mrf.mxu0 }
 0x200   :  { %v2268_v11 = vadd.f32 %v2250_v30, %v2122_v16 }
 0x202   :  { %v2951_v6 = vpack.c.bf16 %v2268_v11, %v2267_v13  ;;  %v2315_v19 = vadd.f32 %v2314_v20, %v2268_v11  ;;  %v2338_v44 = vmul.f32 %v2268_v11, %v2268_v11 }
 0x204   :  { %2966 = vst [vmem:[%s4169_s4 + $0x38] sm:$0xff] %v2951_v6   ;;  %v2316_v59 = vrot.slane %v2315_v19, 4  ;;  %v2353_v18 = vadd.f32 %v2352_v43, %v2338_v44 }
 0x206   :  { %v2317_v58 = vadd.f32 %v2316_v59, %v2315_v19  ;;  %v2354_v37 = vrot.slane %v2353_v18, 4 }
 0x208   :  { %v2318_v23 = vrot.slane %v2317_v58, 2  ;;  %v2355_v12 = vadd.f32 %v2354_v37, %v2353_v18 }
 0x20a   :  { %v2319_v24 = vadd.f32 %v2318_v23, %v2317_v58  ;;  %v2356_v31 = vrot.slane %v2355_v12, 2 }
 0x20c   :  { %v2320_v29 = vrot.slane %v2319_v24, 1  ;;  %v2357_v52 = vadd.f32 %v2356_v31, %v2355_v12 }
 0x20e   :  { %v2321_v21 = vadd.f32 %v2320_v29, %v2319_v24  ;;  %v2358_v41 = vrot.slane %v2357_v52, 1 }
 0x210   :  { %2322 = vst [vmem:[%s4170_s5] sm:$0x1] %v2321_v21  ;;  %v2359_v39 = vadd.f32 %v2358_v41, %v2357_v52 }
 0x212   :  { %2360 = vst [vmem:[%s4171_s6] sm:$0x1] %v2359_v39 }

</bundles_post_ra>
